<compile_context>
chip_gen: v6e
topology: v6e:2x2x1
jax: 0.10.0
libtpu: 0.0.40
codegen_flags: <defaults>
</compile_context>

<pallas_src>
import jax
import jax.numpy as jnp
from jax.experimental import pallas as pl
from jax.experimental.pallas import tpu as pltpu

SENT_MAX = 50
TIME_PAD = 56            # SENT_MAX rounded up to a multiple of 8 (sublane tile)
EMBED_NUM = 3257
EMBED_DIM = 128
CLASS_NUM = 3
L3 = SENT_MAX - 3 + 1    # 48
L4 = SENT_MAX - 4 + 1    # 47
L5 = SENT_MAX - 5 + 1    # 46
NFILT = 3 + 4 + 5        # 12 stacked conv-filter rows
SLAB_W = 192             # lane-padded packed output width (48 + 47 + 46 + 3 = 144)
MISC_ROWS = 16
# For stacked column c (0..11): which row of its conv window it is.
_SHIFTS = (0, 1, 2, 0, 1, 2, 3, 0, 1, 2, 3, 4)


def textcnn_kernel(emb_ref, wcat_ref, misc_ref, slab_ref):
    # emb_ref : (TB*56, 128) bf16  -- flattened (batch-tile, padded-time) rows
    # wcat_ref: (128, 12)   bf16  -- [w3; w4; w5]^T
    # misc_ref: (16, 128)   f32   -- packed small params (see wrapper)
    # slab_ref: (TB, 192)   f32   -- [x1 | x2 | x3 | logits | zero pad]
    emb2 = emb_ref[...]
    tb = emb2.shape[0] // TIME_PAD
    misc = misc_ref[...]

    # (1) All three convs' D-contractions in one MXU matmul (f32 accumulate).
    p2 = jnp.dot(emb2, wcat_ref[...], preferred_element_type=jnp.float32)  # (TB*56, 12)
    p2 = p2 + misc[0:1, 0:NFILT]        # conv biases folded onto columns 0 / 3 / 7
    # Tile-aligned sublane split (56 % 8 == 0): regroup rows per example.
    p = p2.reshape(tb, TIME_PAD, NFILT)                                    # (TB, 56, 12)

    # (2) Shifted adds over time: acc[b, t, c] = p[b, t + shift(c), c].
    #     Per-shift lane masks come from misc rows 5..9 (kernel inputs, not
    #     captured constants).
    acc = p[:, 0:L3, :] * misc[5:6, 0:NFILT].reshape(1, 1, NFILT)
    for k in range(1, 5):                                # static unroll, tiny tensors
        mask = misc[5 + k:6 + k, 0:NFILT].reshape(1, 1, NFILT)
        acc = acc + p[:, k:k + L3, :] * mask

    x1 = jnp.maximum(jnp.sum(acc[:, :, 0:3], axis=-1), 0.0)        # (TB, 48) conv3+ReLU
    x2 = jnp.maximum(jnp.sum(acc[:, 0:L4, 3:7], axis=-1), 0.0)     # (TB, 47) conv4+ReLU
    x3 = jnp.maximum(jnp.sum(acc[:, 0:L5, 7:12], axis=-1), 0.0)    # (TB, 46) conv5+ReLU

    # (3) AvgPool over the whole valid length, then Linear(3, C) via broadcasts.
    a1 = jnp.mean(x1, axis=-1, keepdims=True)                       # (TB, 1)
    a2 = jnp.mean(x2, axis=-1, keepdims=True)
    a3 = jnp.mean(x3, axis=-1, keepdims=True)
    logits = (a1 * misc[2:3, 0:CLASS_NUM] + a2 * misc[3:4, 0:CLASS_NUM]
              + a3 * misc[4:5, 0:CLASS_NUM] + misc[1:2, 0:CLASS_NUM])   # (TB, C)

    # (4) Pack everything into the output slab with one full-tile lane-dense store.
    zpad = x1 * 0.0                                                  # (TB, 48) traced zeros
    slab_ref[...] = jnp.concatenate([x1, x2, x3, logits, zpad], axis=-1)


def _round_up(x, m):
    return (x + m - 1) // m * m


def textcnn_forward(x_ids, params, *, block_b=128):
    """Pallas forward.  Returns (logits, x1, x2, x3) with the PyTorch shapes."""
    B, L = x_ids.shape
    # F.pad(x, (0, 50 - L), value=1) on token ids; extra pad to 56 time steps
    # (those positions are never read by any surviving conv window).
    ids = jnp.pad(x_ids, ((0, 0), (0, TIME_PAD - L)), constant_values=1)
    emb = jnp.take(params["embed"], ids, axis=0).astype(jnp.bfloat16)   # (B, 56, 128)

    # Batch tile: multiple of 8.  Pad the batch so it divides evenly into tiles.
    tb = min(block_b, _round_up(B, 8))
    bp = _round_up(B, tb)
    if bp != B:
        emb = jnp.pad(emb, ((0, bp - B), (0, 0), (0, 0)))
    emb2 = emb.reshape(bp * TIME_PAD, EMBED_DIM)        # free row-major reshape in HBM

    # Stacked conv weights, transposed for the MXU: (128, 12) bf16.
    wcat_t = jnp.concatenate(
        [params["w3"], params["w4"], params["w5"]], axis=0).astype(jnp.bfloat16).T

    # Small params packed into one (16, 128) f32 tile (resident; constant index_map):
    #   row 0, lanes 0..11    : conv biases on columns 0 / 3 / 7 (added pre-ReLU)
    #   row 1, lanes 0..2     : linear bias
    #   rows 2..4, lanes 0..2 : wl.T rows (coefficients for a1, a2, a3)
    #   rows 5..9, lanes 0..11: per-shift lane masks (shift k selects columns with
    #                           within-window row index k)
    misc = jnp.zeros((MISC_ROWS, 128), jnp.float32)
    misc = misc.at[0, 0].set(params["b3"])
    misc = misc.at[0, 3].set(params["b4"])
    misc = misc.at[0, 7].set(params["b5"])
    misc = misc.at[1, 0:CLASS_NUM].set(params["bl"].astype(jnp.float32))
    misc = misc.at[2:5, 0:CLASS_NUM].set(params["wl"].T.astype(jnp.float32))
    for k in range(5):
        row = jnp.array([1.0 if s == k else 0.0 for s in _SHIFTS], jnp.float32)
        misc = misc.at[5 + k, 0:NFILT].set(row)

    slab = pl.pallas_call(
        textcnn_kernel,
        out_shape=jax.ShapeDtypeStruct((bp, SLAB_W), jnp.float32),
        grid=(bp // tb,),
        in_specs=[
            pl.BlockSpec((tb * TIME_PAD, EMBED_DIM), lambda b: (b, 0)),
            pl.BlockSpec((EMBED_DIM, NFILT), lambda b: (0, 0)),
            pl.BlockSpec((MISC_ROWS, 128), lambda b: (0, 0)),
        ],
        out_specs=pl.BlockSpec((tb, SLAB_W), lambda b: (b, 0)),
        compiler_params=pltpu.CompilerParams(
            dimension_semantics=("parallel",),
            vmem_limit_bytes=32 * 1024 * 1024),
        cost_estimate=pl.CostEstimate(
            flops=2 * bp * TIME_PAD * EMBED_DIM * NFILT,
            transcendentals=0,
            bytes_accessed=bp * TIME_PAD * EMBED_DIM * 2 + bp * SLAB_W * 4),
    )(emb2, wcat_t, misc)

    slab = slab[:B]
    logits = slab[:, L3 + L4 + L5:L3 + L4 + L5 + CLASS_NUM]
    x1 = slab[:, 0:L3].reshape(B, 1, L3, 1)
    x2 = slab[:, L3:L3 + L4].reshape(B, 1, L4, 1)
    x3 = slab[:, L3 + L4:L3 + L4 + L5].reshape(B, 1, L5, 1)
    return logits, x1, x2, x3


def init_params(key):
    ks = jax.random.split(key, 8)
    scale = 0.05
    return {
        "embed": scale * jax.random.normal(ks[0], (EMBED_NUM, EMBED_DIM), jnp.float32),
        "w3": scale * jax.random.normal(ks[1], (3, EMBED_DIM), jnp.float32),
        "b3": scale * jax.random.normal(ks[2], (), jnp.float32),
        "w4": scale * jax.random.normal(ks[3], (4, EMBED_DIM), jnp.float32),
        "b4": scale * jax.random.normal(ks[4], (), jnp.float32),
        "w5": scale * jax.random.normal(ks[5], (5, EMBED_DIM), jnp.float32),
        "b5": scale * jax.random.normal(ks[6], (), jnp.float32),
        "wl": scale * jax.random.normal(ks[7], (CLASS_NUM, 3), jnp.float32),
        "bl": jnp.arange(CLASS_NUM, dtype=jnp.float32) * 0.01,
    }


def textcnn_reference(x_ids, params):
    """Pure-JAX f32 reference mirroring the PyTorch forward exactly."""
    B, L = x_ids.shape
    ids = jnp.pad(x_ids, ((0, 0), (0, SENT_MAX - L)), constant_values=1)
    emb = jnp.take(params["embed"], ids, axis=0)            # (B, 50, D)

    def conv(w, b, ksize, lout):
        acc = jnp.zeros((B, lout), jnp.float32)
        for k in range(ksize):
            acc = acc + jnp.einsum("btd,d->bt", emb[:, k:k + lout, :], w[k])
        return jax.nn.relu(acc + b)

    x1 = conv(params["w3"], params["b3"], 3, L3)
    x2 = conv(params["w4"], params["b4"], 4, L4)
    x3 = conv(params["w5"], params["b5"], 5, L5)
    feat = jnp.stack([x1.mean(-1), x2.mean(-1), x3.mean(-1)], axis=-1)  # (B, 3)
    out = feat @ params["wl"].T + params["bl"]
    return out, x1.reshape(B, 1, L3, 1), x2.reshape(B, 1, L4, 1), x3.reshape(B, 1, L5, 1)


if __name__ == "__main__":
    key = jax.random.PRNGKey(0)
    pkey, xkey = jax.random.split(key)
    params = init_params(pkey)

    # batch=2, sequence length 8 (padded inside forward to sentence_max_size=50)
    x_ids = jax.random.randint(xkey, (2, 8), 0, EMBED_NUM, dtype=jnp.int32)

    outs = jax.block_until_ready(textcnn_forward(x_ids, params))
    refs = textcnn_reference(x_ids, params)

    names = ("logits", "x1", "x2", "x3")
    for name, got, want in zip(names, outs, refs):
        assert got.shape == want.shape, (name, got.shape, want.shape)
        # bf16 embedding stream -> loosened tolerance vs the f32 reference.
        assert jnp.allclose(got, want, atol=1e-2, rtol=1e-2), f"{name} mismatch vs reference"

    print("KERNEL_OK")
</pallas_src>

<mosaic_0001>
module attributes {stable_mosaic.version = 11 : i64} {
  func.func @textcnn_kernel(%arg0: i32, %arg1: memref<448x128xbf16, #tpu.memory_space<vmem>>, %arg2: memref<128x12xbf16, #tpu.memory_space<vmem>>, %arg3: memref<16x128xf32, #tpu.memory_space<vmem>>, %arg4: memref<8x192xf32, #tpu.memory_space<vmem>>) attributes {dimension_semantics = [#tpu.dimension_semantics<parallel>], iteration_bounds = array<i64: 1>, scalar_prefetch = 0 : i64, scratch_operands = 0 : i64, tpu.core_type = #tpu.core_type<tc>, window_params = [{transform_indices = @transform_0, window_bounds = array<i64: 448, 128>}, {pipeline_mode = #tpu.pipeline_mode<synchronous>, transform_indices = @transform_1, window_bounds = array<i64: 128, 12>}, {pipeline_mode = #tpu.pipeline_mode<synchronous>, transform_indices = @transform_2, window_bounds = array<i64: 16, 128>}, {transform_indices = @transform_3, window_bounds = array<i64: 8, 192>}]} {
    %c0 = arith.constant 0 : index
    %c0_0 = arith.constant 0 : index
    %0 = vector.load %arg1[%c0, %c0_0] : memref<448x128xbf16, #tpu.memory_space<vmem>>, vector<448x128xbf16>
    %c0_1 = arith.constant 0 : index
    %c0_2 = arith.constant 0 : index
    %1 = vector.load %arg3[%c0_1, %c0_2] : memref<16x128xf32, #tpu.memory_space<vmem>>, vector<16x128xf32>
    %c0_3 = arith.constant 0 : index
    %c0_4 = arith.constant 0 : index
    %2 = vector.load %arg2[%c0_3, %c0_4] : memref<128x12xbf16, #tpu.memory_space<vmem>>, vector<128x12xbf16>
    %cst = arith.constant dense<0.000000e+00> : vector<448x12xf32>
    %3 = tpu.matmul %0, %2, %cst {dimension_numbers = #tpu.dot_dimension_numbers<[1], [0], [0], [1], [0, 0, 1, 1], [], []>} : vector<448x128xbf16>, vector<128x12xbf16>, vector<448x12xf32> -> vector<448x12xf32>
    %4 = vector.extract_strided_slice %1 {offsets = [0, 0], sizes = [1, 12], strides = [1, 1]} : vector<16x128xf32> to vector<1x12xf32>
    %5 = vector.broadcast %4 : vector<1x12xf32> to vector<448x12xf32>
    %6 = arith.addf %3, %5 : vector<448x12xf32>
    %7 = vector.shape_cast %6 : vector<448x12xf32> to vector<8x56x12xf32>
    %8 = vector.extract_strided_slice %7 {offsets = [0, 0, 0], sizes = [8, 48, 12], strides = [1, 1, 1]} : vector<8x56x12xf32> to vector<8x48x12xf32>
    %9 = vector.extract_strided_slice %1 {offsets = [5, 0], sizes = [1, 12], strides = [1, 1]} : vector<16x128xf32> to vector<1x12xf32>
    %10 = vector.shape_cast %9 : vector<1x12xf32> to vector<1x1x12xf32>
    %11 = vector.broadcast %10 : vector<1x1x12xf32> to vector<8x48x12xf32>
    %12 = arith.mulf %8, %11 : vector<8x48x12xf32>
    %13 = vector.extract_strided_slice %1 {offsets = [6, 0], sizes = [1, 12], strides = [1, 1]} : vector<16x128xf32> to vector<1x12xf32>
    %14 = vector.shape_cast %13 : vector<1x12xf32> to vector<1x1x12xf32>
    %15 = vector.extract_strided_slice %7 {offsets = [0, 1, 0], sizes = [8, 48, 12], strides = [1, 1, 1]} : vector<8x56x12xf32> to vector<8x48x12xf32>
    %16 = vector.broadcast %14 : vector<1x1x12xf32> to vector<8x48x12xf32>
    %17 = arith.mulf %15, %16 : vector<8x48x12xf32>
    %18 = arith.addf %12, %17 : vector<8x48x12xf32>
    %19 = vector.extract_strided_slice %1 {offsets = [7, 0], sizes = [1, 12], strides = [1, 1]} : vector<16x128xf32> to vector<1x12xf32>
    %20 = vector.shape_cast %19 : vector<1x12xf32> to vector<1x1x12xf32>
    %21 = vector.extract_strided_slice %7 {offsets = [0, 2, 0], sizes = [8, 48, 12], strides = [1, 1, 1]} : vector<8x56x12xf32> to vector<8x48x12xf32>
    %22 = vector.broadcast %20 : vector<1x1x12xf32> to vector<8x48x12xf32>
    %23 = arith.mulf %21, %22 : vector<8x48x12xf32>
    %24 = arith.addf %18, %23 : vector<8x48x12xf32>
    %25 = vector.extract_strided_slice %1 {offsets = [8, 0], sizes = [1, 12], strides = [1, 1]} : vector<16x128xf32> to vector<1x12xf32>
    %26 = vector.shape_cast %25 : vector<1x12xf32> to vector<1x1x12xf32>
    %27 = vector.extract_strided_slice %7 {offsets = [0, 3, 0], sizes = [8, 48, 12], strides = [1, 1, 1]} : vector<8x56x12xf32> to vector<8x48x12xf32>
    %28 = vector.broadcast %26 : vector<1x1x12xf32> to vector<8x48x12xf32>
    %29 = arith.mulf %27, %28 : vector<8x48x12xf32>
    %30 = arith.addf %24, %29 : vector<8x48x12xf32>
    %31 = vector.extract_strided_slice %1 {offsets = [9, 0], sizes = [1, 12], strides = [1, 1]} : vector<16x128xf32> to vector<1x12xf32>
    %32 = vector.shape_cast %31 : vector<1x12xf32> to vector<1x1x12xf32>
    %33 = vector.extract_strided_slice %7 {offsets = [0, 4, 0], sizes = [8, 48, 12], strides = [1, 1, 1]} : vector<8x56x12xf32> to vector<8x48x12xf32>
    %34 = vector.broadcast %32 : vector<1x1x12xf32> to vector<8x48x12xf32>
    %35 = arith.mulf %33, %34 : vector<8x48x12xf32>
    %36 = arith.addf %30, %35 : vector<8x48x12xf32>
    %37 = vector.extract_strided_slice %36 {offsets = [0, 0, 0], sizes = [8, 48, 3], strides = [1, 1, 1]} : vector<8x48x12xf32> to vector<8x48x3xf32>
    %cst_5 = arith.constant dense<0.000000e+00> : vector<8x48xf32>
    %38 = vector.multi_reduction <add>, %37, %cst_5 [2] : vector<8x48x3xf32> to vector<8x48xf32>
    %cst_6 = arith.constant 0.000000e+00 : f32
    %39 = vector.broadcast %cst_6 : f32 to vector<8x48xf32>
    %40 = arith.maximumf %38, %39 : vector<8x48xf32>
    %41 = vector.extract_strided_slice %36 {offsets = [0, 0, 3], sizes = [8, 47, 4], strides = [1, 1, 1]} : vector<8x48x12xf32> to vector<8x47x4xf32>
    %cst_7 = arith.constant dense<0.000000e+00> : vector<8x47xf32>
    %42 = vector.multi_reduction <add>, %41, %cst_7 [2] : vector<8x47x4xf32> to vector<8x47xf32>
    %cst_8 = arith.constant 0.000000e+00 : f32
    %43 = vector.broadcast %cst_8 : f32 to vector<8x47xf32>
    %44 = arith.maximumf %42, %43 : vector<8x47xf32>
    %45 = vector.extract_strided_slice %36 {offsets = [0, 0, 7], sizes = [8, 46, 5], strides = [1, 1, 1]} : vector<8x48x12xf32> to vector<8x46x5xf32>
    %cst_9 = arith.constant dense<0.000000e+00> : vector<8x46xf32>
    %46 = vector.multi_reduction <add>, %45, %cst_9 [2] : vector<8x46x5xf32> to vector<8x46xf32>
    %cst_10 = arith.constant 0.000000e+00 : f32
    %47 = vector.broadcast %cst_10 : f32 to vector<8x46xf32>
    %48 = arith.maximumf %46, %47 : vector<8x46xf32>
    %cst_11 = arith.constant dense<0.000000e+00> : vector<8xf32>
    %49 = vector.multi_reduction <add>, %40, %cst_11 [1] : vector<8x48xf32> to vector<8xf32>
    %50 = vector.shape_cast %49 : vector<8xf32> to vector<8x1xf32>
    %cst_12 = arith.constant 4.800000e+01 : f32
    %51 = vector.broadcast %cst_12 : f32 to vector<8x1xf32>
    %52 = arith.divf %50, %51 : vector<8x1xf32>
    %cst_13 = arith.constant dense<0.000000e+00> : vector<8xf32>
    %53 = vector.multi_reduction <add>, %44, %cst_13 [1] : vector<8x47xf32> to vector<8xf32>
    %54 = vector.shape_cast %53 : vector<8xf32> to vector<8x1xf32>
    %cst_14 = arith.constant 4.700000e+01 : f32
    %55 = vector.broadcast %cst_14 : f32 to vector<8x1xf32>
    %56 = arith.divf %54, %55 : vector<8x1xf32>
    %cst_15 = arith.constant dense<0.000000e+00> : vector<8xf32>
    %57 = vector.multi_reduction <add>, %48, %cst_15 [1] : vector<8x46xf32> to vector<8xf32>
    %58 = vector.shape_cast %57 : vector<8xf32> to vector<8x1xf32>
    %cst_16 = arith.constant 4.600000e+01 : f32
    %59 = vector.broadcast %cst_16 : f32 to vector<8x1xf32>
    %60 = arith.divf %58, %59 : vector<8x1xf32>
    %61 = vector.extract_strided_slice %1 {offsets = [2, 0], sizes = [1, 3], strides = [1, 1]} : vector<16x128xf32> to vector<1x3xf32>
    %62 = vector.broadcast %52 : vector<8x1xf32> to vector<8x3xf32>
    %63 = vector.broadcast %61 : vector<1x3xf32> to vector<8x3xf32>
    %64 = arith.mulf %62, %63 : vector<8x3xf32>
    %65 = vector.extract_strided_slice %1 {offsets = [3, 0], sizes = [1, 3], strides = [1, 1]} : vector<16x128xf32> to vector<1x3xf32>
    %66 = vector.broadcast %56 : vector<8x1xf32> to vector<8x3xf32>
    %67 = vector.broadcast %65 : vector<1x3xf32> to vector<8x3xf32>
    %68 = arith.mulf %66, %67 : vector<8x3xf32>
    %69 = arith.addf %64, %68 : vector<8x3xf32>
    %70 = vector.extract_strided_slice %1 {offsets = [4, 0], sizes = [1, 3], strides = [1, 1]} : vector<16x128xf32> to vector<1x3xf32>
    %71 = vector.broadcast %60 : vector<8x1xf32> to vector<8x3xf32>
    %72 = vector.broadcast %70 : vector<1x3xf32> to vector<8x3xf32>
    %73 = arith.mulf %71, %72 : vector<8x3xf32>
    %74 = arith.addf %69, %73 : vector<8x3xf32>
    %75 = vector.extract_strided_slice %1 {offsets = [1, 0], sizes = [1, 3], strides = [1, 1]} : vector<16x128xf32> to vector<1x3xf32>
    %76 = vector.broadcast %75 : vector<1x3xf32> to vector<8x3xf32>
    %77 = arith.addf %74, %76 : vector<8x3xf32>
    %cst_17 = arith.constant 0.000000e+00 : f32
    %78 = vector.broadcast %cst_17 : f32 to vector<8x48xf32>
    %79 = arith.mulf %40, %78 : vector<8x48xf32>
    %80 = tpu.concatenate %40, %44, %48, %77, %79 in 1 : vector<8x48xf32>, vector<8x47xf32>, vector<8x46xf32>, vector<8x3xf32>, vector<8x48xf32> -> vector<8x192xf32>
    %c0_18 = arith.constant 0 : index
    %c0_19 = arith.constant 0 : index
    %81 = vector.load %arg4[%c0_18, %c0_19] : memref<8x192xf32, #tpu.memory_space<vmem>>, vector<8x192xf32>
    tpu.vector_store %arg4[%c0_18, %c0_19], %80 {strides = array<i32>} : memref<8x192xf32, #tpu.memory_space<vmem>>, vector<8x192xf32>,
    return
  }
  func.func @transform_0(%arg0: i32) -> (i32, i32) {
    %c0_i32 = arith.constant 0 : i32
    %c0_i32_0 = arith.constant 0 : i32
    return %arg0, %c0_i32 : i32, i32
  }
  func.func @transform_1(%arg0: i32) -> (i32, i32) {
    %c0_i32 = arith.constant 0 : i32
    %c0_i32_0 = arith.constant 0 : i32
    %c0_i32_1 = arith.constant 0 : i32
    return %c0_i32, %c0_i32_0 : i32, i32
  }
  func.func @transform_2(%arg0: i32) -> (i32, i32) {
    %c0_i32 = arith.constant 0 : i32
    %c0_i32_0 = arith.constant 0 : i32
    %c0_i32_1 = arith.constant 0 : i32
    return %c0_i32, %c0_i32_0 : i32, i32
  }
  func.func @transform_3(%arg0: i32) -> (i32, i32) {
    %c0_i32 = arith.constant 0 : i32
    %c0_i32_0 = arith.constant 0 : i32
    return %arg0, %c0_i32 : i32, i32
  }
}

</mosaic_0001>

<bundles_post_ra>
// kernel: tpu_custom_call.1
= control target key start
LH: loop header
LB: loop body
LE: loop exit
PB: predicated region body
PF: predicated region fallthrough
CT: control target
= control target key end

     0   :  { %8 = vsyncpa [#allocation3], 0  ;;  %s8874_s0 = inlined_call_operand.hbm [shape: bf16[448,128], index: 0, kind: input, shape index: {}]   ;;  %s8875_s1 = inlined_call_operand.vmem [shape: bf16[128,12], index: 1, kind: input, shape index: {}]   ;;  %s8876_s2 = inlined_call_operand.vmem [shape: f32[16,128], index: 2, kind: input, shape index: {}]   ;;  %s8877_s3 = inlined_call_operand.hbm [shape: f32[8,192], index: 3, kind: output, shape index: {}]  }
   0x1   :  { %9 = vsyncpa [#allocation4], 0  ;;  %s4898_s12 = smov [#allocation2]  }
   0x2   :  { %s15_s13 = sshll.u32 %s4898_s12, 4  ;;  %s16_s13 = int_to_ptr.vmem [resolvable:$true] %s15_s13 }
   0x3   :  { %s4862_s14 = scalar_lea.vmem %s16_s13, 3584  ;;  %p4867_p1 = scmp.lt.s32.totalorder %s16_s13, %s16_s13 }
   0x4   :  { %p4863_p0 = scmp.ne.s32.totalorder %s16_s13, %s4862_s14  ;;  %p4868_p2 = scmp.lt.s32.totalorder %s4862_s14, %s4862_s14 }
   0x6   :  { %p4869_p3 = por %p4868_p2, %p4867_p1 }
   0x8   :  { %p4870_p4 = pnand %p4869_p3, %p4863_p0 }
   0xa   :  { %4873 = shalt.err (!%p4870_p4)
}
   0xb   :  { %s4899_s15 = smov 64   ;;  %s4900_s16 = smov 4  }
   0xc   :  { %21 = dma.hbm_to_vmem [thread:$0]  %s8874_s0, 3584, %s16_s13, [#allocation3], %s4899_s15, %s4899_s15, %s4900_s16  }
   0xd   :  { %4894 = dma.done.wait [#allocation3], 3584  }
   0xe   :  { %4895 = vsyncadd [#allocation3], 4294963712  ;;  %v4817_v0 = vld [vmem:[%s8875_s1 + $0x38] sm:$0xff]   ;;  %v4818_v1 = vld [vmem:[%s8875_s1 + $0x30] sm:$0xff]   ;;  %v8879_v24 = vlaneseq  ;;  %vm749_vm0 = vcmask 1046528   ;;  %vm1066_vm1 = vcmask 1045504  }
   0xf   :  { %4722 = vmatprep.subr.bf16.mxu0 %v4817_v0  ;;  %4794 = vmatprep.subr.bf16.mxu1 %v4817_v0  ;;  %v4819_v2 = vld [vmem:[%s8875_s1 + $0x28] sm:$0xff]   ;;  %v4820_v3 = vld [vmem:[%s8875_s1 + $0x20] sm:$0xff]   ;;  %v4826_v5 = vld [vmem:[#allocation2 + $0x70] sm:$0xff]   ;;  %vm1383_vm2 = vcmask 1044480   ;;  %vm1700_vm3 = vcmask 1043456   ;;  %s4901_s10 = smov 125  }
  0x10   :  { %4723 = vmatpush3.bf16.msra.mxu0 %v4817_v0  ;;  %4802 = vmatpush3.bf16.msra.mxu1 %v4817_v0  ;;  %v4825_v4 = vld [vmem:[#allocation2] sm:$0xff]   ;;  %v4821_v6 = vld [vmem:[%s8875_s1 + $0x18] sm:$0xff]   ;;  %v4822_v7 = vld [vmem:[%s8875_s1 + $0x10] sm:$0xff]   ;;  %v4953_v25 = vshrl.u32 %v8879_v24, 7  ;;  %s4902_s11 = smov 121   ;;  %vm1901_vm4 = vcmask 23552  }
  0x11   :  { %4724 = vmatprep.subr.bf16.mxu0 %v4818_v1  ;;  %4795 = vmatprep.subr.bf16.mxu1 %v4818_v1  ;;  %v4823_v8 = vld [vmem:[%s8875_s1 + $0x8] sm:$0xff]   ;;  %v4824_v9 = vld [vmem:[%s8875_s1] sm:$0xff]   ;;  %v4828_v11 = vld [vmem:[#allocation2 + $0x78] sm:$0xff]   ;;  %vm2891_vm5 = vcmask 261312   ;;  %vm2898_vm6 = vcmask 326912   ;;  %vm2905_vm7 = vcmask 392512  }
  0x12   :  { %4738 = vmatprep.mubr.bf16.mxu0 %v4825_v4  ;;  %4766 = vmatprep.mubr.bf16.mxu1 %v4826_v5  ;;  %v4827_v10 = vld [vmem:[#allocation2 + $0x8] sm:$0xff]   ;;  %v4829_v12 = vld [vmem:[#allocation2 + $0x10] sm:$0xff]   ;;  %v4830_v13 = vld [vmem:[#allocation2 + $0x80] sm:$0xff]   ;;  %9069 = vst [vmem:[#allocation8_spill] sm:$0xff] %v4953_v25  ;;  %v106_v26 = vsub.s32 0, %v4953_v25  ;;  %v635_v31 = vsub.s32 6, %v4953_v25 }
  0x13   :  { %v4831_v14 = vld [vmem:[#allocation2 + $0x18] sm:$0xff]   ;;  %v4832_v15 = vld [vmem:[#allocation2 + $0x88] sm:$0xff]   ;;  %v4833_v16 = vld [vmem:[#allocation2 + $0x20] sm:$0xff]   ;;  %v952_v37 = vsub.s32 7, %v4953_v25  ;;  %v583_v44 = vsub.s32 5, %v4953_v25  ;;  %v8878_v47 = vsub.s32 1, %v4953_v25 }
  0x14   :  { %4725 = vmatpush3.bf16.msra.mxu0 %v4818_v1  ;;  %4803 = vmatpush3.bf16.msra.mxu1 %v4818_v1  ;;  %v4835_v17 = vld [vmem:[#allocation2 + $0x90] sm:$0xff]   ;;  %v4834_v18 = vld [vmem:[#allocation2 + $0x28] sm:$0xff]   ;;  %v4836_v19 = vld [vmem:[#allocation2 + $0x98] sm:$0xff]   ;;  %vm4407_vm8 = vcmask 458112   ;;  %vm3799_vm9 = vcmask 523712   ;;  %vm9064_vm10 = vcmask 1041409  }
  0x15   :  { %4726 = vmatprep.subr.bf16.mxu0 %v4819_v2  ;;  %4796 = vmatprep.subr.bf16.mxu1 %v4819_v2  ;;  %v4837_v20 = vld [vmem:[#allocation2 + $0x30] sm:$0xff]   ;;  %v4838_v21 = vld [vmem:[#allocation2 + $0x38] sm:$0xff]   ;;  %v4839_v22 = vld [vmem:[#allocation2 + $0xa0] sm:$0xff]   ;;  %vm3112_vm11 = vcmask 1042434   ;;  %vm2286_vm12 = vcmask 31744   ;;  %vm2302_vm13 = vcmask 30720  }
  0x16   :  { %v4840_v23 = vld [vmem:[#allocation2 + $0xa8] sm:$0xff]   ;;  %v86_v27 = vld [vmem:[%s8876_s2] sm:$0xff]  ;;  %vm2624_vm14 = vcmask 39936   ;;  %vm9065_vm15 = vcmask 1043459   ;;  %s4903_s14 = smov 13  }
  0x17   :  { %v4959_v30 = vrot.slane %v86_v27, %v106_v26  ;;  %v4967_v36 = vrot.slane %v86_v27, %v635_v31  ;;  %v87_v43 = vld [vmem:[%s8876_s2 + $0x8] sm:$0xff]  ;;  %v4988_v46 = vrot.slane %v86_v27, %v952_v37  ;;  %v5006_v55 = vrot.slane %v86_v27, %v583_v44  ;;  %v4841_v5 = vld [vmem:[#allocation2 + $0x40] sm:$0xff]  }
  0x18   :  { %4727 = vmatpush3.bf16.msra.mxu0 %v4819_v2  ;;  %4804 = vmatpush3.bf16.msra.mxu1 %v4819_v2  ;;  %v4996_v51 = vrot.slane %v87_v43, %v106_v26  ;;  %v5027_v63 = vrot.slane %v87_v43, %v8878_v47 }
  0x19   :  { %4728 = vmatprep.subr.bf16.mxu0 %v4820_v3  ;;  %4797 = vmatprep.subr.bf16.mxu1 %v4820_v3  ;;  %9070 = vst [vmem:[#allocation9_spill] sm:$0xff] %v4959_v30  ;;  %9071 = vst [vmem:[#allocation10_spill] sm:$0xff] %v4967_v36 }
  0x1a   :  { %9072 = vst [vmem:[#allocation11_spill] sm:$0xff] %v4988_v46 }
  0x1c   :  { %4729 = vmatpush3.bf16.msra.mxu0 %v4820_v3  ;;  %4805 = vmatpush3.bf16.msra.mxu1 %v4820_v3 }
  0x1d   :  { %4730 = vmatprep.subr.bf16.mxu0 %v4821_v6  ;;  %4798 = vmatprep.subr.bf16.mxu1 %v4821_v6 }
  0x20   :  { %4731 = vmatpush3.bf16.msra.mxu0 %v4821_v6  ;;  %4806 = vmatpush3.bf16.msra.mxu1 %v4821_v6 }
  0x21   :  { %4732 = vmatprep.subr.bf16.mxu0 %v4822_v7  ;;  %4799 = vmatprep.subr.bf16.mxu1 %v4822_v7 }
  0x24   :  { %4733 = vmatpush3.bf16.msra.mxu0 %v4822_v7  ;;  %4807 = vmatpush3.bf16.msra.mxu1 %v4822_v7 }
  0x25   :  { %4734 = vmatprep.subr.bf16.mxu0 %v4823_v8  ;;  %4800 = vmatprep.subr.bf16.mxu1 %v4823_v8 }
  0x28   :  { %4735 = vmatpush3.bf16.msra.mxu0 %v4823_v8  ;;  %4808 = vmatpush3.bf16.msra.mxu1 %v4823_v8 }
  0x29   :  { %4736 = vmatprep.subr.bf16.mxu0 %v4824_v9  ;;  %4801 = vmatprep.subr.bf16.mxu1 %v4824_v9 }
  0x2c   :  { %4737 = vmatpush3.bf16.msra.mxu0 %v4824_v9  ;;  %4809 = vmatpush3.bf16.msra.mxu1 %v4824_v9 }
  0x2f   :  { %4739 = vmatmul.mubr.bf16.vlgmr.msra.gmra.mxu0 %v4827_v10  ;;  %4767 = vmatmul.mubr.bf16.vlgmr.msra.gmra.mxu1 %v4828_v11 }
  0x30   :  { %4742 = vmatprep.mubr.bf16.mxu0 %v4829_v12  ;;  %4770 = vmatprep.mubr.bf16.mxu1 %v4830_v13 }
  0x37   :  { %4743 = vmatmul.mubr.bf16.gmra.mxu0 %v4831_v14  ;;  %4771 = vmatmul.mubr.bf16.gmra.mxu1 %v4832_v15 }
  0x38   :  { %4746 = vmatprep.mubr.bf16.mxu0 %v4833_v16  ;;  %4774 = vmatprep.mubr.bf16.mxu1 %v4835_v17 }
  0x3f   :  { %4747 = vmatmul.mubr.bf16.gmra.mxu0 %v4834_v18  ;;  %4775 = vmatmul.mubr.bf16.gmra.mxu1 %v4836_v19 }
  0x40   :  { %4750 = vmatprep.mubr.bf16.mxu0 %v4837_v20  ;;  %4778 = vmatprep.mubr.bf16.mxu1 %v4839_v22  ;;  %v4843_v22 = vld [vmem:[#allocation2 + $0xb0] sm:$0xff]  }
  0x47   :  { %4751 = vmatmul.mubr.bf16.gmra.mxu0 %v4838_v21  ;;  %4779 = vmatmul.mubr.bf16.gmra.mxu1 %v4840_v23  ;;  %v4842_v21 = vld [vmem:[#allocation2 + $0x48] sm:$0xff]  }
  0x48   :  { %4754 = vmatprep.mubr.bf16.mxu0 %v4841_v5  ;;  %4782 = vmatprep.mubr.bf16.mxu1 %v4843_v22 }
  0x4f   :  { %4755 = vmatmul.mubr.bf16.gmra.mxu0 %v4842_v21 }
  0xef   :  { %v4740_v28 = vpop.f32.mrf.mxu0  ;;  %v4768_v29 = vpop.f32.mrf.mxu1 }
  0xf0   :  { %v479_v34 = vadd.f32 %v4768_v29, %v4959_v30  ;;  %v367_v45 = vadd.f32 %v4740_v28, %v4959_v30 }
  0xf1   :  { %v4962_v32 = vpop.f32.mrf.mxu0  ;;  %v4964_v33 = vpop.f32.mrf.mxu1 }
  0xf2   :  { %v4974_v40 = vmul.f32 %v4967_v36, %v479_v34  ;;  %v4993_v49 = vmul.f32 %v4988_v46, %v479_v34  ;;  %v5009_v56 = vmul.f32 %v4967_v36, %v367_v45  ;;  %v611_v57 = vmul.f32 %v5006_v55, %v479_v34 }
  0xf3   :  { %v4769_v35 = vpop.f32.mrf.mxu1  ;;  %v4741_v38 = vpop.f32.mrf.mxu0  ;;  %v5013_v58 = vmul.f32 %v4996_v51, %v479_v34  ;;  %v5032_v3 = vmul.f32 %v4988_v46, %v367_v45  ;;  %v5049_v9 = vmul.f32 %v5027_v63, %v479_v34  ;;  %v587_v15 = vmul.f32 %v5006_v55, %v367_v45 }
  0xf4   :  { %v4971_v39 = vadd.f32 %v4769_v35, %v4959_v30  ;;  %v4981_v42 = vadd.f32 %v4741_v38, %v4959_v30  ;;  %v805_v48 = vrot.slane %v4974_v40, 1  ;;  %v1122_v61 = vrot.slane %v4993_v49, 2 }
  0xf5   :  { %v473_v54 = vpop.f32.mrf.mxu1  ;;  %v753_v2 = vrot.slane %v5009_v56, 1  ;;  %v1439_v8 = vrot.slane %v5013_v58, 3  ;;  %v1756_v14 = vrot.slane %v5049_v9, 4  ;;  %v1070_v18 = vrot.slane %v5032_v3, 2 }
  0xf6   :  { %v4978_v41 = vmul.f32 %v4967_v36, %v4971_v39  ;;  %v5000_v52 = vmul.f32 %v4967_v36, %v4981_v42  ;;  %v5004_v53 = vmul.f32 %v4988_v46, %v4971_v39  ;;  %v5016_v59 = vadd.f32 %v473_v54, %v4959_v30 }
  0xf7   :  { %v5036_v4 = vmul.f32 %v4988_v46, %v4981_v42  ;;  %v5045_v7 = vmul.f32 %v4996_v51, %v4971_v39  ;;  %v5057_v12 = vmul.f32 %v5027_v63, %v4971_v39  ;;  %v5071_v20 = vmul.f32 %v4996_v51, %v367_v45  ;;  %v5128_v21 = vpop.f32.mrf.mxu1 }
  0xf8   :  { %v807_v50 = vrot.slane %v4978_v41, 1  ;;  %v755_v62 = vrot.slane %v5000_v52, 1  ;;  %v1124_v1 = vrot.slane %v5004_v53, 2  ;;  %v5053_v10 = vmul.f32 %v4967_v36, %v5016_v59 }
  0xf9   :  { %v1441_v13 = vrot.slane %v5045_v7, 3  ;;  %v1758_v17 = vrot.slane %v5057_v12, 4  ;;  %v1072_v19 = vrot.slane %v5036_v4, 2  ;;  %v5080_v27 = vmul.f32 %v4996_v51, %v4981_v42 }
  0xfa   :  { %v808_v60 = vsel %vm749_vm0, %v805_v48, %v807_v50  ;;  %v1125_v6 = vsel %vm1066_vm1, %v1122_v61, %v1124_v1  ;;  %v756_v16 = vsel %vm749_vm0, %v753_v2, %v755_v62  ;;  %v5083_v28 = vmul.f32 %v5027_v63, %v367_v45  ;;  %v4844_v45 = vld [vmem:[#allocation2 + $0xb8] sm:$0xff]  }
  0xfb   :  { %v928_v0 = vadd.f32 %v808_v60, %v611_v57  ;;  %v1442_v23 = vsel %vm1383_vm2, %v1439_v8, %v1441_v13  ;;  %v904_v26 = vadd.f32 %v756_v16, %v587_v15  ;;  %v1759_v31 = vsel %vm1700_vm3, %v1756_v14, %v1758_v17  ;;  %4783 = vmatmul.mubr.bf16.gmra.mxu1 %v4844_v45  ;;  %v486_v45 = vpop.f32.mrf.mxu1 }
  0xfc   :  { %v1073_v34 = vsel %vm1066_vm1, %v1070_v18, %v1072_v19  ;;  %v1387_v37 = vrot.slane %v5071_v20, 3  ;;  %v1389_v38 = vrot.slane %v5080_v27, 3  ;;  %v5097_v43 = vmul.f32 %v5027_v63, %v4981_v42 }
  0xfd   :  { %v1245_v11 = vadd.f32 %v1125_v6, %v928_v0  ;;  %v1221_v35 = vadd.f32 %v1073_v34, %v904_v26  ;;  %v1704_v57 = vrot.slane %v5083_v28, 4  ;;  %v361_v0 = vpop.f32.mrf.mxu0  ;;  %v803_v6 = vrot.slane %v5053_v10, 1 }
  0xfe   :  { %v1390_v54 = vsel %vm1383_vm2, %v1387_v37, %v1389_v38  ;;  %v1706_v60 = vrot.slane %v5097_v43, 4  ;;  %v610_v22 = vmul.f32 %v5006_v55, %v5016_v59  ;;  %v5144_v34 = vmul.f32 %v5027_v63, %v5016_v59 }
  0xff   :  { %v1562_v29 = vadd.f32 %v1442_v23, %v1245_v11  ;;  %v1538_v5 = vadd.f32 %v1390_v54, %v1221_v35  ;;  %v5118_v11 = vmul.f32 %v4988_v46, %v5016_v59  ;;  %v5122_v16 = vpop.f32.mrf.mxu0  ;;  %v806_v23 = vsel %vm749_vm0, %v803_v6, %v805_v48 }
 0x100   :  { %v1707_v9 = vsel %vm1700_vm3, %v1704_v57, %v1706_v60 }
 0x101   :  { %v5099_v44 = vadd.f32 %v1759_v31, %v1562_v29  ;;  %v5120_v15 = vadd.f32 %v1707_v9, %v1538_v5  ;;  %v1120_v26 = vrot.slane %v5118_v11, 2  ;;  %v5140_v29 = vmul.f32 %v4996_v51, %v5016_v59  ;;  %v374_v35 = vpop.f32.mrf.mxu0 }
 0x102   :  { %v927_v31 = vadd.f32 %v806_v23, %v610_v22  ;;  %v1754_v5 = vrot.slane %v5144_v34, 4  ;;  %v5161_v9 = vadd.f32 %v374_v35, %v4959_v30  ;;  %v5164_v22 = vadd.f32 %v486_v45, %v4959_v30 }
 0x103   :  { %2194 = vrot.lane.b32.xlu0 %v5099_v44, %s4901_s10  ;;  %2146 = vrot.lane.b32.xlu1 %v5120_v15, %s4901_s10  ;;  %v1123_v40 = vsel %vm1066_vm1, %v1120_v26, %v1122_v61  ;;  %v1437_v48 = vrot.slane %v5140_v29, 3  ;;  %v588_v45 = vmul.f32 %v5006_v55, %v4981_v42  ;;  %v612_v42 = vmul.f32 %v5006_v55, %v4971_v39  ;;  %v5321_v28 = vpop.f32.mrf.mxu0 }
 0x104   :  { %v1244_v54 = vadd.f32 %v1123_v40, %v927_v31  ;;  %v1757_v61 = vsel %vm1700_vm3, %v1754_v5, %v1756_v14  ;;  %v5173_v58 = vmul.f32 %v4967_v36, %v5161_v9  ;;  %v5182_v35 = vmul.f32 %v4988_v46, %v5161_v9 }
 0x105   :  { %v1440_v59 = vsel %vm1383_vm2, %v1437_v48, %v1439_v8  ;;  %v5177_v8 = vmul.f32 %v4967_v36, %v5164_v22  ;;  %v5187_v14 = vmul.f32 %v4988_v46, %v5164_v22  ;;  %v5203_v47 = vmul.f32 %v5027_v63, %v5161_v9  ;;  %v377_v29 = vpop.f32.mrf.mxu0 }
 0x106   :  { %v1561_v49 = vadd.f32 %v1440_v59, %v1244_v54  ;;  %v8880_v31 = vrot.slane %v5173_v58, 1  ;;  %v1074_v59 = vrot.slane %v5182_v35, 2  ;;  %v5221_v24 = vmul.f32 %v4996_v51, %v5164_v22 }
 0x107   :  { %2484 = vrot.lane.b32.xlu0 %v5120_v15, %s4902_s11  ;;  %2532 = vrot.lane.b32.xlu1 %v5099_v44, %s4902_s11  ;;  %v8881_v40 = vrot.slane %v5177_v8, 1  ;;  %v613_v35 = vmul.f32 %v5006_v55, %v5164_v22 }
 0x108   :  { %v5169_v23 = vadd.f32 %v1757_v61, %v1561_v49  ;;  %v758_v54 = vsel %vm749_vm0, %v755_v62, %v8880_v31  ;;  %v5199_v49 = vmul.f32 %v4996_v51, %v5161_v9  ;;  %v1075_v62 = vsel %vm1066_vm1, %v1072_v19, %v1074_v59 }
 0x109   :  { %v905_v61 = vadd.f32 %v758_v54, %v588_v45  ;;  %v810_v52 = vsel %vm749_vm0, %v807_v50, %v8881_v40  ;;  %v8887_v54 = vrot.slane %v5187_v14, 2  ;;  %v8886_v31 = vrot.slane %v5203_v47, 4 }
 0x10a   :  { %v8888_v45 = vrot.slane %v5199_v49, 3  ;;  %v929_v41 = vadd.f32 %v810_v52, %v612_v42  ;;  %v5226_v50 = vmul.f32 %v5027_v63, %v5164_v22  ;;  %v362_v42 = vadd.f32 %v361_v0, %v4959_v30 }
 0x10b   :  { %v1222_v39 = vadd.f32 %v1075_v62, %v905_v61  ;;  %v1127_v19 = vsel %vm1066_vm1, %v1124_v1, %v8887_v54  ;;  %v8885_v61 = vrot.slane %v5221_v24, 3  ;;  %v1709_v27 = vsel %vm1700_vm3, %v1706_v60, %v8886_v31 }
 0x10c   :  { %v1392_v4 = vsel %vm1383_vm2, %v1389_v38, %v8888_v45  ;;  %v1246_v62 = vadd.f32 %v1127_v19, %v929_v41  ;;  %v8882_v40 = vrot.slane %v5226_v50, 4  ;;  %v359_v1 = vadd.f32 %v4962_v32, %v4959_v30 }
 0x10d   :  { %v1539_v52 = vadd.f32 %v1392_v4, %v1222_v39  ;;  %v1444_v53 = vsel %vm1383_vm2, %v1441_v13, %v8885_v61  ;;  %v638_v60 = vmul.f32 %v4967_v36, %v362_v42  ;;  %v471_v13 = vadd.f32 %v4964_v33, %v4959_v30 }
 0x10e   :  { %v1563_v0 = vadd.f32 %v1444_v53, %v1246_v62  ;;  %v1761_v43 = vsel %vm1700_vm3, %v1758_v17, %v8882_v40  ;;  %v637_v7 = vmul.f32 %v4967_v36, %v359_v1  ;;  %v1980_v32 = vsel %vm1901_vm4, %v5099_v44, 0.0 }
 0x10f   :  { %v5253_v38 = vadd.f32 %v1709_v27, %v1539_v52  ;;  %v751_v41 = vrot.slane %v638_v60, 1  ;;  %v665_v19 = vmul.f32 %v4967_v36, %v471_v13  ;;  %v955_v12 = vmul.f32 %v4988_v46, %v362_v42 }
 0x110   :  { %v5261_v39 = vadd.f32 %v1761_v43, %v1563_v0  ;;  %v750_v4 = vrot.slane %v637_v7, 1  ;;  %v954_v17 = vmul.f32 %v4988_v46, %v359_v1  ;;  %v585_v62 = vmul.f32 %v5006_v55, %v359_v1 }
 0x111   :  { %v802_v27 = vrot.slane %v665_v19, 1  ;;  %v1068_v53 = vrot.slane %v955_v12, 2  ;;  %v1272_v33 = vmul.f32 %v4996_v51, %v362_v42  ;;  %v982_v0 = vmul.f32 %v4988_v46, %v471_v13 }
 0x112   :  { %v752_v52 = vsel %vm749_vm0, %v750_v4, %v751_v41  ;;  %v1908_v44 = vsel %vm1901_vm4, %v5120_v15, 0.0  ;;  %v754_v60 = vsel %vm749_vm0, %v751_v41, %v753_v2  ;;  %v1067_v7 = vrot.slane %v954_v17, 2 }
 0x113   :  { %v902_v43 = vadd.f32 %v752_v52, %v585_v62  ;;  %v804_v4 = vsel %vm749_vm0, %v802_v27, %v803_v6  ;;  %v586_v19 = vmul.f32 %v5006_v55, %v362_v42  ;;  %v609_v12 = vmul.f32 %v5006_v55, %v471_v13 }
 0x114   :  { %v1385_v40 = vrot.slane %v1272_v33, 3  ;;  %v1589_v15 = vmul.f32 %v5027_v63, %v362_v42  ;;  %v1069_v52 = vsel %vm1066_vm1, %v1067_v7, %v1068_v53  ;;  %v1588_v41 = vmul.f32 %v5027_v63, %v359_v1 }
 0x115   :  { %v903_v62 = vadd.f32 %v754_v60, %v586_v19  ;;  %v1219_v56 = vadd.f32 %v1069_v52, %v902_v43  ;;  %v1119_v17 = vrot.slane %v982_v0, 2  ;;  %v1299_v10 = vmul.f32 %v4996_v51, %v471_v13 }
 0x116   :  { %v1071_v6 = vsel %vm1066_vm1, %v1068_v53, %v1070_v18  ;;  %v1702_v27 = vrot.slane %v1589_v15, 4  ;;  %v1388_v3 = vsel %vm1383_vm2, %v1385_v40, %v1387_v37  ;;  %v9086_v22 = vrot.slane %v5177_v8, 1 }
 0x117   :  { %v1121_v42 = vsel %vm1066_vm1, %v1119_v17, %v1120_v26  ;;  %v1220_v60 = vadd.f32 %v1071_v6, %v903_v62 }
 0x119   :  { %v1537_v11 = vadd.f32 %v1388_v3, %v1220_v60 }
 0x126   :  { %1981 = vadd.xlane.f32.xlu0 %v1980_v32  ;;  %v1271_v32 = vmul.f32 %v4996_v51, %v359_v1  ;;  %v1616_v1 = vmul.f32 %v5027_v63, %v471_v13  ;;  %v1705_v13 = vsel %vm1700_vm3, %v1702_v27, %v1704_v57  ;;  %v5323_v57 = vpop.f32.mrf.mxu1 }
 0x127   :  { %v1854_v37 = vadd.f32 %v1705_v13, %v1537_v11  ;;  %v589_v11 = vmul.f32 %v5006_v55, %v5161_v9 }
 0x128   :  { %v1384_v2 = vrot.slane %v1271_v32, 3  ;;  %v1701_v32 = vrot.slane %v1588_v41, 4  ;;  %v1753_v19 = vrot.slane %v1616_v1, 4  ;;  %v489_v34 = vpop.f32.mrf.mxu1 }
 0x129   :  { %v1905_v6 = vsel %vm1901_vm4, %v1854_v37, 0.0 }
 0x12a   :  { %v1386_v33 = vsel %vm1383_vm2, %v1384_v2, %v1385_v40  ;;  %v1703_v18 = vsel %vm1700_vm3, %v1701_v32, %v1702_v27  ;;  %v1755_v20 = vsel %vm1700_vm3, %v1753_v19, %v1754_v5  ;;  %v5327_v5 = vpop.f32.mrf.mxu1 }
 0x12b   :  { %1909 = vadd.xlane.f32.xlu1 %v1908_v44  ;;  %v926_v44 = vadd.f32 %v804_v4, %v609_v12  ;;  %v1536_v43 = vadd.f32 %v1386_v33, %v1219_v56  ;;  %v1436_v4 = vrot.slane %v1299_v10, 3  ;;  %v5352_v33 = vadd.f32 %v5128_v21, %v4959_v30 }
 0x12c   :  { %v5331_v52 = vpop.f32.mrf.mxu1 }
 0x12d   :  { %v1243_v7 = vadd.f32 %v1121_v42, %v926_v44  ;;  %v1438_v53 = vsel %vm1383_vm2, %v1436_v4, %v1437_v48  ;;  %v1853_v0 = vadd.f32 %v1703_v18, %v1536_v43  ;;  %v5325_v48 = vpop.f32.mrf.mxu0  ;;  %v5336_v44 = vadd.f32 %v377_v29, %v4959_v30 }
 0x12e   :  { %v4777_v62 = vpop.f32.mrf.mxu1  ;;  %v1977_v4 = vsel %vm1901_vm4, %v5169_v23, 0.0  ;;  %v5371_v18 = vmul.f32 %v4967_v36, %v5352_v33 }
 0x12f   :  { %v1560_v26 = vadd.f32 %v1438_v53, %v1243_v7  ;;  %v5329_v12 = vpop.f32.mrf.mxu0  ;;  %v1902_v2 = vsel %vm1901_vm4, %v1853_v0, 0.0  ;;  %v5345_v10 = vmul.f32 %v4967_v36, %v5336_v44  ;;  %v5357_v43 = vmul.f32 %v4988_v46, %v5336_v44 }
 0x130   :  { %v5339_v41 = vpop.f32.mrf.mxu1  ;;  %v5360_v7 = vadd.f32 %v489_v34, %v4959_v30  ;;  %v5375_v53 = vmul.f32 %v4988_v46, %v5352_v33  ;;  %v5391_v13 = vmul.f32 %v4996_v51, %v5336_v44  ;;  %v5408_v34 = vmul.f32 %v4996_v51, %v5352_v33 }
 0x131   :  { %v1877_v40 = vadd.f32 %v1755_v20, %v1560_v26  ;;  %v4749_v15 = vpop.f32.mrf.mxu0  ;;  %9073 = vst [vmem:[#allocation12_spill] sm:$0xff] %v5339_v41  ;;  %v8884_v60 = vrot.slane %v5345_v10, 1  ;;  %v8883_v19 = vrot.slane %v5357_v43, 2  ;;  %v514_v20 = vadd.f32 %v4777_v62, %v4959_v30  ;;  %v4845_v41 = vld [vmem:[#allocation2 + $0x50] sm:$0xff]  }
 0x132   :  { %v5348_v27 = vpop.f32.mrf.mxu1  ;;  %v402_v1 = vadd.f32 %v4749_v15, %v4959_v30  ;;  %4758 = vmatprep.mubr.bf16.mxu0 %v4845_v41  ;;  %v9103_v41 = vrot.slane %v5371_v18, 1 }
 0x133   :  { %v5333_v56 = vpop.f32.mrf.mxu0  ;;  %9075 = vst [vmem:[#allocation14_spill] sm:$0xff] %v5348_v27  ;;  %v1974_v32 = vsel %vm1901_vm4, %v1877_v40, 0.0  ;;  %v619_v25 = vmul.f32 %v5006_v55, %v514_v20 }
 0x134   :  { %v518_v3 = vpop.f32.mrf.mxu1  ;;  %v595_v61 = vmul.f32 %v5006_v55, %v402_v1 }
 0x135   :  { %v5341_v17 = vpop.f32.mrf.mxu0  ;;  %v5395_v9 = vadd.f32 %v518_v3, %v4959_v30  ;;  %v5429_v3 = vmul.f32 %v4967_v36, %v514_v20 }
 0x136   :  { %9074 = vst [vmem:[#allocation13_spill] sm:$0xff] %v5341_v17 }
 0x137   :  { %v406_v42 = vpop.f32.mrf.mxu0  ;;  %9078 = vst [vmem:[#allocation16_spill] sm:$0xff] %v5395_v9 }
 0x138   :  { %v5367_v21 = vadd.f32 %v406_v42, %v4959_v30  ;;  %v5468_v42 = vmul.f32 %v4988_v46, %v5395_v9 }
 0x13a   :  { %9076 = vst [vmem:[#allocation15_spill] sm:$0xff] %v5367_v21  ;;  %v5449_v29 = vmul.f32 %v4988_v46, %v5367_v21  ;;  %9087 = vst [vmem:[#allocation24_spill] sm:$0xff] %v5468_v42  ;;  %v5488_v27 = vmul.f32 %v4996_v51, %v5367_v21  ;;  %v8901_v54 = vrot.slane %v5468_v42, 2 }
 0x13c   :  { %2142 = vrot.lane.b32.xlu0 %v1853_v0, %s4901_s10  ;;  %2144 = vrot.lane.b32.xlu1 %v1854_v37, %s4901_s10  ;;  %9085 = vst [vmem:[#allocation23_spill] sm:$0xff] %v5449_v29  ;;  %v8899_v8 = vrot.slane %v5449_v29, 2  ;;  %9088 = vst [vmem:[#allocation25_spill] sm:$0xff] %v5488_v27 }
 0x140   :  { %2190 = vrot.lane.b32.xlu0 %v1877_v40, %s4901_s10  ;;  %2192 = vrot.lane.b32.xlu1 %v5169_v23, %s4901_s10 }
 0x144   :  { %2480 = vrot.lane.b32.xlu0 %v1853_v0, %s4902_s11  ;;  %2482 = vrot.lane.b32.xlu1 %v1854_v37, %s4902_s11  ;;  %v9077_v0 = vrot.slane %v5173_v58, 1  ;;  %v5398_v37 = vmul.f32 %v4967_v36, %v402_v1 }
 0x146   :  { %v760_v26 = vsel %vm749_vm0, %v9077_v0, %v8884_v60  ;;  %9079 = vst [vmem:[#allocation17_spill] sm:$0xff] %v5398_v37  ;;  %v5445_v60 = vmul.f32 %v4988_v46, %v514_v20 }
 0x147   :  { %v906_v15 = vadd.f32 %v760_v26, %v589_v11  ;;  %v5433_v11 = vmul.f32 %v4967_v36, %v5395_v9  ;;  %v5440_v26 = vmul.f32 %v4996_v51, %v402_v1 }
 0x148   :  { %2530 = vrot.lane.b32.xlu0 %v5169_v23, %s4902_s11  ;;  %2528 = vrot.lane.b32.xlu1 %v1877_v40, %s4902_s11  ;;  %v5381_v23 = vmul.f32 %v4967_v36, %v5360_v7  ;;  %v5402_v40 = vmul.f32 %v4967_v36, %v5367_v21  ;;  %9084 = vst [vmem:[#allocation22_spill] sm:$0xff] %v5445_v60 }
 0x149   :  { %9082 = vst [vmem:[#allocation20_spill] sm:$0xff] %v5433_v11  ;;  %9083 = vst [vmem:[#allocation21_spill] sm:$0xff] %v5440_v26 }
 0x14a   :  { %9080 = vst [vmem:[#allocation18_spill] sm:$0xff] %v5402_v40  ;;  %v8889_v62 = vrot.slane %v5381_v23, 1  ;;  %v8893_v0 = vrot.slane %v5402_v40, 1  ;;  %v5494_v40 = vmul.f32 %v5027_v63, %v5367_v21  ;;  %v4848_v21 = vld [vmem:[#allocation2 + $0xc8] sm:$0xff]  }
 0x14c   :  { %v812_v31 = vsel %vm749_vm0, %v9086_v22, %v8889_v62  ;;  %v5473_v22 = vmul.f32 %v4996_v51, %v5360_v7  ;;  %v5477_v62 = vmul.f32 %v5027_v63, %v514_v20  ;;  %9089 = vst [vmem:[#allocation26_spill] sm:$0xff] %v5494_v40 }
 0x167   :  { %1903 = vadd.xlane.f32.xlu0 %v1902_v2  ;;  %v5413_v2 = vmul.f32 %v4988_v46, %v5360_v7 }
 0x16b   :  { %1906 = vadd.xlane.f32.xlu0 %v1905_v6  ;;  %v1077_v6 = vsel %vm1066_vm1, %v1074_v59, %v8883_v19  ;;  %v8894_v59 = vrot.slane %v5398_v37, 1 }
 0x16c   :  { %1978 = vadd.xlane.f32.xlu1 %v1977_v4  ;;  %v5426_v4 = vmul.f32 %v4988_v46, %v402_v1  ;;  %v5442_v19 = vadd.f32 %v1077_v6, %v906_v15  ;;  %v5459_v15 = vmul.f32 %v5027_v63, %v402_v1  ;;  %v5462_v6 = vmul.f32 %v4996_v51, %v514_v20 }
 0x16d   :  { %v773_v58 = vsel %vm749_vm0, %v8894_v59, %v8893_v0  ;;  %v8900_v0 = vrot.slane %v5488_v27, 3  ;;  %v9091_v59 = vrot.slane %v5433_v11, 1  ;;  %v9092_v1 = vrot.slane %v5429_v3, 1 }
 0x16e   :  { %9081 = vst [vmem:[#allocation19_spill] sm:$0xff] %v5426_v4  ;;  %v912_v45 = vadd.f32 %v773_v58, %v595_v61  ;;  %v9090_v61 = vrot.slane %v5426_v4, 2  ;;  %v8910_v20 = vrot.slane %v5494_v40, 4  ;;  %v4846_v4 = vld [vmem:[#allocation2 + $0x58] sm:$0xff]   ;;  %v930_v11 = vadd.f32 %v812_v31, %v613_v35 }
 0x16f   :  { %1975 = vadd.xlane.f32.xlu0 %v1974_v32  ;;  %v5423_v32 = vmul.f32 %v5027_v63, %v5336_v44  ;;  %v825_v17 = vsel %vm749_vm0, %v9092_v1, %v9091_v59  ;;  %v9094_v59 = vrot.slane %v5445_v60, 2  ;;  %v9101_v60 = vrot.slane %v5187_v14, 2  ;;  %4759 = vmatmul.mubr.bf16.gmra.mxu0 %v4846_v4 }
 0x170   :  { %v1090_v58 = vsel %vm1066_vm1, %v9090_v61, %v8899_v8  ;;  %v936_v29 = vadd.f32 %v825_v17, %v619_v25  ;;  %v9093_v61 = vrot.slane %v5440_v26, 3  ;;  %v5527_v25 = vmul.f32 %v5027_v63, %v5395_v9 }
 0x171   :  { %v1229_v37 = vadd.f32 %v1090_v58, %v912_v45  ;;  %v1142_v1 = vsel %vm1066_vm1, %v9094_v59, %v8901_v54  ;;  %v5523_v45 = vmul.f32 %v4996_v51, %v5395_v9  ;;  %v9097_v17 = vrot.slane %v5391_v13, 3 }
 0x172   :  { %v1407_v8 = vsel %vm1383_vm2, %v9093_v61, %v8900_v0  ;;  %9096 = vst [vmem:[#allocation28_spill] sm:$0xff] %v5527_v25  ;;  %v9098_v58 = vrot.slane %v5199_v49, 3  ;;  %v4847_v0 = vld [vmem:[#allocation2 + $0xc0] sm:$0xff]   ;;  %v9099_v54 = vrot.slane %v5459_v15, 4  ;;  %v1253_v27 = vadd.f32 %v1142_v1, %v936_v29 }
 0x173   :  { %9095 = vst [vmem:[#allocation27_spill] sm:$0xff] %v5523_v45  ;;  %v1546_v59 = vadd.f32 %v1407_v8, %v1229_v37  ;;  %v9100_v9 = vrot.slane %v5413_v2, 2  ;;  %v8909_v49 = vrot.slane %v5523_v45, 3  ;;  %v1710_v37 = vrot.slane %v5423_v32, 4  ;;  %4786 = vmatprep.mubr.bf16.mxu1 %v4847_v0 }
 0x174   :  { %v1394_v61 = vsel %vm1383_vm2, %v9098_v58, %v9097_v17  ;;  %v1724_v42 = vsel %vm1700_vm3, %v9099_v54, %v8910_v20  ;;  %v8908_v17 = vrot.slane %v5527_v25, 4  ;;  %v1621_v8 = vmul.f32 %v5027_v63, %v5360_v7  ;;  %4787 = vmatmul.mubr.bf16.gmra.mxu1 %v4848_v21 }
 0x175   :  { %v1129_v26 = vsel %vm1066_vm1, %v9101_v60, %v9100_v9  ;;  %v614_v54 = vmul.f32 %v5006_v55, %v5360_v7  ;;  %v5553_v31 = vadd.f32 %v1724_v42, %v1546_v59  ;;  %v1445_v14 = vrot.slane %v5473_v22, 3 }
 0x176   :  { %v9104_v60 = vrot.slane %v5381_v23, 1  ;;  %v9105_v29 = vrot.slane %v5462_v6, 3  ;;  %v9106_v7 = vrot.slane %v5477_v62, 4  ;;  %v1447_v21 = vrot.slane %v5408_v34, 3 }
 0x177   :  { %9102 = vst [vmem:[#allocation29_spill] sm:$0xff] %v5553_v31  ;;  %v1622_v23 = vmul.f32 %v5027_v63, %v5352_v33  ;;  %v1540_v4 = vadd.f32 %v1394_v61, %v5442_v19  ;;  %v1247_v0 = vadd.f32 %v1129_v26, %v930_v11  ;;  %v9108_v58 = vrot.slane %v5203_v47, 4 }
 0x178   :  { %v814_v9 = vsel %vm749_vm0, %v9104_v60, %v9103_v41  ;;  %v1459_v35 = vsel %vm1383_vm2, %v9105_v29, %v8909_v49  ;;  %v1776_v42 = vsel %vm1700_vm3, %v9106_v7, %v8908_v17  ;;  %v9109_v41 = vrot.slane %v5221_v24, 3 }
 0x179   :  { %v1570_v18 = vadd.f32 %v1459_v35, %v1253_v27  ;;  %v931_v22 = vadd.f32 %v814_v9, %v614_v54  ;;  %v1711_v59 = vsel %vm1700_vm3, %v9108_v58, %v1710_v37  ;;  %v1762_v34 = vrot.slane %v1621_v8, 4 }
 0x17a   :  { %v1446_v27 = vsel %vm1383_vm2, %v9109_v41, %v1445_v14  ;;  %v9110_v60 = vrot.slane %v5375_v53, 2  ;;  %v9111_v33 = vrot.slane %v5413_v2, 2  ;;  %v5596_v11 = vadd.f32 %v1711_v59, %v1540_v4 }
 0x17b   :  { %v5579_v1 = vadd.f32 %v1776_v42, %v1570_v18  ;;  %v1564_v26 = vadd.f32 %v1446_v27, %v1247_v0  ;;  %v1764_v61 = vrot.slane %v1622_v23, 4  ;;  %v9112_v54 = vrot.slane %v5226_v50, 4 }
 0x17c   :  { %v1131_v19 = vsel %vm1066_vm1, %v9111_v33, %v9110_v60  ;;  %v1448_v8 = vsel %vm1383_vm2, %v1445_v14, %v1447_v21  ;;  %v383_v50 = vadd.f32 %v5122_v16, %v4959_v30  ;;  %v1911_v35 = vsel %vm1901_vm4, %v5253_v38, 0.0 }
 0x17d   :  { %2148 = vrot.lane.b32.xlu1 %v5253_v38, %s4901_s10  ;;  %9107 = vst [vmem:[#allocation30_spill] sm:$0xff] %v5579_v1  ;;  %v1248_v47 = vadd.f32 %v1131_v19, %v931_v22  ;;  %v1763_v24 = vsel %vm1700_vm3, %v9112_v54, %v1762_v34  ;;  %v1765_v9 = vsel %vm1700_vm3, %v1762_v34, %v1764_v61  ;;  %v1983_v18 = vsel %vm1901_vm4, %v5261_v39, 0.0 }
 0x17e   :  { %v5604_v53 = vadd.f32 %v1763_v24, %v1564_v26  ;;  %v643_v14 = vmul.f32 %v4967_v36, %v383_v50  ;;  %v960_v42 = vmul.f32 %v4988_v46, %v383_v50  ;;  %v590_v21 = vmul.f32 %v5006_v55, %v5336_v44 }
 0x17f   :  { %v1565_v2 = vadd.f32 %v1448_v8, %v1248_v47  ;;  %v1277_v4 = vmul.f32 %v4996_v51, %v383_v50  ;;  %v9113_v16 = vrot.slane %v5345_v10, 1  ;;  %v5631_v22 = vadd.f32 %v5329_v12, %v4959_v30 }
 0x180   :  { %v761_v7 = vrot.slane %v643_v14, 1  ;;  %v1078_v23 = vrot.slane %v960_v42, 2  ;;  %v1594_v59 = vmul.f32 %v5027_v63, %v383_v50  ;;  %v9114_v44 = vrot.slane %v5357_v43, 2 }
 0x181   :  { %2196 = vrot.lane.b32.xlu1 %v5261_v39, %s4901_s10  ;;  %v5609_v29 = vadd.f32 %v1765_v9, %v1565_v2  ;;  %v498_v10 = vadd.f32 %v5323_v57, %v4959_v30  ;;  %v1914_v27 = vsel %vm1901_vm4, %v5596_v11, 0.0  ;;  %v5644_v12 = vmul.f32 %v4967_v36, %v5631_v22 }
 0x182   :  { %v762_v0 = vsel %vm749_vm0, %v9113_v16, %v761_v7  ;;  %v1079_v41 = vsel %vm1066_vm1, %v9114_v44, %v1078_v23  ;;  %v5648_v34 = vadd.f32 %v5331_v52, %v4959_v30  ;;  %v1712_v60 = vrot.slane %v1594_v59, 4 }
 0x183   :  { %v907_v58 = vadd.f32 %v762_v0, %v590_v21  ;;  %v9115_v33 = vrot.slane %v5391_v13, 3  ;;  %v672_v19 = vmul.f32 %v4967_v36, %v498_v10  ;;  %v5657_v47 = vmul.f32 %v4988_v46, %v5631_v22 }
 0x184   :  { %v1986_v61 = vsel %vm1901_vm4, %v5604_v53, 0.0  ;;  %v8918_v54 = vrot.slane %v5644_v12, 1  ;;  %v5664_v24 = vmul.f32 %v4967_v36, %v5648_v34  ;;  %v1713_v8 = vsel %vm1700_vm3, %v1710_v37, %v1712_v60 }
 0x185   :  { %2486 = vrot.lane.b32.xlu0 %v5253_v38, %s4902_s11  ;;  %v386_v38 = vadd.f32 %v5321_v28, %v4959_v30  ;;  %v1224_v43 = vadd.f32 %v1079_v41, %v907_v58  ;;  %v815_v2 = vrot.slane %v672_v19, 1  ;;  %v8917_v14 = vrot.slane %v5657_v47, 2 }
 0x186   :  { %v8916_v7 = vrot.slane %v5664_v24, 1  ;;  %v5680_v32 = vmul.f32 %v4996_v51, %v5631_v22  ;;  %v989_v37 = vmul.f32 %v4988_v46, %v498_v10  ;;  %v5685_v21 = vmul.f32 %v4988_v46, %v5648_v34 }
 0x187   :  { %v644_v28 = vmul.f32 %v4967_v36, %v386_v38  ;;  %v961_v26 = vmul.f32 %v4988_v46, %v386_v38  ;;  %v591_v9 = vmul.f32 %v5006_v55, %v386_v38  ;;  %v1595_v0 = vmul.f32 %v5027_v63, %v386_v38 }
 0x188   :  { %9116 = vst [vmem:[#allocation31_spill] sm:$0xff] %v5680_v32  ;;  %9117 = vst [vmem:[#allocation32_spill] sm:$0xff] %v5685_v21  ;;  %v8915_v58 = vrot.slane %v5680_v32, 3  ;;  %v615_v59 = vmul.f32 %v5006_v55, %v498_v10  ;;  %v817_v44 = vsel %vm749_vm0, %v815_v2, %v8916_v7  ;;  %v1132_v41 = vrot.slane %v989_v37, 2  ;;  %v5732_v37 = vpop.permute.xlu0 %2194 }
 0x189   :  { %2534 = vrot.lane.b32.xlu0 %v5261_v39, %s4902_s11  ;;  %v1395_v39 = vrot.slane %v1277_v4, 3  ;;  %v763_v52 = vrot.slane %v644_v28, 1  ;;  %v1080_v50 = vrot.slane %v961_v26, 2  ;;  %v1306_v28 = vmul.f32 %v4996_v51, %v498_v10  ;;  %9121 = vst [vmem:[#allocation36_spill] sm:$0xff] %v5732_v37 }
 0x18a   :  { %v1714_v60 = vrot.slane %v1595_v0, 4  ;;  %v932_v19 = vadd.f32 %v817_v44, %v615_v59  ;;  %v1623_v26 = vmul.f32 %v5027_v63, %v498_v10  ;;  %v5748_v59 = vpop.permute.xlu1 %2146 }
 0x18b   :  { %v1396_v57 = vsel %vm1383_vm2, %v9115_v33, %v1395_v39  ;;  %v1082_v4 = vsel %vm1066_vm1, %v1080_v50, %v8917_v14  ;;  %v5696_v39 = vmul.f32 %v5027_v63, %v5631_v22  ;;  %9123 = vst [vmem:[#allocation38_spill] sm:$0xff] %v5748_v59 }
 0x18c   :  { %v1541_v13 = vadd.f32 %v1396_v57, %v1224_v43 }
 0x18d   :  { %2150 = vrot.lane.b32.xlu0 %v5596_v11, %s4901_s10  ;;  %9118 = vst [vmem:[#allocation33_spill] sm:$0xff] %v5696_v39  ;;  %v8913_v57 = vrot.slane %v5696_v39, 4 }
 0x18e   :  { %v5673_v42 = vadd.f32 %v1713_v8, %v1541_v13  ;;  %v5721_v8 = vmul.f32 %v5027_v63, %v5648_v34 }
 0x18f   :  { %v1716_v10 = vsel %vm1700_vm3, %v1714_v60, %v8913_v57  ;;  %v9137_v57 = vld [vmem:[#allocation17_spill] sm:$0xff] }
 0x190   :  { %9120 = vst [vmem:[#allocation35_spill] sm:$0xff] %v5721_v8 }
 0x191   :  { %2198 = vrot.lane.b32.xlu0 %v5604_v53, %s4901_s10 }
 0x195   :  { %2538 = vrot.lane.b32.xlu0 %v5609_v29, %s4902_s11 }
 0x1a5   :  { %1912 = vadd.xlane.f32.xlu1 %v1911_v35  ;;  %v1278_v35 = vmul.f32 %v4996_v51, %v386_v38  ;;  %v5706_v38 = vmul.f32 %v4996_v51, %v5648_v34 }
 0x1a7   :  { %v1397_v16 = vrot.slane %v1278_v35, 3  ;;  %9119 = vst [vmem:[#allocation34_spill] sm:$0xff] %v5706_v38  ;;  %v8912_v13 = vrot.slane %v5706_v38, 3  ;;  %v1766_v35 = vrot.slane %v1623_v26, 4  ;;  %v5766_v26 = vadd.f32 %v5327_v5, %v4959_v30 }
 0x1a9   :  { %1984 = vadd.xlane.f32.xlu1 %v1983_v18  ;;  %v765_v18 = vsel %vm749_vm0, %v763_v52, %v8918_v54  ;;  %v1399_v33 = vsel %vm1383_vm2, %v1397_v16, %v8915_v58  ;;  %v1449_v52 = vrot.slane %v1306_v28, 3  ;;  %v5745_v16 = vpop.permute.xlu0 %2484  ;;  %v5753_v28 = vpop.permute.xlu1 %2532  ;;  %v5786_v5 = vmul.f32 %v4967_v36, %v5766_v26 }
 0x1aa   :  { %v908_v23 = vadd.f32 %v765_v18, %v591_v9  ;;  %v8911_v18 = vrot.slane %v5721_v8, 4  ;;  %9122 = vst [vmem:[#allocation37_spill] sm:$0xff] %v5745_v16  ;;  %9125 = vst [vmem:[#allocation40_spill] sm:$0xff] %v5753_v28  ;;  %v5816_v28 = vmul.f32 %v4988_v46, %v5766_v26 }
 0x1ab   :  { %v1451_v50 = vsel %vm1383_vm2, %v1449_v52, %v8912_v13 }
 0x1ac   :  { %v1225_v43 = vadd.f32 %v1082_v4, %v908_v23  ;;  %v1768_v4 = vsel %vm1700_vm3, %v1766_v35, %v8911_v18 }
 0x1ae   :  { %v1542_v2 = vadd.f32 %v1399_v33, %v1225_v43 }
 0x1af   :  { %v5750_v44 = vpop.xlane.xlu0 %1981 }
 0x1b0   :  { %v5736_v23 = vadd.f32 %v1716_v10, %v1542_v2  ;;  %9124 = vst [vmem:[#allocation39_spill] sm:$0xff] %v5750_v44  ;;  %v9131_v2 = vlaneseq  ;;  %v4781_v10 = vpop.f32.mrf.mxu1 }
 0x1b2   :  { %v5798_v20 = vpop.f32.mrf.mxu1 }
 0x1b3   :  { %v5755_v43 = vpop.permute.xlu0 %2142 }
 0x1b4   :  { %1915 = vadd.xlane.f32.xlu0 %v1914_v27  ;;  %v8914_v27 = vrot.slane %v5685_v21, 2  ;;  %9126 = vst [vmem:[#allocation41_spill] sm:$0xff] %v5755_v43  ;;  %v5761_v33 = vpop.xlane.xlu1 %1909 }
 0x1b5   :  { %9128 = vst [vmem:[#allocation43_spill] sm:$0xff] %v5761_v33 }
 0x1b8   :  { %1987 = vadd.xlane.f32.xlu0 %v1986_v61  ;;  %v1134_v61 = vsel %vm1066_vm1, %v1132_v41, %v8914_v27  ;;  %v4753_v41 = vpop.f32.mrf.mxu0  ;;  %v9138_v27 = vrot.slane %v9137_v57, 1  ;;  %v9140_v57 = vld [vmem:[#allocation8_spill] sm:$0xff] }
 0x1b9   :  { %v1249_v9 = vadd.f32 %v1134_v61, %v932_v19  ;;  %v5768_v61 = vpop.permute.xlu0 %2190  ;;  %v5808_v14 = vadd.f32 %v4753_v41, %v4959_v30  ;;  %v9145_v41 = vld [vmem:[#allocation19_spill] sm:$0xff] }
 0x1ba   :  { %2152 = vrot.lane.b32.xlu1 %v5673_v42, %s4901_s10  ;;  %v5759_v60 = vpop.f32.mrf.mxu0  ;;  %9129 = vst [vmem:[#allocation44_spill] sm:$0xff] %v5768_v61 }
 0x1bb   :  { %9127 = vst [vmem:[#allocation42_spill] sm:$0xff] %v5759_v60  ;;  %v5834_v7 = vpop.f32.mrf.mxu1  ;;  %v5854_v25 = vmul.f32 %v4967_v36, %v5808_v14  ;;  %v9156_v60 = vld [vmem:[#allocation21_spill] sm:$0xff]  ;;  %v5959_v39 = vmul.f32 %v4996_v51, %v5808_v14 }
 0x1bc   :  { %v5770_v52 = vpop.f32.mrf.mxu0  ;;  %9144 = vst [vmem:[#allocation52_spill] sm:$0xff] %v5834_v7  ;;  %v9157_v8 = vrot.slane %v9156_v60, 3  ;;  %v9161_v60 = vmax.f32 %v5761_v33, 0.0 }
 0x1bd   :  { %9130 = vst [vmem:[#allocation45_spill] sm:$0xff] %v5770_v52  ;;  %v5800_v18 = vpop.permute.xlu0 %2480  ;;  %9148 = vst [vmem:[#allocation19_spill] sm:$0xff] %v5854_v25 }
 0x1be   :  { %2200 = vrot.lane.b32.xlu1 %v5609_v29, %s4901_s10  ;;  %9136 = vst [vmem:[#allocation48_spill] sm:$0xff] %v5800_v18  ;;  %v3743_v38 = vmul.f32 0.0, %v9161_v60  ;;  %v9164_v60 = vrot.slane %v5854_v25, 1 }
 0x1c2   :  { %2488 = vrot.lane.b32.xlu1 %v5596_v11, %s4902_s11  ;;  %v1566_v11 = vadd.f32 %v1451_v50, %v1249_v9  ;;  %v5773_v9 = vand.u32 127, %v9131_v2 }
 0x1c4   :  { %v1883_v0 = vadd.f32 %v1768_v4, %v1566_v11  ;;  %9132 = vst [vmem:[#allocation46_spill] sm:$0xff] %v5773_v9  ;;  %v5782_v11 = vpop.permute.xlu1 %2144  ;;  %v422_v4 = vpop.f32.mrf.mxu0  ;;  %v2879_v17 = vadd.s32 4294967280, %v5773_v9  ;;  %v2893_v2 = vadd.s32 4294967264, %v5773_v9 }
 0x1c5   :  { %9133 = vst [vmem:[#allocation47_spill] sm:$0xff] %v5782_v11  ;;  %v5811_v54 = vadd.f32 %v422_v4, %v4959_v30  ;;  %v9146_v11 = vrot.slane %v9145_v41, 2  ;;  %v618_v41 = vmul.f32 %v5006_v55, %v5766_v26 }
 0x1c6   :  { %2490 = vrot.lane.b32.xlu1 %v5673_v42, %s4902_s11  ;;  %v5822_v16 = vsub.s32 %v2879_v17, %v9140_v57  ;;  %v1917_v17 = vsel %vm1901_vm4, %v5673_v42, 0.0 }
 0x1c7   :  { %9139 = vst [vmem:[#allocation17_spill] sm:$0xff] %v5811_v54  ;;  %v5858_v42 = vmul.f32 %v4967_v36, %v5811_v54  ;;  %v6004_v21 = vmul.f32 %v5027_v63, %v5811_v54 }
 0x1c8   :  { %9141 = vst [vmem:[#allocation49_spill] sm:$0xff] %v5822_v16 }
 0x1c9   :  { %9149 = vst [vmem:[#allocation53_spill] sm:$0xff] %v5858_v42  ;;  %9175 = vst [vmem:[#allocation67_spill] sm:$0xff] %v6004_v21 }
 0x1ca   :  { %2536 = vrot.lane.b32.xlu1 %v5604_v53, %s4902_s11  ;;  %v399_v53 = vadd.f32 %v5325_v48, %v4959_v30  ;;  %v5777_v48 = vadd.f32 %v5333_v56, %v4959_v30 }
 0x1cc   :  { %v647_v19 = vmul.f32 %v4967_v36, %v399_v53  ;;  %v5780_v35 = vmul.f32 %v4988_v46, %v399_v53  ;;  %v5792_v56 = vmul.f32 %v4967_v36, %v5777_v48  ;;  %v594_v13 = vmul.f32 %v5006_v55, %v399_v53 }
 0x1cd   :  { %v5819_v37 = vmul.f32 %v4996_v51, %v399_v53  ;;  %v5838_v61 = vmul.f32 %v4988_v46, %v5777_v48  ;;  %v5875_v45 = vmul.f32 %v5006_v55, %v5777_v48 }
 0x1ce   :  { %2154 = vrot.lane.b32.xlu0 %v5736_v23, %s4901_s10  ;;  %v768_v50 = vrot.slane %v647_v19, 1  ;;  %v9134_v19 = vld [vmem:[#allocation12_spill] sm:$0xff]  ;;  %v9147_v43 = vrot.slane %v5780_v35, 2  ;;  %v9151_v40 = vrot.slane %v5792_v56, 1 }
 0x1cf   :  { %v5796_v49 = vadd.f32 %v9134_v19, %v4959_v30  ;;  %9135 = vst [vmem:[#allocation12_spill] sm:$0xff] %v5798_v20  ;;  %v5832_v19 = vpop.permute.xlu1 %2192  ;;  %v534_v20 = vpop.f32.mrf.mxu1 }
 0x1d0   :  { %v771_v58 = vsel %vm749_vm0, %v768_v50, %v9138_v27  ;;  %v5825_v27 = vsub.s32 %v2893_v2, %v9140_v57  ;;  %9143 = vst [vmem:[#allocation51_spill] sm:$0xff] %v5832_v19  ;;  %v1989_v2 = vsel %vm1901_vm4, %v5609_v29, 0.0  ;;  %v1088_v59 = vsel %vm1066_vm1, %v9147_v43, %v9146_v11 }
 0x1d1   :  { %v5830_v4 = vmul.f32 %v4967_v36, %v5796_v49  ;;  %v911_v18 = vadd.f32 %v771_v58, %v594_v13  ;;  %v5850_v19 = vmul.f32 %v5027_v63, %v399_v53  ;;  %v5862_v29 = vmul.f32 %v4988_v46, %v5796_v49  ;;  %v5864_v58 = vpop.permute.xlu0 %2530 }
 0x1d2   :  { %2202 = vrot.lane.b32.xlu0 %v1883_v0, %s4901_s10  ;;  %9142 = vst [vmem:[#allocation50_spill] sm:$0xff] %v5825_v27  ;;  %9150 = vst [vmem:[#allocation54_spill] sm:$0xff] %v5864_v58  ;;  %v1920_v13 = vsel %vm1901_vm4, %v5736_v23, 0.0  ;;  %v1992_v43 = vsel %vm1901_vm4, %v1883_v0, 0.0  ;;  %v5880_v58 = vsel %vm749_vm0, %v9151_v40, %v768_v50  ;;  %v9152_v53 = vrot.slane %v5429_v3, 1 }
 0x1d3   :  { %v9153_v11 = vrot.slane %v5786_v5, 1  ;;  %v5891_v1 = vpop.permute.xlu1 %2482  ;;  %v5896_v50 = vadd.f32 %v4781_v10, %v4959_v30  ;;  %v2886_v3 = vadd.s32 4294967272, %v5773_v9  ;;  %v5911_v31 = vadd.f32 %v534_v20, %v4959_v30 }
 0x1d4   :  { %9154 = vst [vmem:[#allocation55_spill] sm:$0xff] %v5891_v1  ;;  %v5919_v1 = vmul.f32 %v4988_v46, %v5808_v14  ;;  %v5929_v20 = vmul.f32 %v5027_v63, %v5766_v26 }
 0x1d5   :  { %v823_v7 = vsel %vm749_vm0, %v9153_v11, %v9152_v53  ;;  %v9158_v53 = vrot.slane %v5819_v37, 3  ;;  %9159 = vst [vmem:[#allocation21_spill] sm:$0xff] %v5911_v31  ;;  %v5949_v10 = vsub.s32 %v2886_v3, %v9140_v57  ;;  %v5955_v30 = vmul.f32 %v4967_v36, %v5911_v31 }
 0x1d6   :  { %2540 = vrot.lane.b32.xlu0 %v1883_v0, %s4902_s11  ;;  %v5883_v0 = vadd.f32 %v1088_v59, %v911_v18  ;;  %v5915_v18 = vadd.f32 %v823_v7, %v618_v41  ;;  %9160 = vst [vmem:[#allocation57_spill] sm:$0xff] %v5919_v1  ;;  %v598_v7 = vmul.f32 %v5006_v55, %v5808_v14 }
 0x1d7   :  { %v5907_v11 = vsel %vm1383_vm2, %v9158_v53, %v9157_v8  ;;  %v5925_v8 = vmul.f32 %v4996_v51, %v5766_v26  ;;  %v5935_v41 = vmul.f32 %v4967_v36, %v5896_v50  ;;  %v5939_v53 = vmul.f32 %v4988_v46, %v5811_v54  ;;  %9165 = vst [vmem:[#allocation59_spill] sm:$0xff] %v5949_v10 }
 0x1d8   :  { %9167 = vst [vmem:[#allocation61_spill] sm:$0xff] %v5955_v30  ;;  %v5974_v36 = vmul.f32 %v5027_v63, %v5808_v14  ;;  %v5981_v3 = vmul.f32 %v4988_v46, %v5911_v31 }
 0x1d9   :  { %9162 = vst [vmem:[#allocation58_spill] sm:$0xff] %v5939_v53 }
 0x1da   :  { %9170 = vst [vmem:[#allocation63_spill] sm:$0xff] %v5981_v3 }
 0x1ee   :  { %1918 = vadd.xlane.f32.xlu1 %v1917_v17  ;;  %v9163_v17 = vrot.slane %v5858_v42, 1  ;;  %v9168_v42 = vmax.f32 %v5750_v44, 0.0 }
 0x1f0   :  { %v5899_v59 = vpop.xlane.xlu0 %1903  ;;  %v780_v52 = vsel %vm749_vm0, %v9164_v60, %v9163_v17  ;;  %v3767_v25 = vmul.f32 0.0, %v9168_v42  ;;  %v5963_v17 = vpop.permute.xlu1 %2528 }
 0x1f1   :  { %9155 = vst [vmem:[#allocation56_spill] sm:$0xff] %v5899_v59  ;;  %v8932_v40 = vmax.f32 %v5899_v59, 0.0  ;;  %9169 = vst [vmem:[#allocation62_spill] sm:$0xff] %v5963_v17  ;;  %v5970_v59 = vmul.f32 %v4988_v46, %v5896_v50  ;;  %v915_v42 = vadd.f32 %v780_v52, %v598_v7  ;;  %v5991_v52 = vmul.f32 %v4996_v51, %v5811_v54 }
 0x1f2   :  { %1990 = vadd.xlane.f32.xlu1 %v1989_v2  ;;  %v4513_v14 = vrot.slane %v3767_v25, %v5825_v27  ;;  %v622_v25 = vmul.f32 %v5006_v55, %v5896_v50 }
 0x1f3   :  { %v3741_v26 = vmul.f32 0.0, %v8932_v40  ;;  %v4396_v40 = vrot.slane %v3743_v38, %v5825_v27  ;;  %v8944_v38 = vrot.slane %v5939_v53, 2  ;;  %9172 = vst [vmem:[#allocation65_spill] sm:$0xff] %v5991_v52  ;;  %v9187_v27 = vrot.slane %v5816_v28, 2 }
 0x1f4   :  { %v5951_v33 = vpop.xlane.xlu0 %1906 }
 0x1f5   :  { %9166 = vst [vmem:[#allocation60_spill] sm:$0xff] %v5951_v33  ;;  %v8938_v60 = vmax.f32 %v5951_v33, 0.0  ;;  %1921 = vadd.xlane.f32.xlu0 %v1920_v13  ;;  %v4387_v2 = vrot.slane %v3741_v26, %v5822_v16  ;;  %v9174_v26 = vrot.slane %v5919_v1, 2 }
 0x1f7   :  { %v3742_v44 = vmul.f32 0.0, %v8938_v60  ;;  %v5994_v60 = vpop.xlane.xlu1 %1978  ;;  %v1097_v33 = vsel %vm1066_vm1, %v9174_v26, %v8944_v38  ;;  %v6017_v26 = vmul.f32 %v5027_v63, %v5896_v50  ;;  %v8949_v38 = vrot.slane %v5991_v52, 3 }
 0x1f8   :  { %v5985_v17 = vpop.xlane.xlu0 %1975  ;;  %9173 = vst [vmem:[#allocation66_spill] sm:$0xff] %v5994_v60  ;;  %v1232_v13 = vadd.f32 %v1097_v33, %v915_v42  ;;  %v9177_v46 = vmax.f32 %v5994_v60, 0.0  ;;  %v9179_v33 = vrot.slane %v5955_v30, 1 }
 0x1f9   :  { %9171 = vst [vmem:[#allocation64_spill] sm:$0xff] %v5985_v17  ;;  %v4391_v7 = vrot.slane %v3742_v44, %v5949_v10  ;;  %1993 = vadd.xlane.f32.xlu0 %v1992_v43  ;;  %v6010_v44 = vmul.f32 %v4996_v51, %v5896_v50  ;;  %v9176_v53 = vmax.f32 %v5985_v17, 0.0 }
 0x1fa   :  { %v3766_v54 = vmul.f32 0.0, %v9177_v46 }
 0x1fb   :  { %v4392_v43 = vsel %vm2891_vm5, %v4391_v7, %v4387_v2  ;;  %v3765_v1 = vmul.f32 0.0, %v9176_v53  ;;  %v9178_v53 = vrot.slane %v5959_v39, 3  ;;  %v8952_v7 = vrot.slane %v6004_v21, 4 }
 0x1fc   :  { %v6024_v32 = vsel %vm2898_vm6, %v4396_v40, %v4392_v43  ;;  %v4508_v46 = vrot.slane %v3766_v54, %v5949_v10  ;;  %v8953_v54 = vrot.slane %v5981_v3, 2 }
 0x1fd   :  { %v4504_v42 = vrot.slane %v3765_v1, %v5822_v16  ;;  %v1414_v2 = vsel %vm1383_vm2, %v9178_v53, %v8949_v38  ;;  %v9180_v1 = vrot.slane %v5935_v41, 1  ;;  %v9181_v53 = vrot.slane %v5974_v36, 4 }
 0x1fe   :  { %v1549_v43 = vadd.f32 %v1414_v2, %v1232_v13  ;;  %v6055_v2 = vmul.f32 %v4996_v51, %v5911_v31 }
 0x1ff   :  { %v832_v60 = vsel %vm749_vm0, %v9180_v1, %v9179_v33  ;;  %v1731_v38 = vsel %vm1700_vm3, %v9181_v53, %v8952_v7  ;;  %v4509_v40 = vsel %vm2891_vm5, %v4508_v46, %v4504_v42  ;;  %v6059_v33 = vmul.f32 %v5027_v63, %v5911_v31  ;;  %v9185_v1 = vld [vmem:[#allocation22_spill] sm:$0xff] }
 0x200   :  { %v939_v50 = vadd.f32 %v832_v60, %v622_v25  ;;  %v6051_v13 = vadd.f32 %v1731_v38, %v1549_v43  ;;  %9183 = vst [vmem:[#allocation69_spill] sm:$0xff] %v6055_v2  ;;  %v9186_v17 = vrot.slane %v9185_v1, 2  ;;  %v1454_v25 = vrot.slane %v5925_v8, 3 }
 0x201   :  { %9184 = vst [vmem:[#allocation70_spill] sm:$0xff] %v6059_v33  ;;  %v6068_v42 = vsel %vm2898_vm6, %v4513_v14, %v4509_v40  ;;  %v9188_v38 = vrot.slane %v5970_v59, 2  ;;  %v6077_v43 = vmul.f32 %v4996_v51, %v5777_v48  ;;  %v8954_v1 = vrot.slane %v6055_v2, 3 }
 0x202   :  { %9182 = vst [vmem:[#allocation68_spill] sm:$0xff] %v6051_v13  ;;  %v1140_v60 = vsel %vm1066_vm1, %v9187_v27, %v9186_v17  ;;  %v1545_v8 = vadd.f32 %v5907_v11, %v5883_v0  ;;  %v9189_v17 = vrot.slane %v5459_v15, 4  ;;  %v9190_v14 = vrot.slane %v5850_v19, 4 }
 0x203   :  { %v1149_v46 = vsel %vm1066_vm1, %v9188_v38, %v8953_v54  ;;  %v910_v38 = vadd.f32 %v5880_v58, %v5875_v45  ;;  %v9191_v7 = vrot.slane %v5780_v35, 2  ;;  %v1252_v54 = vadd.f32 %v1140_v60, %v5915_v18  ;;  %2492 = vrot.lane.b32.xlu1 %v5736_v23, %s4902_s11 }
 0x204   :  { %v1256_v53 = vadd.f32 %v1149_v46, %v939_v50  ;;  %v1722_v40 = vsel %vm1700_vm3, %v9190_v14, %v9189_v17  ;;  %v9192_v50 = vrot.slane %v5838_v61, 2  ;;  %v1771_v27 = vrot.slane %v5929_v20, 4 }
 0x205   :  { %v9193_v15 = vrot.slane %v6010_v44, 3  ;;  %v9194_v11 = vrot.slane %v6059_v33, 4  ;;  %v9195_v45 = vrot.slane %v6017_v26, 4  ;;  %v9196_v58 = vrot.slane %v5462_v6, 3 }
 0x206   :  { %v1086_v46 = vsel %vm1066_vm1, %v9192_v50, %v9191_v7  ;;  %v6112_v18 = vmul.f32 %v5027_v63, %v5777_v48  ;;  %v617_v20 = vmul.f32 %v5006_v55, %v5796_v49  ;;  %v9197_v14 = vrot.slane %v5786_v5, 1 }
 0x207   :  { %v1466_v0 = vsel %vm1383_vm2, %v9193_v15, %v8954_v1  ;;  %v1783_v35 = vsel %vm1700_vm3, %v9195_v45, %v9194_v11  ;;  %v1457_v7 = vsel %vm1383_vm2, %v1454_v25, %v9196_v58  ;;  %v9198_v50 = vrot.slane %v5830_v4, 1  ;;  %v4849_v45 = vld [vmem:[#allocation2 + $0x60] sm:$0xff]   ;;  %v4850_v58 = vld [vmem:[#allocation2 + $0x68] sm:$0xff]  }
 0x208   :  { %v1573_v60 = vadd.f32 %v1466_v0, %v1256_v53  ;;  %v6125_v11 = vmul.f32 %v4996_v51, %v5796_v49  ;;  %v1862_v53 = vadd.f32 %v1722_v40, %v1545_v8  ;;  %v1227_v0 = vadd.f32 %v1086_v46, %v910_v38  ;;  %4762 = vmatprep.mubr.bf16.mxu0 %v4849_v45 }
 0x209   :  { %v821_v15 = vsel %vm749_vm0, %v9198_v50, %v9197_v14  ;;  %v1569_v5 = vadd.f32 %v1457_v7, %v1252_v54  ;;  %v9200_v1 = vrot.slane %v5477_v62, 4  ;;  %v1717_v50 = vrot.slane %v6112_v18, 4  ;;  %4763 = vmatmul.mubr.bf16.gmra.mxu0 %v4850_v58  ;;  %v4851_v7 = vld [vmem:[#allocation2 + $0xd0] sm:$0xff]  }
 0x20a   :  { %v6129_v48 = vadd.f32 %v1783_v35, %v1573_v60  ;;  %v934_v6 = vadd.f32 %v821_v15, %v617_v20  ;;  %v9201_v17 = vrot.slane %v5819_v37, 3  ;;  %v9202_v33 = vrot.slane %v6077_v43, 3  ;;  %2160 = vrot.lane.b32.xlu1 %v1862_v53, %s4901_s10  ;;  %v4852_v20 = vld [vmem:[#allocation2 + $0xd8] sm:$0xff]   ;;  %4790 = vmatprep.mubr.bf16.mxu1 %v4851_v7  ;;  %v6174_v15 = vpop.permute.xlu0 %2486 }
 0x20b   :  { %v1774_v14 = vsel %vm1700_vm3, %v1771_v27, %v9200_v1  ;;  %v9203_v35 = vrot.slane %v5816_v28, 2  ;;  %v9204_v8 = vrot.slane %v5862_v29, 2  ;;  %v1452_v54 = vrot.slane %v6125_v11, 3  ;;  %4791 = vmatmul.mubr.bf16.gmra.mxu1 %v4852_v20  ;;  %9206 = vst [vmem:[#allocation71_spill] sm:$0xff] %v6174_v15  ;;  %v4757_v11 = vpop.f32.mrf.mxu0 }
 0x20c   :  { %9199 = vst [vmem:[#allocation22_spill] sm:$0xff] %v6129_v48  ;;  %v1403_v23 = vsel %vm1383_vm2, %v9202_v33, %v9201_v17  ;;  %v6148_v62 = vmul.f32 %v5027_v63, %v5796_v49  ;;  %v1886_v37 = vadd.f32 %v1774_v14, %v1569_v5  ;;  %v9205_v33 = vrot.slane %v5850_v19, 4 }
 0x20d   :  { %v1138_v40 = vsel %vm1066_vm1, %v9204_v8, %v9203_v35  ;;  %v1544_v1 = vadd.f32 %v1403_v23, %v1227_v0  ;;  %v1455_v46 = vsel %vm1383_vm2, %v1452_v54, %v1454_v25  ;;  %v6178_v0 = vpop.permute.xlu1 %2148  ;;  %v2900_v58 = vadd.s32 4294967256, %v5773_v9 }
 0x20e   :  { %v1251_v38 = vadd.f32 %v1138_v40, %v934_v6  ;;  %v1720_v28 = vsel %vm1700_vm3, %v1717_v50, %v9205_v33  ;;  %v1769_v49 = vrot.slane %v6148_v62, 4  ;;  %2208 = vrot.lane.b32.xlu1 %v1886_v37, %s4901_s10  ;;  %v6176_v6 = vpop.permute.xlu0 %2534  ;;  %9208 = vst [vmem:[#allocation73_spill] sm:$0xff] %v6178_v0  ;;  %v9238_v62 = vld [vmem:[#allocation30_spill] sm:$0xff] }
 0x20f   :  { %2546 = vrot.lane.b32.xlu0 %v1886_v37, %s4902_s11  ;;  %v6162_v60 = vadd.f32 %v1720_v28, %v1544_v1  ;;  %9207 = vst [vmem:[#allocation72_spill] sm:$0xff] %v6176_v6  ;;  %v6190_v23 = vsub.s32 %v2900_v58, %v9140_v57  ;;  %v592_v58 = vmul.f32 %v5006_v55, %v5631_v22 }
 0x210   :  { %v1568_v17 = vadd.f32 %v1455_v46, %v1251_v38  ;;  %v1772_v19 = vsel %vm1700_vm3, %v1769_v49, %v1771_v27  ;;  %v1929_v38 = vsel %vm1901_vm4, %v1862_v53, 0.0 }
 0x211   :  { %v6182_v27 = vpop.permute.xlu1 %2196  ;;  %9213 = vst [vmem:[#allocation78_spill] sm:$0xff] %v6190_v23  ;;  %v1926_v40 = vsel %vm1901_vm4, %v6162_v60, 0.0 }
 0x212   :  { %2498 = vrot.lane.b32.xlu1 %v1862_v53, %s4902_s11  ;;  %v6170_v25 = vadd.f32 %v1772_v19, %v1568_v17  ;;  %v6180_v45 = vpop.permute.xlu0 %2150  ;;  %9210 = vst [vmem:[#allocation75_spill] sm:$0xff] %v6182_v27  ;;  %v2001_v19 = vsel %vm1901_vm4, %v1886_v37, 0.0  ;;  %v3789_v53 = vadd.s32 4294967248, %v5773_v9 }
 0x213   :  { %2158 = vrot.lane.b32.xlu0 %v6162_v60, %s4901_s10  ;;  %9209 = vst [vmem:[#allocation74_spill] sm:$0xff] %v6180_v45 }
 0x214   :  { %v1998_v17 = vsel %vm1901_vm4, %v6170_v25, 0.0  ;;  %v6225_v37 = vsub.s32 %v3789_v53, %v9140_v57 }
 0x216   :  { %v6187_v14 = vpop.permute.xlu0 %2198  ;;  %9219 = vst [vmem:[#allocation82_spill] sm:$0xff] %v6225_v37 }
 0x217   :  { %2206 = vrot.lane.b32.xlu0 %v6170_v25, %s4901_s10  ;;  %9212 = vst [vmem:[#allocation77_spill] sm:$0xff] %v6187_v14 }
 0x21a   :  { %v6202_v46 = vpop.permute.xlu0 %2538 }
 0x21b   :  { %9215 = vst [vmem:[#allocation80_spill] sm:$0xff] %v6202_v46 }
 0x22e   :  { %v6185_v5 = vpop.xlane.xlu1 %1912 }
 0x22f   :  { %9211 = vst [vmem:[#allocation76_spill] sm:$0xff] %v6185_v5  ;;  %v8958_v35 = vmax.f32 %v6185_v5, 0.0 }
 0x231   :  { %v3744_v8 = vmul.f32 0.0, %v8958_v35 }
 0x232   :  { %v6197_v1 = vpop.xlane.xlu1 %1984 }
 0x233   :  { %9214 = vst [vmem:[#allocation79_spill] sm:$0xff] %v6197_v1  ;;  %v4401_v33 = vrot.slane %v3744_v8, %v6190_v23  ;;  %v8956_v28 = vmax.f32 %v6197_v1, 0.0 }
 0x235   :  { %v4402_v7 = vsel %vm2905_vm7, %v4401_v33, %v6024_v32  ;;  %v3768_v20 = vmul.f32 0.0, %v8956_v28  ;;  %v9217_v32 = vrot.slane %v5644_v12, 1  ;;  %v9221_v12 = vrot.slane %v5657_v47, 2 }
 0x236   :  { %1927 = vadd.xlane.f32.xlu0 %v1926_v40  ;;  %1930 = vadd.xlane.f32.xlu1 %v1929_v38  ;;  %v9216_v40 = vrot.slane %v5792_v56, 1  ;;  %v9220_v56 = vrot.slane %v5838_v61, 2 }
 0x237   :  { %v4518_v8 = vrot.slane %v3768_v20, %v6190_v23  ;;  %v616_v20 = vmul.f32 %v5006_v55, %v5648_v34 }
 0x238   :  { %v767_v38 = vsel %vm749_vm0, %v9217_v32, %v9216_v40  ;;  %v9222_v40 = vrot.slane %v5830_v4, 1 }
 0x239   :  { %v4519_v33 = vsel %vm2905_vm7, %v4518_v8, %v6068_v42  ;;  %v909_v22 = vadd.f32 %v767_v38, %v592_v58  ;;  %v9223_v42 = vrot.slane %v5664_v24, 1  ;;  %v9225_v38 = vrot.slane %v6077_v43, 3 }
 0x23a   :  { %1999 = vadd.xlane.f32.xlu0 %v1998_v17  ;;  %2002 = vadd.xlane.f32.xlu1 %v2001_v19  ;;  %v1084_v19 = vsel %vm1066_vm1, %v9221_v12, %v9220_v56  ;;  %v9226_v56 = vld [vmem:[#allocation31_spill] sm:$0xff]  ;;  %v9228_v12 = vrot.slane %v5862_v29, 2 }
 0x23b   :  { %v819_v8 = vsel %vm749_vm0, %v9223_v42, %v9222_v40  ;;  %v1226_v32 = vadd.f32 %v1084_v19, %v909_v22  ;;  %v9227_v4 = vrot.slane %v9226_v56, 3  ;;  %v9229_v40 = vld [vmem:[#allocation32_spill] sm:$0xff]  ;;  %v9231_v19 = vld [vmem:[#allocation33_spill] sm:$0xff] }
 0x23c   :  { %v933_v47 = vadd.f32 %v819_v8, %v616_v20  ;;  %v9230_v42 = vrot.slane %v9229_v40, 2  ;;  %v9232_v8 = vrot.slane %v9231_v19, 4  ;;  %v9240_v40 = vld [vmem:[#allocation9_spill] sm:$0xff] }
 0x23d   :  { %v6222_v28 = vpop.xlane.xlu0 %1915  ;;  %v1401_v24 = vsel %vm1383_vm2, %v9227_v4, %v9225_v38  ;;  %v9233_v38 = vld [vmem:[#allocation34_spill] sm:$0xff] }
 0x23e   :  { %9218 = vst [vmem:[#allocation81_spill] sm:$0xff] %v6222_v28  ;;  %v8957_v17 = vmax.f32 %v6222_v28, 0.0  ;;  %v1543_v20 = vadd.f32 %v1401_v24, %v1226_v32  ;;  %v1718_v29 = vsel %vm1700_vm3, %v9232_v8, %v1717_v50  ;;  %v9234_v56 = vrot.slane %v9233_v38, 3 }
 0x23f   :  { %v6313_v8 = vadd.f32 %v4757_v11, %v9240_v40  ;;  %v9247_v11 = vld [vmem:[#allocation13_spill] sm:$0xff] }
 0x240   :  { %v3745_v53 = vmul.f32 0.0, %v8957_v17  ;;  %v1136_v17 = vsel %vm1066_vm1, %v9230_v42, %v9228_v12  ;;  %v6275_v4 = vadd.f32 %v1718_v29, %v1543_v20  ;;  %v9241_v42 = vld [vmem:[#allocation45_spill] sm:$0xff]  ;;  %v9244_v29 = vld [vmem:[#allocation10_spill] sm:$0xff] }
 0x241   :  { %v6242_v58 = vpop.xlane.xlu0 %1987  ;;  %v1250_v43 = vadd.f32 %v1136_v17, %v933_v47  ;;  %v9235_v17 = vld [vmem:[#allocation35_spill] sm:$0xff]  ;;  %v4785_v47 = vpop.f32.mrf.mxu1  ;;  %v6432_v30 = vmul.f32 %v4996_v51, %v6313_v8  ;;  %v6462_v3 = vmul.f32 %v5027_v63, %v6313_v8 }
 0x242   :  { %9224 = vst [vmem:[#allocation83_spill] sm:$0xff] %v6242_v58  ;;  %v4406_v34 = vrot.slane %v3745_v53, %v6225_v37  ;;  %v8959_v61 = vmax.f32 %v6242_v58, 0.0  ;;  %v9236_v18 = vrot.slane %v9235_v17, 4  ;;  %v6326_v17 = vadd.f32 %v4785_v47, %v9240_v40 }
 0x243   :  { %v537_v24 = vpop.f32.mrf.mxu1 }
 0x244   :  { %v6257_v35 = vsel %vm4407_vm8, %v4406_v34, %v4402_v7  ;;  %v3769_v53 = vmul.f32 0.0, %v8959_v61  ;;  %v1453_v7 = vsel %vm1383_vm2, %v9234_v56, %v1452_v54  ;;  %v1770_v32 = vsel %vm1700_vm3, %v9236_v18, %v1769_v49  ;;  %v9237_v54 = vld [vmem:[#allocation29_spill] sm:$0xff]  ;;  %v6328_v18 = vpop.permute.xlu1 %2152 }
 0x245   :  { %v1567_v12 = vadd.f32 %v1453_v7, %v1250_v43  ;;  %v6308_v19 = vpop.f32.mrf.mxu1  ;;  %9246 = vst [vmem:[#allocation34_spill] sm:$0xff] %v6328_v18  ;;  %v6384_v14 = vmul.f32 %v5006_v55, %v6326_v17 }
 0x246   :  { %v4523_v22 = vrot.slane %v3769_v53, %v6225_v37  ;;  %v6302_v53 = vadd.f32 %v9241_v42, %v9240_v40  ;;  %9243 = vst [vmem:[#allocation32_spill] sm:$0xff] %v6308_v19  ;;  %v6335_v42 = vadd.f32 %v9247_v11, %v9240_v40 }
 0x247   :  { %v6284_v50 = vadd.f32 %v1770_v32, %v1567_v12  ;;  %v550_v7 = vpop.f32.mrf.mxu1  ;;  %v6331_v32 = vadd.f32 %v537_v24, %v9240_v40  ;;  %v9248_v24 = vld [vmem:[#allocation11_spill] sm:$0xff] }
 0x248   :  { %v6273_v34 = vsel %vm4407_vm8, %v4523_v22, %v4519_v33  ;;  %v425_v33 = vpop.f32.mrf.mxu0  ;;  %v9242_v22 = vld [vmem:[#allocation52_spill] sm:$0xff]  ;;  %v6318_v38 = vmul.f32 %v9244_v29, %v6302_v53  ;;  %v551_v47 = vadd.f32 %v550_v7, %v9240_v40  ;;  %v6348_v61 = vmul.f32 %v9248_v24, %v6302_v53  ;;  %v6387_v18 = vpop.permute.xlu1 %2200 }
 0x249   :  { %v6306_v20 = vadd.f32 %v9242_v22, %v9240_v40  ;;  %v426_v12 = vadd.f32 %v425_v33, %v9240_v40  ;;  %v6341_v22 = vmul.f32 %v9244_v29, %v6313_v8  ;;  %v6362_v7 = vmul.f32 %v9244_v29, %v6326_v17  ;;  %9250 = vst [vmem:[#allocation29_spill] sm:$0xff] %v6387_v18 }
 0x24a   :  { %v6294_v49 = vpop.f32.mrf.mxu0  ;;  %9245 = vst [vmem:[#allocation33_spill] sm:$0xff] %v6318_v38  ;;  %v6369_v11 = vmul.f32 %v9248_v24, %v6313_v8  ;;  %v6379_v1 = vmul.f32 %v9244_v29, %v6331_v32  ;;  %v685_v15 = vmul.f32 %v9244_v29, %v551_v47  ;;  %v6397_v0 = vmul.f32 %v9248_v24, %v551_v47 }
 0x24b   :  { %2156 = vrot.lane.b32.xlu1 %v6275_v4, %s4901_s10  ;;  %9239 = vst [vmem:[#allocation31_spill] sm:$0xff] %v6294_v49  ;;  %v6322_v56 = vmul.f32 %v9244_v29, %v6306_v20  ;;  %v6353_v46 = vmul.f32 %v9248_v24, %v6306_v20  ;;  %v6358_v6 = vmul.f32 %v9244_v29, %v426_v12  ;;  %v9254_v49 = vrot.slane %v6341_v22, 1 }
 0x24c   :  { %v438_v43 = vpop.f32.mrf.mxu0  ;;  %v6390_v45 = vmul.f32 %v9248_v24, %v426_v12  ;;  %v6400_v5 = vmul.f32 %v4996_v51, %v551_v47  ;;  %v6407_v18 = vmul.f32 %v9248_v24, %v6331_v32  ;;  %v6414_v2 = vmul.f32 %v4996_v51, %v6302_v53 }
 0x24d   :  { %9249 = vst [vmem:[#allocation35_spill] sm:$0xff] %v6358_v6  ;;  %v839_v21 = vrot.slane %v685_v15, 1  ;;  %v6427_v16 = vmul.f32 %v5027_v63, %v6302_v53  ;;  %v600_v52 = vmul.f32 %v5006_v55, %v426_v12  ;;  %v6449_v15 = vmul.f32 %v4996_v51, %v6306_v20 }
 0x24e   :  { %9251 = vst [vmem:[#allocation30_spill] sm:$0xff] %v6390_v45  ;;  %9252 = vst [vmem:[#allocation9_spill] sm:$0xff] %v6407_v18  ;;  %v1473_v10 = vrot.slane %v6400_v5, 3  ;;  %v6492_v13 = vmul.f32 %v5027_v63, %v6331_v32 }
 0x24f   :  { %2204 = vrot.lane.b32.xlu1 %v6284_v50, %s4901_s10  ;;  %9253 = vst [vmem:[#allocation45_spill] sm:$0xff] %v6414_v2 }
 0x250   :  { %2162 = vrot.lane.b32.xlu0 %v9237_v54, %s4901_s10 }
 0x253   :  { %2494 = vrot.lane.b32.xlu1 %v6275_v4, %s4902_s11 }
 0x254   :  { %2210 = vrot.lane.b32.xlu0 %v9238_v62, %s4901_s10 }
 0x257   :  { %2496 = vrot.lane.b32.xlu1 %v6162_v60, %s4902_s11  ;;  %v439_v60 = vadd.f32 %v438_v43, %v9240_v40 }
 0x258   :  { %2500 = vrot.lane.b32.xlu0 %v9237_v54, %s4902_s11 }
 0x259   :  { %v657_v33 = vmul.f32 %v9244_v29, %v439_v60  ;;  %v6365_v43 = vmul.f32 %v9248_v24, %v439_v60  ;;  %v6372_v58 = vmul.f32 %v4996_v51, %v439_v60  ;;  %v6375_v28 = vmul.f32 %v5027_v63, %v439_v60 }
 0x25a   :  { %v6394_v60 = vmul.f32 %v9248_v24, %v6326_v17 }
 0x25b   :  { %2542 = vrot.lane.b32.xlu1 %v6284_v50, %s4902_s11  ;;  %v787_v27 = vrot.slane %v657_v33, 1  ;;  %v1104_v37 = vrot.slane %v6365_v43, 2  ;;  %v1421_v23 = vrot.slane %v6372_v58, 3  ;;  %v6420_v43 = vmul.f32 %v5027_v63, %v551_v47  ;;  %v6443_v47 = vpop.permute.xlu1 %2488 }
 0x25c   :  { %v1156_v58 = vrot.slane %v6397_v0, 2  ;;  %v9257_v0 = vrot.slane %v6358_v6, 1  ;;  %9258 = vst [vmem:[#allocation10_spill] sm:$0xff] %v6443_v47  ;;  %v9260_v6 = vrot.slane %v6348_v61, 2 }
 0x25d   :  { %v788_v33 = vsel %vm749_vm0, %v9254_v49, %v787_v27  ;;  %v6436_v27 = vmul.f32 %v4996_v51, %v426_v12  ;;  %v9256_v49 = vrot.slane %v6318_v38, 1  ;;  %v6453_v38 = vmul.f32 %v5027_v63, %v426_v12 }
 0x25e   :  { %v624_v12 = vmul.f32 %v5006_v55, %v6331_v32 }
 0x25f   :  { %2544 = vrot.lane.b32.xlu1 %v6170_v25, %s4902_s11  ;;  %v602_v25 = vmul.f32 %v5006_v55, %v6313_v8  ;;  %9255 = vst [vmem:[#allocation52_spill] sm:$0xff] %v6436_v27  ;;  %v784_v5 = vsel %vm749_vm0, %v9257_v0, %v9256_v49  ;;  %9259 = vst [vmem:[#allocation13_spill] sm:$0xff] %v6453_v38  ;;  %v9261_v49 = vrot.slane %v6390_v45, 2  ;;  %v6494_v47 = vpop.permute.xlu1 %2490 }
 0x260   :  { %v917_v19 = vadd.f32 %v784_v5, %v600_v52  ;;  %v6479_v8 = vmul.f32 %v4996_v51, %v6331_v32  ;;  %9264 = vst [vmem:[#allocation11_spill] sm:$0xff] %v6494_v47  ;;  %v6498_v45 = vmul.f32 %v5027_v63, %v6326_v17  ;;  %v9266_v5 = vrot.slane %v6453_v38, 4 }
 0x261   :  { %v919_v48 = vadd.f32 %v788_v33, %v602_v25  ;;  %v1101_v0 = vsel %vm1066_vm1, %v9261_v49, %v9260_v6  ;;  %v6467_v25 = vmul.f32 %v5027_v63, %v6306_v20  ;;  %v6475_v6 = vmul.f32 %v4996_v51, %v6326_v17 }
 0x262   :  { %v1234_v33 = vadd.f32 %v1101_v0, %v917_v19  ;;  %v9262_v49 = vrot.slane %v6414_v2, 3  ;;  %v9263_v19 = vrot.slane %v6436_v27, 3  ;;  %v9265_v27 = vrot.slane %v6427_v16, 4 }
 0x263   :  { %v9272_v38 = vrot.slane %v6362_v7, 1  ;;  %v1932_v32 = vsel %vm1901_vm4, %v9237_v54, 0.0  ;;  %v9277_v54 = vrot.slane %v6467_v25, 4 }
 0x264   :  { %v1418_v0 = vsel %vm1383_vm2, %v9263_v19, %v9262_v49  ;;  %v1735_v31 = vsel %vm1700_vm3, %v9266_v5, %v9265_v27  ;;  %v9270_v49 = vrot.slane %v6353_v46, 2  ;;  %v9271_v19 = vrot.slane %v6407_v18, 2 }
 0x265   :  { %v1551_v52 = vadd.f32 %v1418_v0, %v1234_v33  ;;  %v9268_v33 = vrot.slane %v6322_v56, 1  ;;  %v9269_v0 = vrot.slane %v6379_v1, 1  ;;  %v840_v27 = vsel %vm749_vm0, %v9272_v38, %v839_v21 }
 0x266   :  { %v1153_v47 = vsel %vm1066_vm1, %v9271_v19, %v9270_v49  ;;  %v9275_v21 = vrot.slane %v6369_v11, 2 }
 0x267   :  { %v6508_v2 = vadd.f32 %v1735_v31, %v1551_v52  ;;  %v836_v17 = vsel %vm749_vm0, %v9269_v0, %v9268_v33  ;;  %v1790_v33 = vrot.slane %v6420_v43, 4  ;;  %v9273_v0 = vrot.slane %v6449_v15, 3 }
 0x268   :  { %v941_v52 = vadd.f32 %v836_v17, %v624_v12  ;;  %v1105_v38 = vsel %vm1066_vm1, %v9275_v21, %v1104_v37  ;;  %v9276_v12 = vrot.slane %v6432_v30, 3  ;;  %v9278_v43 = vrot.slane %v6492_v13, 4 }
 0x269   :  { %9267 = vst [vmem:[#allocation84_spill] sm:$0xff] %v6508_v2  ;;  %v9274_v2 = vrot.slane %v6479_v8, 3  ;;  %v1236_v5 = vadd.f32 %v1105_v38, %v919_v48  ;;  %v651_v37 = vmul.f32 %v9244_v29, %v6335_v42  ;;  %v9281_v21 = vrot.slane %v6375_v28, 4 }
 0x26a   :  { %v1258_v18 = vadd.f32 %v1153_v47, %v941_v52  ;;  %v1422_v17 = vsel %vm1383_vm2, %v9276_v12, %v1421_v23  ;;  %v1787_v31 = vsel %vm1700_vm3, %v9278_v43, %v9277_v54  ;;  %v6551_v52 = vpop.permute.xlu1 %2536  ;;  %v9282_v12 = vrot.slane %v6462_v3, 4 }
 0x26b   :  { %v1470_v49 = vsel %vm1383_vm2, %v9274_v2, %v9273_v0  ;;  %v943_v2 = vadd.f32 %v840_v27, %v6384_v14  ;;  %v9279_v0 = vrot.slane %v6394_v60, 2  ;;  %9280 = vst [vmem:[#allocation85_spill] sm:$0xff] %v6551_v52  ;;  %v9283_v48 = vrot.slane %v6475_v6, 3  ;;  %v9284_v27 = vld [vmem:[#allocation14_spill] sm:$0xff] }
 0x26c   :  { %v1575_v23 = vadd.f32 %v1470_v49, %v1258_v18  ;;  %v1739_v54 = vsel %vm1700_vm3, %v9282_v12, %v9281_v21  ;;  %v3794_v38 = vadd.s32 4294967240, %v5773_v9  ;;  %v1553_v43 = vadd.f32 %v1422_v17, %v1236_v5 }
 0x26d   :  { %v1157_v47 = vsel %vm1066_vm1, %v9279_v0, %v1156_v58  ;;  %v1474_v14 = vsel %vm1383_vm2, %v9283_v48, %v1473_v10  ;;  %v527_v58 = vadd.f32 %v9284_v27, %v9240_v40  ;;  %v9285_v18 = vrot.slane %v6498_v45, 4 }
 0x26e   :  { %v1260_v0 = vadd.f32 %v1157_v47, %v943_v2  ;;  %v6564_v19 = vadd.f32 %v1787_v31, %v1575_v23  ;;  %v6571_v49 = vadd.f32 %v1739_v54, %v1553_v43  ;;  %v776_v10 = vrot.slane %v651_v37, 1  ;;  %v9287_v2 = vld [vmem:[#allocation42_spill] sm:$0xff] }
 0x26f   :  { %v1791_v28 = vsel %vm1700_vm3, %v9285_v18, %v1790_v33  ;;  %v968_v12 = vmul.f32 %v9248_v24, %v6335_v42  ;;  %v679_v5 = vmul.f32 %v9244_v29, %v527_v58  ;;  %v6579_v31 = vsub.s32 %v3794_v38, %v9140_v57 }
 0x270   :  { %v1577_v21 = vadd.f32 %v1474_v14, %v1260_v0  ;;  %v410_v47 = vadd.f32 %v9287_v2, %v9240_v40  ;;  %v597_v23 = vmul.f32 %v5006_v55, %v6335_v42  ;;  %v9289_v14 = vld [vmem:[#allocation19_spill] sm:$0xff]  ;;  %v1285_v0 = vmul.f32 %v4996_v51, %v6335_v42  ;;  %v9291_v2 = vld [vmem:[#allocation12_spill] sm:$0xff] }
 0x271   :  { %v9290_v27 = vrot.slane %v9289_v14, 1  ;;  %v1093_v43 = vrot.slane %v968_v12, 2  ;;  %v828_v18 = vrot.slane %v679_v5, 1  ;;  %v1923_v52 = vsel %vm1901_vm4, %v6275_v4, 0.0 }
 0x272   :  { %v6582_v17 = vadd.f32 %v1791_v28, %v1577_v21  ;;  %v996_v28 = vmul.f32 %v9248_v24, %v527_v58  ;;  %v650_v14 = vmul.f32 %v9244_v29, %v410_v47  ;;  %v1410_v57 = vrot.slane %v1285_v0, 3 }
 0x273   :  { %v778_v38 = vsel %vm749_vm0, %v776_v10, %v9290_v27  ;;  %v9292_v27 = vld [vmem:[#allocation57_spill] sm:$0xff]  ;;  %v621_v4 = vmul.f32 %v5006_v55, %v527_v58 }
 0x274   :  { %v914_v5 = vadd.f32 %v778_v38, %v597_v23  ;;  %v1313_v23 = vmul.f32 %v4996_v51, %v527_v58  ;;  %v967_v38 = vmul.f32 %v9248_v24, %v410_v47 }
 0x277   :  { %1933 = vadd.xlane.f32.xlu0 %v1932_v32  ;;  %v2004_v32 = vsel %vm1901_vm4, %v9238_v62, 0.0  ;;  %v6575_v48 = vpop.xlane.xlu1 %1918 }
 0x278   :  { %9286 = vst [vmem:[#allocation14_spill] sm:$0xff] %v6575_v48  ;;  %v8988_v33 = vmax.f32 %v6575_v48, 0.0 }
 0x27a   :  { %v3746_v37 = vmul.f32 0.0, %v8988_v33  ;;  %v522_v33 = vadd.f32 %v9291_v2, %v9240_v40  ;;  %v1602_v2 = vmul.f32 %v5027_v63, %v6335_v42  ;;  %v1995_v42 = vsel %vm1901_vm4, %v6284_v50, 0.0 }
 0x27b   :  { %2005 = vadd.xlane.f32.xlu0 %v2004_v32  ;;  %v6590_v54 = vpop.xlane.xlu1 %1990 }
 0x27c   :  { %9288 = vst [vmem:[#allocation42_spill] sm:$0xff] %v6590_v54  ;;  %v4412_v32 = vrot.slane %v3746_v37, %v6579_v31  ;;  %v8994_v21 = vmax.f32 %v6590_v54, 0.0  ;;  %v9293_v37 = vrot.slane %v9292_v27, 2  ;;  %v1145_v54 = vrot.slane %v996_v28, 2 }
 0x27d   :  { %v1727_v27 = vrot.slane %v1602_v2, 4  ;;  %v9298_v2 = vld [vmem:[#allocation15_spill] sm:$0xff] }
 0x27e   :  { %v6607_v10 = vsel %vm3799_vm9, %v4412_v32, %v6257_v35  ;;  %v3770_v12 = vmul.f32 0.0, %v8994_v21  ;;  %v1095_v48 = vsel %vm1066_vm1, %v1093_v43, %v9293_v37  ;;  %v9294_v35 = vrot.slane %v5935_v41, 1 }
 0x27f   :  { %v678_v43 = vmul.f32 %v9244_v29, %v522_v33  ;;  %v9297_v37 = vrot.slane %v5970_v59, 2  ;;  %v1462_v21 = vrot.slane %v1313_v23, 3 }
 0x280   :  { %v4528_v9 = vrot.slane %v3770_v12, %v6579_v31  ;;  %v830_v32 = vsel %vm749_vm0, %v828_v18, %v9294_v35  ;;  %v774_v12 = vrot.slane %v650_v14, 1  ;;  %v9296_v18 = vrot.slane %v5959_v39, 3 }
 0x281   :  { %v938_v41 = vadd.f32 %v830_v32, %v621_v4  ;;  %v1147_v35 = vsel %vm1066_vm1, %v1145_v54, %v9297_v37  ;;  %v826_v50 = vrot.slane %v678_v43, 1  ;;  %v596_v39 = vmul.f32 %v5006_v55, %v9298_v2  ;;  %v9301_v32 = vld [vmem:[#allocation18_spill] sm:$0xff] }
 0x282   :  { %v6626_v0 = vsel %vm3799_vm9, %v4528_v9, %v6273_v34  ;;  %v1412_v28 = vsel %vm1383_vm2, %v1410_v57, %v9296_v18  ;;  %v1630_v9 = vmul.f32 %v5027_v63, %v527_v58  ;;  %v1091_v34 = vrot.slane %v967_v38, 2 }
 0x283   :  { %1924 = vadd.xlane.f32.xlu1 %v1923_v52  ;;  %9295 = vst [vmem:[#allocation19_spill] sm:$0xff] %v6626_v0  ;;  %v1231_v52 = vadd.f32 %v1095_v48, %v914_v5  ;;  %v1284_v0 = vmul.f32 %v4996_v51, %v410_v47  ;;  %v995_v48 = vmul.f32 %v9248_v24, %v522_v33  ;;  %v9299_v57 = vrot.slane %v5974_v36, 4  ;;  %v9303_v36 = vld [vmem:[#allocation16_spill] sm:$0xff] }
 0x284   :  { %v1255_v5 = vadd.f32 %v1147_v35, %v938_v41  ;;  %v9300_v54 = vrot.slane %v6010_v44, 3  ;;  %v1779_v58 = vrot.slane %v1630_v9, 4  ;;  %v9302_v23 = vrot.slane %v9301_v32, 1  ;;  %v9305_v35 = vld [vmem:[#allocation23_spill] sm:$0xff] }
 0x285   :  { %v1548_v14 = vadd.f32 %v1412_v28, %v1231_v52  ;;  %v1729_v59 = vsel %vm1700_vm3, %v1727_v27, %v9299_v57  ;;  %v1408_v43 = vrot.slane %v1284_v0, 3  ;;  %v1312_v52 = vmul.f32 %v4996_v51, %v522_v33  ;;  %v9307_v0 = vld [vmem:[#allocation20_spill] sm:$0xff] }
 0x286   :  { %v1464_v4 = vsel %vm1383_vm2, %v1462_v21, %v9300_v54  ;;  %v775_v38 = vsel %vm749_vm0, %v9302_v23, %v774_v12  ;;  %v620_v27 = vmul.f32 %v5006_v55, %v9303_v36  ;;  %v1143_v37 = vrot.slane %v995_v48, 2 }
 0x287   :  { %1996 = vadd.xlane.f32.xlu1 %v1995_v42  ;;  %v1601_v42 = vmul.f32 %v5027_v63, %v410_v47  ;;  %v1865_v41 = vadd.f32 %v1729_v59, %v1548_v14  ;;  %v1572_v18 = vadd.f32 %v1464_v4, %v1255_v5  ;;  %v913_v28 = vadd.f32 %v775_v38, %v596_v39 }
 0x288   :  { %v9304_v44 = vrot.slane %v6017_v26, 4  ;;  %v9306_v9 = vrot.slane %v9305_v35, 2  ;;  %v9308_v2 = vrot.slane %v9307_v0, 1  ;;  %v1460_v59 = vrot.slane %v1312_v52, 3  ;;  %v9309_v26 = vld [vmem:[#allocation25_spill] sm:$0xff]  ;;  %v9315_v52 = vld [vmem:[#allocation27_spill] sm:$0xff] }
 0x289   :  { %v1725_v14 = vrot.slane %v1601_v42, 4  ;;  %v1629_v48 = vmul.f32 %v5027_v63, %v522_v33  ;;  %v9310_v54 = vrot.slane %v9309_v26, 3  ;;  %v9313_v42 = vld [vmem:[#allocation26_spill] sm:$0xff]  ;;  %v9316_v36 = vrot.slane %v9315_v52, 3 }
 0x28a   :  { %v1781_v21 = vsel %vm1700_vm3, %v1779_v58, %v9304_v44  ;;  %v1092_v12 = vsel %vm1066_vm1, %v9306_v9, %v1091_v34  ;;  %v827_v47 = vsel %vm749_vm0, %v9308_v2, %v826_v50  ;;  %v9311_v58 = vld [vmem:[#allocation24_spill] sm:$0xff]  ;;  %v1938_v9 = vsel %vm1901_vm4, %v1865_v41, 0.0 }
 0x28b   :  { %v1889_v5 = vadd.f32 %v1781_v21, %v1572_v18  ;;  %v1230_v39 = vadd.f32 %v1092_v12, %v913_v28  ;;  %v937_v57 = vadd.f32 %v827_v47, %v620_v27  ;;  %v1409_v4 = vsel %vm1383_vm2, %v9310_v54, %v1408_v43  ;;  %v6692_v12 = vpop.permute.xlu0 %2154 }
 0x28c   :  { %v9312_v32 = vrot.slane %v9311_v58, 2  ;;  %v1777_v38 = vrot.slane %v1629_v48, 4  ;;  %v9314_v18 = vrot.slane %v9313_v42, 4  ;;  %v1461_v33 = vsel %vm1383_vm2, %v9316_v36, %v1460_v59  ;;  %9320 = vst [vmem:[#allocation57_spill] sm:$0xff] %v6692_v12 }
 0x28d   :  { %v1547_v50 = vadd.f32 %v1409_v4, %v1230_v39  ;;  %v6701_v39 = vpop.permute.xlu1 %2492  ;;  %v625_v54 = vmul.f32 %v5006_v55, %v6306_v20  ;;  %v9327_v4 = vrot.slane %v6369_v11, 2  ;;  %v9328_v58 = vrot.slane %v6348_v61, 2 }
 0x28e   :  { %v1144_v34 = vsel %vm1066_vm1, %v9312_v32, %v1143_v37  ;;  %v1726_v28 = vsel %vm1700_vm3, %v9314_v18, %v1725_v14  ;;  %v9317_v37 = vld [vmem:[#allocation28_spill] sm:$0xff]  ;;  %v601_v14 = vmul.f32 %v5006_v55, %v6302_v53  ;;  %9322 = vst [vmem:[#allocation18_spill] sm:$0xff] %v6701_v39  ;;  %v9329_v32 = vrot.slane %v6362_v7, 1  ;;  %v9334_v18 = vld [vmem:[#allocation45_spill] sm:$0xff] }
 0x28f   :  { %v1254_v23 = vadd.f32 %v1144_v34, %v937_v57  ;;  %v1864_v43 = vadd.f32 %v1726_v28, %v1547_v50  ;;  %v9318_v44 = vrot.slane %v9317_v37, 4  ;;  %v6695_v2 = vpop.permute.xlu0 %2202  ;;  %v1103_v53 = vsel %vm1066_vm1, %v9328_v58, %v9327_v4 }
 0x290   :  { %9321 = vst [vmem:[#allocation15_spill] sm:$0xff] %v6695_v2  ;;  %v9333_v20 = vrot.slane %v6432_v30, 3  ;;  %v9335_v11 = vrot.slane %v9334_v18, 3  ;;  %v9336_v28 = vrot.slane %v6394_v60, 2  ;;  %v9337_v7 = vrot.slane %v6353_v46, 2 }
 0x291   :  { %2166 = vrot.lane.b32.xlu0 %v1865_v41, %s4901_s10  ;;  %v1571_v27 = vadd.f32 %v1461_v33, %v1254_v23  ;;  %v1778_v21 = vsel %vm1700_vm3, %v9318_v44, %v1777_v38  ;;  %v1935_v0 = vsel %vm1901_vm4, %v1864_v43, 0.0  ;;  %v6722_v50 = vpop.permute.xlu1 %2160  ;;  %v9340_v37 = vrot.slane %v6427_v16, 4 }
 0x292   :  { %9331 = vst [vmem:[#allocation23_spill] sm:$0xff] %v6722_v50  ;;  %v1420_v61 = vsel %vm1383_vm2, %v9335_v11, %v9333_v20  ;;  %v9341_v44 = vrot.slane %v6475_v6, 3  ;;  %v9346_v6 = vld [vmem:[#allocation68_spill] sm:$0xff]  ;;  %v9381_v50 = vld [vmem:[#allocation53_spill] sm:$0xff] }
 0x293   :  { %v6686_v35 = vadd.f32 %v1778_v21, %v1571_v27  ;;  %v6708_v48 = vpop.permute.xlu0 %2540  ;;  %v9339_v27 = vrot.slane %v6462_v3, 4  ;;  %v9342_v21 = vrot.slane %v6449_v15, 3  ;;  %v9345_v3 = vrot.slane %v6467_v25, 4  ;;  %v9358_v20 = vld [vmem:[#allocation32_spill] sm:$0xff] }
 0x294   :  { %9326 = vst [vmem:[#allocation16_spill] sm:$0xff] %v6708_v48  ;;  %v559_v18 = vadd.f32 %v9358_v20, %v9240_v40 }
 0x295   :  { %2214 = vrot.lane.b32.xlu0 %v1889_v5, %s4901_s10  ;;  %9319 = vst [vmem:[#allocation12_spill] sm:$0xff] %v6686_v35  ;;  %v2007_v47 = vsel %vm1901_vm4, %v6686_v35, 0.0  ;;  %v6736_v33 = vpop.permute.xlu1 %2208  ;;  %v1737_v30 = vsel %vm1700_vm3, %v9340_v37, %v9339_v27  ;;  %v1472_v60 = vsel %vm1383_vm2, %v9342_v21, %v9341_v44 }
 0x296   :  { %9338 = vst [vmem:[#allocation25_spill] sm:$0xff] %v6736_v33  ;;  %v628_v33 = vmul.f32 %v5006_v55, %v559_v18 }
 0x297   :  { %v6724_v23 = vpop.xlane.xlu0 %1921 }
 0x298   :  { %2548 = vrot.lane.b32.xlu1 %v9238_v62, %s4902_s11  ;;  %v2010_v62 = vsel %vm1901_vm4, %v1889_v5, 0.0  ;;  %9332 = vst [vmem:[#allocation20_spill] sm:$0xff] %v6724_v23 }
 0x299   :  { %2504 = vrot.lane.b32.xlu0 %v1865_v41, %s4902_s11  ;;  %v9323_v41 = vrot.slane %v6341_v22, 1  ;;  %v9330_v22 = vrot.slane %v6322_v56, 1  ;;  %v1155_v56 = vsel %vm1066_vm1, %v9337_v7, %v9336_v28  ;;  %v6762_v15 = vpop.permute.xlu1 %2498 }
 0x29a   :  { %9347 = vst [vmem:[#allocation26_spill] sm:$0xff] %v6762_v15 }
 0x29b   :  { %v838_v34 = vsel %vm749_vm0, %v9330_v22, %v9329_v32 }
 0x29c   :  { %2164 = vrot.lane.b32.xlu1 %v1864_v43, %s4901_s10  ;;  %v942_v42 = vadd.f32 %v838_v34, %v625_v54 }
 0x29d   :  { %2552 = vrot.lane.b32.xlu0 %v1889_v5, %s4902_s11  ;;  %v9324_v5 = vld [vmem:[#allocation33_spill] sm:$0xff] }
 0x29e   :  { %v9325_v57 = vrot.slane %v9324_v5, 1  ;;  %v1259_v36 = vadd.f32 %v1155_v56, %v942_v42 }
 0x2a0   :  { %2212 = vrot.lane.b32.xlu1 %v6686_v35, %s4901_s10  ;;  %v786_v59 = vsel %vm749_vm0, %v9325_v57, %v9323_v41  ;;  %v9407_v35 = vld [vmem:[#allocation67_spill] sm:$0xff] }
 0x2a1   :  { %v918_v26 = vadd.f32 %v786_v59, %v601_v14 }
 0x2a3   :  { %v1235_v38 = vadd.f32 %v1103_v53, %v918_v26 }
 0x2a5   :  { %v1552_v52 = vadd.f32 %v1420_v61, %v1235_v38  ;;  %v4789_v61 = vpop.f32.mrf.mxu1 }
 0x2a7   :  { %v6751_v46 = vadd.f32 %v1737_v30, %v1552_v52  ;;  %v6822_v52 = vadd.f32 %v4789_v61, %v9240_v40 }
 0x2a9   :  { %v6857_v20 = vmul.f32 %v9248_v24, %v6822_v52  ;;  %v6876_v61 = vmul.f32 %v4996_v51, %v6822_v52 }
 0x2bc   :  { %1939 = vadd.xlane.f32.xlu0 %v1938_v9  ;;  %v6748_v9 = vpop.xlane.xlu0 %1993 }
 0x2bd   :  { %9343 = vst [vmem:[#allocation24_spill] sm:$0xff] %v6748_v9 }
 0x2bf   :  { %v6774_v25 = vpop.xlane.xlu1 %1930 }
 0x2c0   :  { %2011 = vadd.xlane.f32.xlu0 %v2010_v62  ;;  %v1576_v62 = vadd.f32 %v1472_v60, %v1259_v36  ;;  %v6764_v14 = vpop.permute.xlu0 %2546  ;;  %9351 = vst [vmem:[#allocation33_spill] sm:$0xff] %v6774_v25  ;;  %v6835_v60 = vmul.f32 %v9244_v29, %v559_v18 }
 0x2c1   :  { %9348 = vst [vmem:[#allocation27_spill] sm:$0xff] %v6764_v14 }
 0x2c2   :  { %v9369_v14 = vrot.slane %v6835_v60, 1 }
 0x2c3   :  { %v6782_v59 = vpop.xlane.xlu1 %2002 }
 0x2c4   :  { %1936 = vadd.xlane.f32.xlu1 %v1935_v0  ;;  %v9344_v0 = vrot.slane %v6498_v45, 4  ;;  %v9350_v45 = vld [vmem:[#allocation22_spill] sm:$0xff]  ;;  %v6778_v57 = vpop.permute.xlu0 %2158  ;;  %9353 = vst [vmem:[#allocation68_spill] sm:$0xff] %v6782_v59 }
 0x2c5   :  { %9352 = vst [vmem:[#allocation45_spill] sm:$0xff] %v6778_v57  ;;  %v9384_v57 = vld [vmem:[#allocation30_spill] sm:$0xff] }
 0x2c6   :  { %v1789_v16 = vsel %vm1700_vm3, %v9345_v3, %v9344_v0 }
 0x2c7   :  { %v6792_v53 = vpop.permute.xlu1 %2156 }
 0x2c8   :  { %2008 = vadd.xlane.f32.xlu1 %v2007_v47  ;;  %v4761_v47 = vpop.f32.mrf.mxu0  ;;  %v6786_v54 = vpop.permute.xlu0 %2206  ;;  %9355 = vst [vmem:[#allocation86_spill] sm:$0xff] %v6792_v53 }
 0x2c9   :  { %9354 = vst [vmem:[#allocation22_spill] sm:$0xff] %v6786_v54  ;;  %v450_v4 = vadd.f32 %v4761_v47, %v9240_v40 }
 0x2ca   :  { %v6768_v41 = vpop.f32.mrf.mxu0 }
 0x2cb   :  { %v6797_v22 = vmul.f32 %v9244_v29, %v450_v4  ;;  %v6804_v38 = vmul.f32 %v9248_v24, %v450_v4  ;;  %v6813_v11 = vmul.f32 %v4996_v51, %v450_v4  ;;  %v6824_v36 = vpop.permute.xlu1 %2204  ;;  %v605_v27 = vmul.f32 %v5006_v55, %v450_v4 }
 0x2cc   :  { %v6776_v5 = vpop.f32.mrf.mxu0  ;;  %v6794_v32 = vpop.xlane.xlu0 %1927  ;;  %9360 = vst [vmem:[#allocation89_spill] sm:$0xff] %v6824_v36  ;;  %v6831_v44 = vmul.f32 %v5027_v63, %v450_v4  ;;  %v6853_v4 = vmul.f32 %v9248_v24, %v559_v18 }
 0x2cd   :  { %9356 = vst [vmem:[#allocation87_spill] sm:$0xff] %v6794_v32  ;;  %v8996_v28 = vrot.slane %v6797_v22, 1  ;;  %v8998_v30 = vrot.slane %v6804_v38, 2 }
 0x2ce   :  { %v454_v26 = vpop.f32.mrf.mxu0  ;;  %v9367_v2 = vrot.slane %v6831_v44, 4 }
 0x2cf   :  { %v6790_v58 = vadd.f32 %v454_v26, %v9240_v40 }
 0x2d0   :  { %v6827_v37 = vpop.xlane.xlu0 %1999 }
 0x2d1   :  { %v6801_v34 = vmul.f32 %v9244_v29, %v6790_v58  ;;  %v6808_v42 = vmul.f32 %v9248_v24, %v6790_v58  ;;  %v6819_v56 = vmul.f32 %v4996_v51, %v6790_v58  ;;  %9361 = vst [vmem:[#allocation90_spill] sm:$0xff] %v6827_v37  ;;  %v6841_v3 = vmul.f32 %v5027_v63, %v6790_v58 }
 0x2d3   :  { %9357 = vst [vmem:[#allocation88_spill] sm:$0xff] %v6808_v42  ;;  %v8995_v7 = vrot.slane %v6801_v34, 1  ;;  %9359 = vst [vmem:[#allocation32_spill] sm:$0xff] %v6819_v56  ;;  %v8997_v21 = vrot.slane %v6808_v42, 2  ;;  %v9365_v48 = vrot.slane %v6819_v56, 3  ;;  %v8999_v0 = vrot.slane %v6841_v3, 4 }
 0x2d4   :  { %9362 = vst [vmem:[#allocation91_spill] sm:$0xff] %v6841_v3  ;;  %v9418_v3 = vmax.f32 %v6827_v37, 0.0 }
 0x2d5   :  { %v795_v47 = vsel %vm749_vm0, %v8996_v28, %v8995_v7  ;;  %v6867_v7 = vmul.f32 %v4996_v51, %v559_v18  ;;  %v6871_v28 = vpop.permute.xlu0 %2162  ;;  %v1746_v15 = vsel %vm1700_vm3, %v9367_v2, %v8999_v0 }
 0x2d6   :  { %2502 = vrot.lane.b32.xlu0 %v1864_v43, %s4902_s11  ;;  %v6766_v43 = vadd.f32 %v1789_v16, %v1576_v62  ;;  %v6845_v16 = vmul.f32 %v9244_v29, %v6822_v52  ;;  %v922_v26 = vadd.f32 %v795_v47, %v605_v27  ;;  %v1112_v62 = vsel %vm1066_vm1, %v8998_v30, %v8997_v21  ;;  %v6869_v27 = vpop.permute.xlu1 %2494 }
 0x2d7   :  { %9363 = vst [vmem:[#allocation92_spill] sm:$0xff] %v6869_v27  ;;  %9364 = vst [vmem:[#allocation93_spill] sm:$0xff] %v6871_v28  ;;  %v9366_v21 = vrot.slane %v6813_v11, 3 }
 0x2d8   :  { %9349 = vst [vmem:[#allocation28_spill] sm:$0xff] %v6766_v43  ;;  %v1239_v47 = vadd.f32 %v1112_v62, %v922_v26  ;;  %v6887_v26 = vmul.f32 %v5027_v63, %v559_v18  ;;  %v6903_v18 = vmul.f32 %v5027_v63, %v6822_v52  ;;  %v9368_v62 = vrot.slane %v6845_v16, 1 }
 0x2d9   :  { %2168 = vrot.lane.b32.xlu1 %v9346_v6, %s4901_s10  ;;  %v1429_v30 = vsel %vm1383_vm2, %v9366_v21, %v9365_v48  ;;  %v9372_v48 = vrot.slane %v6857_v20, 2  ;;  %v2022_v53 = vsel %vm1901_vm4, %v6766_v43, 0.0 }
 0x2da   :  { %2174 = vrot.lane.b32.xlu0 %v6751_v46, %s4901_s10  ;;  %v1556_v54 = vadd.f32 %v1429_v30, %v1239_v47  ;;  %v1950_v30 = vsel %vm1901_vm4, %v6751_v46, 0.0  ;;  %v845_v36 = vsel %vm749_vm0, %v9369_v14, %v9368_v62  ;;  %v6910_v2 = vpop.permute.xlu1 %2496  ;;  %v9001_v0 = vrot.slane %v6887_v26, 4 }
 0x2db   :  { %9370 = vst [vmem:[#allocation94_spill] sm:$0xff] %v6910_v2  ;;  %v9373_v47 = vrot.slane %v6853_v4, 2  ;;  %v9374_v14 = vrot.slane %v6876_v61, 3  ;;  %v9375_v62 = vrot.slane %v6867_v7, 3 }
 0x2dc   :  { %v6896_v21 = vadd.f32 %v1746_v15, %v1556_v54  ;;  %v945_v15 = vadd.f32 %v845_v36, %v628_v33  ;;  %v6912_v54 = vpop.permute.xlu0 %2210  ;;  %v9000_v36 = vrot.slane %v6903_v18, 4 }
 0x2dd   :  { %2216 = vrot.lane.b32.xlu1 %v9350_v45, %s4901_s10  ;;  %9371 = vst [vmem:[#allocation95_spill] sm:$0xff] %v6912_v54  ;;  %v1162_v27 = vsel %vm1066_vm1, %v9373_v47, %v9372_v48  ;;  %v1479_v33 = vsel %vm1383_vm2, %v9375_v62, %v9374_v14  ;;  %v9377_v47 = vld [vmem:[#allocation17_spill] sm:$0xff]  ;;  %v9379_v14 = vld [vmem:[#allocation35_spill] sm:$0xff] }
 0x2de   :  { %2222 = vrot.lane.b32.xlu0 %v6766_v43, %s4901_s10  ;;  %v1262_v39 = vadd.f32 %v1162_v27, %v945_v15  ;;  %v1796_v48 = vsel %vm1700_vm3, %v9001_v0, %v9000_v36  ;;  %v6933_v27 = vpop.permute.xlu1 %2542  ;;  %v599_v15 = vmul.f32 %v5006_v55, %v9377_v47  ;;  %v9380_v62 = vrot.slane %v9379_v14, 1  ;;  %v9386_v0 = vld [vmem:[#allocation58_spill] sm:$0xff]  ;;  %v9405_v43 = vld [vmem:[#allocation13_spill] sm:$0xff] }
 0x2df   :  { %9376 = vst [vmem:[#allocation96_spill] sm:$0xff] %v6933_v27  ;;  %v9385_v36 = vrot.slane %v9384_v57, 2  ;;  %v9387_v27 = vrot.slane %v9386_v0, 2  ;;  %v9005_v0 = vmax.f32 %v6794_v32, 0.0  ;;  %v9414_v32 = vld [vmem:[#allocation49_spill] sm:$0xff] }
 0x2e0   :  { %v6939_v2 = vpop.permute.xlu0 %2500 }
 0x2e1   :  { %2506 = vrot.lane.b32.xlu1 %v9346_v6, %s4902_s11  ;;  %9378 = vst [vmem:[#allocation17_spill] sm:$0xff] %v6939_v2  ;;  %v1099_v12 = vsel %vm1066_vm1, %v9387_v27, %v9385_v36 }
 0x2e2   :  { %v6953_v47 = vpop.permute.xlu1 %2544 }
 0x2e3   :  { %9388 = vst [vmem:[#allocation53_spill] sm:$0xff] %v6953_v47 }
 0x2e5   :  { %2554 = vrot.lane.b32.xlu1 %v9350_v45, %s4902_s11 }
 0x2fd   :  { %1951 = vadd.xlane.f32.xlu0 %v1950_v30  ;;  %v1579_v30 = vadd.f32 %v1479_v33, %v1262_v39 }
 0x2ff   :  { %v6937_v54 = vadd.f32 %v1796_v48, %v1579_v30  ;;  %v1941_v30 = vsel %vm1901_vm4, %v9346_v6, 0.0  ;;  %v9389_v48 = vld [vmem:[#allocation21_spill] sm:$0xff] }
 0x300   :  { %v6946_v28 = vpop.xlane.xlu0 %1933  ;;  %v623_v14 = vmul.f32 %v5006_v55, %v9389_v48  ;;  %v9395_v6 = vld [vmem:[#allocation65_spill] sm:$0xff] }
 0x301   :  { %2023 = vadd.xlane.f32.xlu0 %v2022_v53  ;;  %v9382_v53 = vrot.slane %v9381_v50, 1  ;;  %9383 = vst [vmem:[#allocation35_spill] sm:$0xff] %v6946_v28  ;;  %v9396_v2 = vrot.slane %v9395_v6, 3  ;;  %v9400_v6 = vld [vmem:[#allocation9_spill] sm:$0xff] }
 0x303   :  { %v782_v39 = vsel %vm749_vm0, %v9382_v53, %v9380_v62  ;;  %v9391_v62 = vld [vmem:[#allocation61_spill] sm:$0xff] }
 0x304   :  { %v916_v33 = vadd.f32 %v782_v39, %v599_v15  ;;  %v9390_v15 = vrot.slane %v6379_v1, 1  ;;  %v9392_v53 = vrot.slane %v9391_v62, 1  ;;  %v9393_v39 = vld [vmem:[#allocation52_spill] sm:$0xff]  ;;  %v2013_v1 = vsel %vm1901_vm4, %v9350_v45, 0.0 }
 0x305   :  { %v9394_v47 = vrot.slane %v9393_v39, 3  ;;  %v3749_v45 = vmul.f32 0.0, %v9005_v0 }
 0x306   :  { %v834_v57 = vsel %vm749_vm0, %v9392_v53, %v9390_v15  ;;  %v1233_v36 = vadd.f32 %v1099_v12, %v916_v33  ;;  %v9398_v15 = vmax.f32 %v6724_v23, 0.0  ;;  %v6980_v33 = vpop.xlane.xlu0 %2005  ;;  %v9412_v23 = vld [vmem:[#allocation69_spill] sm:$0xff] }
 0x307   :  { %v1416_v48 = vsel %vm1383_vm2, %v9396_v2, %v9394_v47  ;;  %v940_v62 = vadd.f32 %v834_v57, %v623_v14  ;;  %9399 = vst [vmem:[#allocation58_spill] sm:$0xff] %v6980_v33  ;;  %v9401_v2 = vrot.slane %v9400_v6, 2  ;;  %v9402_v47 = vld [vmem:[#allocation63_spill] sm:$0xff]  ;;  %v9406_v6 = vrot.slane %v9405_v43, 4 }
 0x308   :  { %v3747_v53 = vmul.f32 0.0, %v9398_v15  ;;  %v9403_v50 = vrot.slane %v9402_v47, 2  ;;  %v1550_v57 = vadd.f32 %v1416_v48, %v1233_v36  ;;  %v9404_v15 = vmax.f32 %v6774_v25, 0.0 }
 0x309   :  { %1942 = vadd.xlane.f32.xlu1 %v1941_v30  ;;  %v9408_v47 = vrot.slane %v9407_v35, 4  ;;  %v9413_v25 = vrot.slane %v9412_v23, 3  ;;  %v9415_v35 = vmax.f32 %v6748_v9, 0.0  ;;  %v9420_v23 = vmax.f32 %v6782_v59, 0.0 }
 0x30a   :  { %v1151_v27 = vsel %vm1066_vm1, %v9403_v50, %v9401_v2  ;;  %v3750_v12 = vmul.f32 0.0, %v9404_v15  ;;  %v9409_v2 = vmax.f32 %v6946_v28, 0.0  ;;  %v9411_v15 = vrot.slane %v6479_v8, 3  ;;  %v9417_v28 = vld [vmem:[#allocation50_spill] sm:$0xff] }
 0x30b   :  { %v1733_v50 = vsel %vm1700_vm3, %v9408_v47, %v9406_v6  ;;  %v1257_v48 = vadd.f32 %v1151_v27, %v940_v62  ;;  %v4417_v43 = vrot.slane %v3747_v53, %v9414_v32  ;;  %v9416_v6 = vld [vmem:[#allocation59_spill] sm:$0xff]  ;;  %v4426_v14 = vrot.slane %v3749_v45, %v9417_v28  ;;  %v9419_v8 = vld [vmem:[#allocation78_spill] sm:$0xff] }
 0x30c   :  { %v6973_v30 = vpop.xlane.xlu1 %1924  ;;  %v3751_v0 = vmul.f32 0.0, %v9409_v2  ;;  %v3773_v27 = vmul.f32 0.0, %v9418_v3  ;;  %v1867_v62 = vadd.f32 %v1733_v50, %v1550_v57  ;;  %v4431_v56 = vrot.slane %v3750_v12, %v9419_v8  ;;  %v9424_v50 = vld [vmem:[#allocation70_spill] sm:$0xff] }
 0x30d   :  { %9397 = vst [vmem:[#allocation30_spill] sm:$0xff] %v6973_v30  ;;  %v9007_v39 = vmax.f32 %v6973_v30, 0.0  ;;  %2014 = vadd.xlane.f32.xlu1 %v2013_v1  ;;  %v3771_v30 = vmul.f32 0.0, %v9415_v35  ;;  %v9421_v35 = vld [vmem:[#allocation82_spill] sm:$0xff]  ;;  %v9422_v9 = vmax.f32 %v6980_v33, 0.0  ;;  %v9423_v57 = vrot.slane %v6492_v13, 4 }
 0x30f   :  { %v3748_v1 = vmul.f32 0.0, %v9007_v39  ;;  %v1468_v39 = vsel %vm1383_vm2, %v9413_v25, %v9411_v15  ;;  %v3774_v25 = vmul.f32 0.0, %v9420_v23  ;;  %v3775_v42 = vmul.f32 0.0, %v9422_v9 }
 0x310   :  { %v7004_v36 = vpop.xlane.xlu1 %1996  ;;  %v1574_v37 = vadd.f32 %v1468_v39, %v1257_v48  ;;  %v4533_v3 = vrot.slane %v3771_v30, %v9414_v32  ;;  %v9425_v23 = vrot.slane %v9424_v50, 4 }
 0x311   :  { %9410 = vst [vmem:[#allocation21_spill] sm:$0xff] %v7004_v36  ;;  %v4421_v47 = vrot.slane %v3748_v1, %v9416_v6  ;;  %v9016_v2 = vmax.f32 %v7004_v36, 0.0  ;;  %v4436_v1 = vrot.slane %v3751_v0, %v9421_v35  ;;  %v4542_v0 = vrot.slane %v3773_v27, %v9417_v28  ;;  %v9426_v27 = vld [vmem:[#allocation84_spill] sm:$0xff] }
 0x312   :  { %v4547_v39 = vrot.slane %v3774_v25, %v9419_v8 }
 0x313   :  { %v4422_v53 = vsel %vm2891_vm5, %v4421_v47, %v4417_v43  ;;  %v3772_v15 = vmul.f32 0.0, %v9016_v2  ;;  %v1785_v43 = vsel %vm1700_vm3, %v9425_v23, %v9423_v57 }
 0x314   :  { %v4427_v45 = vsel %vm2898_vm6, %v4426_v14, %v4422_v53  ;;  %v4552_v14 = vrot.slane %v3775_v42, %v9421_v35  ;;  %v1891_v48 = vadd.f32 %v1785_v43, %v1574_v37  ;;  %v7061_v42 = vpop.permute.xlu1 %2548  ;;  %v9428_v37 = vld [vmem:[#allocation31_spill] sm:$0xff] }
 0x315   :  { %v4537_v12 = vrot.slane %v3772_v15, %v9416_v6  ;;  %v4432_v47 = vsel %vm2905_vm7, %v4431_v56, %v4427_v45  ;;  %9427 = vst [vmem:[#allocation61_spill] sm:$0xff] %v7061_v42  ;;  %v447_v25 = vadd.f32 %v9428_v37, %v9240_v40 }
 0x316   :  { %v4437_v9 = vsel %vm4407_vm8, %v4436_v1, %v4432_v47  ;;  %v2016_v1 = vsel %vm1901_vm4, %v1891_v48, 0.0 }
 0x317   :  { %2170 = vrot.lane.b32.xlu0 %v1867_v62, %s4901_s10  ;;  %v4538_v30 = vsel %vm2891_vm5, %v4537_v12, %v4533_v3  ;;  %v659_v45 = vmul.f32 %v9244_v29, %v447_v25  ;;  %v442_v3 = vadd.f32 %v6768_v41, %v9240_v40  ;;  %v553_v12 = vpop.f32.mrf.mxu1  ;;  %v976_v23 = vmul.f32 %v9248_v24, %v447_v25 }
 0x318   :  { %v4543_v13 = vsel %vm2898_vm6, %v4542_v0, %v4538_v30  ;;  %v7066_v15 = vpop.permute.xlu1 %2164  ;;  %v554_v50 = vadd.f32 %v553_v12, %v9240_v40  ;;  %v1293_v47 = vmul.f32 %v4996_v51, %v447_v25  ;;  %v604_v0 = vmul.f32 %v5006_v55, %v447_v25 }
 0x319   :  { %v4548_v53 = vsel %vm2905_vm7, %v4547_v39, %v4543_v13  ;;  %9429 = vst [vmem:[#allocation52_spill] sm:$0xff] %v7066_v15  ;;  %v658_v43 = vmul.f32 %v9244_v29, %v442_v3  ;;  %v975_v39 = vmul.f32 %v9248_v24, %v442_v3 }
 0x31a   :  { %v7047_v56 = vsel %vm4407_vm8, %v4552_v14, %v4548_v53  ;;  %v686_v41 = vmul.f32 %v9244_v29, %v554_v50  ;;  %v1107_v14 = vrot.slane %v976_v23, 2  ;;  %v9432_v53 = vrot.slane %v6797_v22, 1 }
 0x31b   :  { %2218 = vrot.lane.b32.xlu0 %v1891_v48, %s4901_s10  ;;  %v789_v13 = vrot.slane %v658_v43, 1  ;;  %v1424_v37 = vrot.slane %v1293_v47, 3  ;;  %v1003_v2 = vmul.f32 %v9248_v24, %v554_v50  ;;  %v1947_v23 = vsel %vm1901_vm4, %v9426_v27, 0.0 }
 0x31c   :  { %v7072_v57 = vpop.permute.xlu1 %2212  ;;  %v2019_v43 = vsel %vm1901_vm4, %v6564_v19, 0.0  ;;  %v603_v22 = vmul.f32 %v5006_v55, %v442_v3 }
 0x31d   :  { %9430 = vst [vmem:[#allocation65_spill] sm:$0xff] %v7072_v57  ;;  %v1106_v57 = vrot.slane %v975_v39, 2  ;;  %v627_v39 = vmul.f32 %v5006_v55, %v554_v50 }
 0x31e   :  { %2512 = vrot.lane.b32.xlu1 %v6751_v46, %s4902_s11  ;;  %v1944_v46 = vsel %vm1901_vm4, %v1867_v62, 0.0 }
 0x31f   :  { %2508 = vrot.lane.b32.xlu0 %v1867_v62, %s4902_s11  ;;  %v790_v62 = vrot.slane %v659_v45, 1  ;;  %v1292_v45 = vmul.f32 %v4996_v51, %v442_v3 }
 0x322   :  { %2172 = vrot.lane.b32.xlu1 %v9426_v27, %s4901_s10 }
 0x323   :  { %2558 = vrot.lane.b32.xlu0 %v6564_v19, %s4902_s11 }
 0x326   :  { %2220 = vrot.lane.b32.xlu1 %v6564_v19, %s4901_s10  ;;  %v1609_v19 = vmul.f32 %v5027_v63, %v442_v3 }
 0x32a   :  { %2510 = vrot.lane.b32.xlu1 %v9426_v27, %s4902_s11  ;;  %v791_v27 = vsel %vm749_vm0, %v789_v13, %v790_v62 }
 0x32b   :  { %v920_v13 = vadd.f32 %v791_v27, %v603_v22  ;;  %v9438_v27 = vrot.slane %v6831_v44, 4  ;;  %v9440_v44 = vrot.slane %v6867_v7, 3  ;;  %v7158_v7 = vpop.permute.xlu0 %2166 }
 0x32e   :  { %2556 = vrot.lane.b32.xlu1 %v1891_v48, %s4902_s11 }
 0x342   :  { %1945 = vadd.xlane.f32.xlu0 %v1944_v46  ;;  %v793_v46 = vsel %vm749_vm0, %v790_v62, %v9432_v53  ;;  %v841_v53 = vrot.slane %v686_v41, 1  ;;  %v9435_v62 = vrot.slane %v6813_v11, 3 }
 0x344   :  { %v1427_v3 = vsel %vm1383_vm2, %v1424_v37, %v9435_v62  ;;  %v7168_v62 = vpop.f32.mrf.mxu1 }
 0x346   :  { %2017 = vadd.xlane.f32.xlu0 %v2016_v1  ;;  %v1610_v1 = vmul.f32 %v5027_v63, %v447_v25  ;;  %v921_v25 = vadd.f32 %v793_v46, %v604_v0  ;;  %v1158_v0 = vrot.slane %v1003_v2, 2  ;;  %v1320_v46 = vmul.f32 %v4996_v51, %v554_v50 }
 0x347   :  { %v1108_v2 = vsel %vm1066_vm1, %v1106_v57, %v1107_v14 }
 0x34d   :  { %v7080_v30 = vpop.xlane.xlu1 %1936 }
 0x34e   :  { %9431 = vst [vmem:[#allocation9_spill] sm:$0xff] %v7080_v30  ;;  %v9018_v48 = vmax.f32 %v7080_v30, 0.0  ;;  %v1423_v30 = vrot.slane %v1292_v45, 3 }
 0x350   :  { %v3752_v12 = vmul.f32 0.0, %v9018_v48  ;;  %v9434_v48 = vrot.slane %v6804_v38, 2  ;;  %v1425_v57 = vsel %vm1383_vm2, %v1423_v30, %v1424_v37  ;;  %v9441_v37 = vrot.slane %v6887_v26, 4 }
 0x351   :  { %v7097_v47 = vpop.xlane.xlu1 %2008 }
 0x352   :  { %9433 = vst [vmem:[#allocation63_spill] sm:$0xff] %v7097_v47  ;;  %v4441_v42 = vrot.slane %v3752_v12, %v6579_v31  ;;  %v9021_v33 = vmax.f32 %v7097_v47, 0.0  ;;  %1948 = vadd.xlane.f32.xlu1 %v1947_v23  ;;  %v1110_v59 = vsel %vm1066_vm1, %v1107_v14, %v9434_v48  ;;  %v1740_v14 = vrot.slane %v1609_v19, 4 }
 0x353   :  { %v1238_v48 = vadd.f32 %v1110_v59, %v921_v25  ;;  %v1475_v59 = vrot.slane %v1320_v46, 3  ;;  %v1237_v25 = vadd.f32 %v1108_v2, %v920_v13  ;;  %v566_v13 = vpop.f32.mrf.mxu1 }
 0x354   :  { %v4442_v41 = vsel %vm3799_vm9, %v4441_v42, %v4437_v9  ;;  %v3776_v12 = vmul.f32 0.0, %v9021_v33  ;;  %v1741_v9 = vrot.slane %v1610_v1, 4  ;;  %v9436_v42 = vrot.slane %v6835_v60, 1 }
 0x355   :  { %v7113_v38 = vsel %vm9064_vm10, %v4442_v41, %v6607_v10  ;;  %v1637_v33 = vmul.f32 %v5027_v63, %v554_v50  ;;  %v1555_v11 = vadd.f32 %v1427_v3, %v1238_v48  ;;  %v9439_v60 = vrot.slane %v6853_v4, 2  ;;  %v7162_v26 = vpop.permute.xlu1 %2168 }
 0x356   :  { %v4557_v45 = vrot.slane %v3776_v12, %v6579_v31  ;;  %2020 = vadd.xlane.f32.xlu1 %v2019_v43  ;;  %v843_v23 = vsel %vm749_vm0, %v841_v53, %v9436_v42  ;;  %v1744_v1 = vsel %vm1700_vm3, %v1741_v9, %v9438_v27  ;;  %v1554_v50 = vadd.f32 %v1425_v57, %v1237_v25 }
 0x357   :  { %v944_v22 = vadd.f32 %v843_v23, %v627_v39  ;;  %v1160_v43 = vsel %vm1066_vm1, %v1158_v0, %v9439_v60  ;;  %v1742_v39 = vsel %vm1700_vm3, %v1740_v14, %v1741_v9  ;;  %v1477_v41 = vsel %vm1383_vm2, %v1475_v59, %v9440_v44  ;;  %9443 = vst [vmem:[#allocation69_spill] sm:$0xff] %v7162_v26 }
 0x358   :  { %v7126_v10 = vsel %vm3799_vm9, %v4557_v45, %v7047_v56  ;;  %v7137_v56 = vadd.f32 %v1744_v1, %v1555_v11  ;;  %v1792_v46 = vrot.slane %v1637_v33, 4  ;;  %v7145_v4 = vadd.f32 %v1742_v39, %v1554_v50  ;;  %v7160_v33 = vpop.permute.xlu0 %2214 }
 0x359   :  { %9437 = vst [vmem:[#allocation13_spill] sm:$0xff] %v7126_v10  ;;  %v1261_v53 = vadd.f32 %v1160_v43, %v944_v22  ;;  %9442 = vst [vmem:[#allocation67_spill] sm:$0xff] %v7160_v33  ;;  %v7166_v48 = vpop.permute.xlu1 %2216  ;;  %v7179_v42 = vadd.f32 %v566_v13, %v9240_v40  ;;  %v1953_v25 = vsel %vm1901_vm4, %v6571_v49, 0.0  ;;  %v2025_v60 = vsel %vm1901_vm4, %v6582_v17, 0.0 }
 0x35a   :  { %v1794_v19 = vsel %vm1700_vm3, %v1792_v46, %v9441_v37  ;;  %9445 = vst [vmem:[#allocation59_spill] sm:$0xff] %v7166_v48  ;;  %v1956_v9 = vsel %vm1901_vm4, %v7145_v4, 0.0  ;;  %v629_v39 = vmul.f32 %v5006_v55, %v6822_v52 }
 0x35b   :  { %v1578_v30 = vadd.f32 %v1477_v41, %v1261_v53  ;;  %v7184_v59 = vmul.f32 %v9244_v29, %v7179_v42  ;;  %v7196_v57 = vmul.f32 %v9248_v24, %v7179_v42  ;;  %v7213_v41 = vmul.f32 %v4996_v51, %v7179_v42 }
 0x35c   :  { %2514 = vrot.lane.b32.xlu0 %v6571_v49, %s4902_s11  ;;  %v7164_v12 = vpop.permute.xlu0 %2504 }
 0x35d   :  { %v1895_v0 = vadd.f32 %v1794_v19, %v1578_v30  ;;  %9444 = vst [vmem:[#allocation49_spill] sm:$0xff] %v7164_v12  ;;  %v7172_v45 = vpop.permute.xlu1 %2506  ;;  %v9029_v1 = vrot.slane %v7184_v59, 1  ;;  %v9028_v44 = vrot.slane %v7196_v57, 2  ;;  %v9453_v30 = vrot.slane %v6845_v16, 1 }
 0x35e   :  { %9447 = vst [vmem:[#allocation78_spill] sm:$0xff] %v7172_v45  ;;  %v7236_v16 = vmul.f32 %v5027_v63, %v7179_v42 }
 0x35f   :  { %v2028_v23 = vsel %vm1901_vm4, %v1895_v0, 0.0  ;;  %v847_v37 = vsel %vm749_vm0, %v9453_v30, %v9029_v1  ;;  %v9027_v30 = vrot.slane %v7213_v41, 3 }
 0x360   :  { %2518 = vrot.lane.b32.xlu0 %v7137_v56, %s4902_s11  ;;  %v7170_v3 = vpop.permute.xlu0 %2552 }
 0x361   :  { %9446 = vst [vmem:[#allocation50_spill] sm:$0xff] %v7170_v3  ;;  %v7186_v11 = vpop.permute.xlu1 %2554 }
 0x362   :  { %9449 = vst [vmem:[#allocation70_spill] sm:$0xff] %v7186_v11  ;;  %v575_v11 = vadd.f32 %v7168_v62, %v9240_v40 }
 0x364   :  { %2178 = vrot.lane.b32.xlu0 %v7145_v4, %s4901_s10  ;;  %v7176_v2 = vpop.xlane.xlu0 %1939  ;;  %v7332_v36 = vmul.f32 %v5006_v55, %v575_v11 }
 0x365   :  { %9448 = vst [vmem:[#allocation82_spill] sm:$0xff] %v7176_v2  ;;  %v9024_v22 = vmax.f32 %v7176_v2, 0.0 }
 0x367   :  { %2176 = vrot.lane.b32.xlu1 %v6571_v49, %s4901_s10  ;;  %v3753_v49 = vmul.f32 0.0, %v9024_v22 }
 0x368   :  { %2226 = vrot.lane.b32.xlu0 %v1895_v0, %s4901_s10  ;;  %v7191_v27 = vpop.xlane.xlu0 %2011 }
 0x369   :  { %9450 = vst [vmem:[#allocation84_spill] sm:$0xff] %v7191_v27  ;;  %v9022_v43 = vmax.f32 %v7191_v27, 0.0  ;;  %v4446_v19 = vrot.slane %v3753_v49, %v9414_v32 }
 0x36b   :  { %2224 = vrot.lane.b32.xlu1 %v6582_v17, %s4901_s10 }
 0x36c   :  { %2564 = vrot.lane.b32.xlu0 %v1895_v0, %s4902_s11  ;;  %v3777_v0 = vmul.f32 0.0, %v9022_v43  ;;  %v9455_v43 = vrot.slane %v6857_v20, 2  ;;  %v9457_v20 = vrot.slane %v6903_v18, 4 }
 0x36e   :  { %v4562_v49 = vrot.slane %v3777_v0, %v9414_v32  ;;  %v9026_v0 = vrot.slane %v7236_v16, 4 }
 0x38b   :  { %1957 = vadd.xlane.f32.xlu0 %v1956_v9  ;;  %v7227_v9 = vpop.permute.xlu0 %2502 }
 0x38c   :  { %9454 = vst [vmem:[#allocation98_spill] sm:$0xff] %v7227_v9 }
 0x38f   :  { %2029 = vadd.xlane.f32.xlu0 %v2028_v23  ;;  %1954 = vadd.xlane.f32.xlu1 %v1953_v25 }
 0x392   :  { %v7198_v14 = vpop.xlane.xlu1 %1942 }
 0x393   :  { %9451 = vst [vmem:[#allocation31_spill] sm:$0xff] %v7198_v14  ;;  %v9025_v50 = vmax.f32 %v7198_v14, 0.0  ;;  %2026 = vadd.xlane.f32.xlu1 %v2025_v60  ;;  %v946_v60 = vadd.f32 %v847_v37, %v629_v39  ;;  %v9456_v39 = vrot.slane %v6876_v61, 3 }
 0x395   :  { %v3754_v53 = vmul.f32 0.0, %v9025_v50  ;;  %v1481_v37 = vsel %vm1383_vm2, %v9456_v39, %v9027_v30 }
 0x396   :  { %v7215_v46 = vpop.xlane.xlu1 %2014 }
 0x397   :  { %9452 = vst [vmem:[#allocation97_spill] sm:$0xff] %v7215_v46  ;;  %v4450_v52 = vrot.slane %v3754_v53, %v9416_v6  ;;  %v9023_v13 = vmax.f32 %v7215_v46, 0.0 }
 0x399   :  { %v7230_v23 = vsel %vm2891_vm5, %v4450_v52, %v4446_v19  ;;  %v3778_v25 = vmul.f32 0.0, %v9023_v13  ;;  %v1164_v19 = vsel %vm1066_vm1, %v9455_v43, %v9028_v44  ;;  %v7249_v13 = vpop.permute.xlu0 %2174  ;;  %v1798_v43 = vsel %vm1700_vm3, %v9457_v20, %v9026_v0 }
 0x39a   :  { %v1263_v22 = vadd.f32 %v1164_v19, %v946_v60  ;;  %v7286_v19 = vpop.permute.xlu1 %2512 }
 0x39b   :  { %v4566_v53 = vrot.slane %v3778_v25, %v9416_v6  ;;  %9461 = vst [vmem:[#allocation102_spill] sm:$0xff] %v7286_v19  ;;  %v1959_v19 = vsel %vm1901_vm4, %v7137_v56, 0.0 }
 0x39c   :  { %v1580_v25 = vadd.f32 %v1481_v37, %v1263_v22  ;;  %v4765_v37 = vpop.f32.mrf.mxu0 }
 0x39d   :  { %v7247_v52 = vsel %vm2891_vm5, %v4566_v53, %v4562_v49  ;;  %v7262_v49 = vpop.permute.xlu0 %2222  ;;  %v466_v50 = vadd.f32 %v4765_v37, %v9240_v40  ;;  %v1962_v37 = vsel %vm1901_vm4, %v6896_v21, 0.0 }
 0x39e   :  { %9458 = vst [vmem:[#allocation99_spill] sm:$0xff] %v7262_v49  ;;  %v7268_v61 = vadd.f32 %v1798_v43, %v1580_v25  ;;  %v463_v25 = vadd.f32 %v6776_v5, %v9240_v40  ;;  %v7292_v20 = vpop.permute.xlu1 %2172  ;;  %v457_v0 = vpop.f32.mrf.mxu0 }
 0x39f   :  { %9463 = vst [vmem:[#allocation104_spill] sm:$0xff] %v7292_v20  ;;  %v4793_v5 = vpop.f32.mrf.mxu1  ;;  %v458_v49 = vadd.f32 %v457_v0, %v9240_v40  ;;  %v664_v2 = vmul.f32 %v9244_v29, %v466_v50  ;;  %v981_v10 = vmul.f32 %v9248_v24, %v466_v50 }
 0x3a0   :  { %v7298_v30 = vmul.f32 %v9244_v29, %v463_v25  ;;  %v7301_v44 = vmul.f32 %v9248_v24, %v463_v25  ;;  %v7304_v1 = vmul.f32 %v4996_v51, %v463_v25  ;;  %v7315_v27 = vmul.f32 %v5027_v63, %v463_v25 }
 0x3a1   :  { %v7270_v60 = vpop.xlane.xlu0 %1951  ;;  %v7340_v0 = vmul.f32 %v9244_v29, %v458_v49  ;;  %v578_v14 = vadd.f32 %v4793_v5, %v9240_v40  ;;  %v2034_v9 = vsel %vm1901_vm4, %v7268_v61, 0.0  ;;  %v7354_v5 = vmul.f32 %v4996_v51, %v575_v11 }
 0x3a2   :  { %v7318_v3 = vpop.permute.xlu1 %2220  ;;  %v798_v62 = vrot.slane %v7298_v30, 1 }
 0x3a3   :  { %9466 = vst [vmem:[#allocation107_spill] sm:$0xff] %v7318_v3  ;;  %v7335_v3 = vmul.f32 %v9248_v24, %v575_v11  ;;  %v796_v45 = vrot.slane %v7340_v0, 1 }
 0x3a4   :  { %2180 = vrot.lane.b32.xlu1 %v7137_v56, %s4901_s10  ;;  %v7357_v56 = vmul.f32 %v5027_v63, %v575_v11 }
 0x3a5   :  { %2182 = vrot.lane.b32.xlu0 %v6896_v21, %s4901_s10  ;;  %v7280_v18 = vpop.xlane.xlu0 %2023  ;;  %v799_v20 = vsel %vm749_vm0, %v796_v45, %v798_v62 }
 0x3a8   :  { %2228 = vrot.lane.b32.xlu1 %v6937_v54, %s4901_s10 }
 0x3a9   :  { %2230 = vrot.lane.b32.xlu0 %v7268_v61, %s4901_s10  ;;  %v7282_v22 = vpop.permute.xlu0 %2170 }
 0x3aa   :  { %9459 = vst [vmem:[#allocation100_spill] sm:$0xff] %v7282_v22 }
 0x3ac   :  { %2566 = vrot.lane.b32.xlu1 %v6937_v54, %s4902_s11 }
 0x3ad   :  { %2520 = vrot.lane.b32.xlu0 %v6896_v21, %s4902_s11  ;;  %v7284_v53 = vpop.permute.xlu0 %2218  ;;  %v7325_v21 = vmul.f32 %v9244_v29, %v575_v11  ;;  %v1298_v11 = vmul.f32 %v4996_v51, %v466_v50 }
 0x3ae   :  { %9460 = vst [vmem:[#allocation101_spill] sm:$0xff] %v7284_v53  ;;  %v800_v53 = vrot.slane %v664_v2, 1  ;;  %v1117_v2 = vrot.slane %v981_v10, 2  ;;  %v1326_v10 = vmul.f32 %v4996_v51, %v578_v14 }
 0x3b1   :  { %v7288_v39 = vpop.permute.xlu0 %2508 }
 0x3b2   :  { %9462 = vst [vmem:[#allocation103_spill] sm:$0xff] %v7288_v39  ;;  %v7362_v39 = vmul.f32 %v9248_v24, %v458_v49 }
 0x3b5   :  { %v7294_v43 = vpop.permute.xlu0 %2558 }
 0x3b6   :  { %9464 = vst [vmem:[#allocation105_spill] sm:$0xff] %v7294_v43  ;;  %v608_v43 = vmul.f32 %v5006_v55, %v463_v25  ;;  %v7329_v25 = vmul.f32 %v5006_v55, %v6790_v58 }
 0x3cb   :  { %v7309_v46 = vpop.xlane.xlu0 %1945 }
 0x3cc   :  { %9465 = vst [vmem:[#allocation106_spill] sm:$0xff] %v7309_v46  ;;  %v9036_v47 = vmax.f32 %v7309_v46, 0.0  ;;  %1963 = vadd.xlane.f32.xlu0 %v1962_v37  ;;  %v569_v37 = vpop.f32.mrf.mxu1  ;;  %v850_v46 = vrot.slane %v7325_v21, 1 }
 0x3cd   :  { %v570_v48 = vadd.f32 %v569_v37, %v9240_v40  ;;  %v692_v40 = vmul.f32 %v9244_v29, %v578_v14  ;;  %v801_v37 = vsel %vm749_vm0, %v798_v62, %v800_v53  ;;  %v1113_v53 = vrot.slane %v7362_v39, 2 }
 0x3ce   :  { %v3755_v30 = vmul.f32 0.0, %v9036_v47  ;;  %v925_v12 = vadd.f32 %v801_v37, %v608_v43  ;;  %v9469_v39 = vrot.slane %v7301_v44, 2 }
 0x3cf   :  { %v7345_v58 = vpop.xlane.xlu0 %2017  ;;  %v7386_v0 = vmul.f32 %v9244_v29, %v570_v48  ;;  %v1434_v29 = vrot.slane %v1298_v11, 3  ;;  %v7410_v43 = vmul.f32 %v9248_v24, %v570_v48 }
 0x3d0   :  { %9467 = vst [vmem:[#allocation108_spill] sm:$0xff] %v7345_v58  ;;  %v4455_v33 = vrot.slane %v3755_v30, %v9417_v28  ;;  %v9038_v47 = vmax.f32 %v7345_v58, 0.0  ;;  %2035 = vadd.xlane.f32.xlu0 %v2034_v9  ;;  %1960 = vadd.xlane.f32.xlu1 %v1959_v19  ;;  %v7364_v30 = vpop.permute.xlu1 %2510  ;;  %v2031_v19 = vsel %vm1901_vm4, %v6937_v54, 0.0  ;;  %v1009_v58 = vmul.f32 %v9248_v24, %v578_v14 }
 0x3d1   :  { %9468 = vst [vmem:[#allocation109_spill] sm:$0xff] %v7364_v30  ;;  %v1615_v30 = vmul.f32 %v5027_v63, %v466_v50  ;;  %v607_v54 = vmul.f32 %v5006_v55, %v458_v49  ;;  %v1118_v22 = vsel %vm1066_vm1, %v9469_v39, %v1117_v2  ;;  %v7423_v24 = vmul.f32 %v5027_v63, %v570_v48 }
 0x3d2   :  { %v7368_v9 = vsel %vm2898_vm6, %v4455_v33, %v7230_v23  ;;  %v3779_v21 = vmul.f32 0.0, %v9038_v47  ;;  %v7382_v47 = vmul.f32 %v4996_v51, %v458_v49  ;;  %v7396_v23 = vmul.f32 %v5027_v63, %v578_v14 }
 0x3d3   :  { %v1751_v26 = vrot.slane %v1615_v30, 4  ;;  %v9040_v14 = vrot.slane %v7386_v0, 1  ;;  %v1486_v30 = vrot.slane %v1326_v10, 3  ;;  %v924_v11 = vadd.f32 %v799_v20, %v607_v54 }
 0x3d4   :  { %v4571_v33 = vrot.slane %v3779_v21, %v9417_v28  ;;  %2032 = vadd.xlane.f32.xlu1 %v2031_v19  ;;  %v852_v21 = vrot.slane %v692_v40, 1  ;;  %v7400_v19 = vmul.f32 %v5027_v63, %v458_v49  ;;  %v7402_v15 = vpop.permute.xlu1 %2556  ;;  %v1169_v40 = vrot.slane %v1009_v58, 2 }
 0x3d5   :  { %v7414_v49 = vmul.f32 %v4996_v51, %v570_v48  ;;  %v1242_v2 = vadd.f32 %v1118_v22, %v925_v12  ;;  %v1116_v58 = vsel %vm1066_vm1, %v1113_v53, %v9469_v39  ;;  %v9470_v51 = vrot.slane %v7304_v1, 3 }
 0x3d6   :  { %v7393_v50 = vsel %vm2898_vm6, %v4571_v33, %v7247_v52  ;;  %v853_v37 = vsel %vm749_vm0, %v850_v46, %v852_v21  ;;  %v1803_v33 = vrot.slane %v7396_v23, 4  ;;  %v631_v52 = vmul.f32 %v5006_v55, %v570_v48 }
 0x3d7   :  { %v1435_v20 = vsel %vm1383_vm2, %v9470_v51, %v1434_v29  ;;  %v1749_v54 = vrot.slane %v7315_v27, 4  ;;  %v851_v44 = vsel %vm749_vm0, %v9040_v14, %v850_v46  ;;  %v9471_v22 = vrot.slane %v6801_v34, 1 }
 0x3d8   :  { %v9472_v48 = vmax.f32 %v7270_v60, 0.0  ;;  %v9048_v21 = vmax.f32 %v7280_v18, 0.0  ;;  %v1241_v27 = vadd.f32 %v1116_v58, %v924_v11  ;;  %v1559_v51 = vadd.f32 %v1435_v20, %v1242_v2 }
 0x3d9   :  { %v797_v63 = vsel %vm749_vm0, %v9471_v22, %v796_v45  ;;  %v9473_v23 = vrot.slane %v7304_v1, 3  ;;  %v9474_v46 = vrot.slane %v7382_v47, 3  ;;  %v1747_v45 = vrot.slane %v7400_v19, 4 }
 0x3da   :  { %v3757_v10 = vmul.f32 0.0, %v9472_v48  ;;  %v1752_v48 = vsel %vm1700_vm3, %v1749_v54, %v1751_v26  ;;  %v949_v14 = vadd.f32 %v853_v37, %v7332_v36  ;;  %v948_v29 = vadd.f32 %v851_v44, %v631_v52  ;;  %v9478_v52 = vld [vmem:[#allocation88_spill] sm:$0xff] }
 0x3db   :  { %v7425_v62 = vpop.xlane.xlu1 %1948  ;;  %v1433_v34 = vsel %vm1383_vm2, %v9474_v46, %v9473_v23  ;;  %v923_v11 = vadd.f32 %v797_v63, %v7329_v25  ;;  %v9475_v1 = vrot.slane %v7335_v3, 2  ;;  %v9477_v19 = vrot.slane %v7410_v43, 2 }
 0x3dc   :  { %v9058_v12 = vmax.f32 %v7425_v62, 0.0  ;;  %v4465_v26 = vrot.slane %v3757_v10, %v9421_v35  ;;  %v3781_v36 = vmul.f32 0.0, %v9048_v21  ;;  %v1558_v25 = vadd.f32 %v1433_v34, %v1241_v27  ;;  %v9534_v21 = vld [vmem:[#allocation67_spill] sm:$0xff] }
 0x3dd   :  { %v1170_v20 = vsel %vm1066_vm1, %v9475_v1, %v1169_v40  ;;  %v9476_v23 = vmov %v9475_v1  ;;  %v9479_v37 = vrot.slane %v9478_v52, 2  ;;  %v1876_v40 = vadd.f32 %v1752_v48, %v1559_v51 }
 0x3de   :  { %v3756_v39 = vmul.f32 0.0, %v9058_v12  ;;  %v1168_v46 = vsel %vm1066_vm1, %v9477_v19, %v9476_v23  ;;  %v1266_v1 = vadd.f32 %v1170_v20, %v949_v14  ;;  %v9480_v10 = vrot.slane %v7354_v5, 3  ;;  %v9574_v12 = vld [vmem:[#allocation107_spill] sm:$0xff] }
 0x3df   :  { %v7451_v22 = vpop.xlane.xlu1 %2020  ;;  %v1114_v44 = vsel %vm1066_vm1, %v9479_v37, %v1113_v53  ;;  %v1265_v19 = vadd.f32 %v1168_v46, %v948_v29  ;;  %v1801_v53 = vrot.slane %v7357_v56, 4  ;;  %v4581_v14 = vrot.slane %v3781_v36, %v9421_v35  ;;  %v9484_v36 = vld [vmem:[#allocation32_spill] sm:$0xff]  ;;  %v9486_v37 = vld [vmem:[#allocation91_spill] sm:$0xff] }
 0x3e0   :  { %v4460_v58 = vrot.slane %v3756_v39, %v9419_v8  ;;  %v9056_v2 = vmax.f32 %v7451_v22, 0.0  ;;  %v1750_v39 = vsel %vm1700_vm3, %v1747_v45, %v1749_v54  ;;  %v1487_v23 = vsel %vm1383_vm2, %v9480_v10, %v1486_v30 }
 0x3e1   :  { %v1799_v54 = vrot.slane %v7423_v24, 4  ;;  %v1240_v29 = vadd.f32 %v1114_v44, %v923_v11  ;;  %v1583_v56 = vadd.f32 %v1487_v23, %v1266_v1  ;;  %v1875_v48 = vadd.f32 %v1750_v39, %v1558_v25 }
 0x3e2   :  { %v4461_v63 = vsel %vm2905_vm7, %v4460_v58, %v7368_v9  ;;  %v3780_v3 = vmul.f32 0.0, %v9056_v2  ;;  %v9481_v9 = vmov %v9480_v10  ;;  %v9482_v58 = vrot.slane %v7414_v49, 3 }
 0x3e3   :  { %v4466_v27 = vsel %vm4407_vm8, %v4465_v26, %v4461_v63  ;;  %v1804_v46 = vsel %vm1700_vm3, %v1801_v53, %v1803_v33  ;;  %v1802_v24 = vsel %vm1700_vm3, %v1799_v54, %v1801_v53  ;;  %v9483_v26 = vrot.slane %v7382_v47, 3  ;;  %v7517_v63 = vpop.permute.xlu1 %2176 }
 0x3e4   :  { %v4576_v34 = vrot.slane %v3780_v3, %v9419_v8  ;;  %v1485_v51 = vsel %vm1383_vm2, %v9482_v58, %v9481_v9  ;;  %v9485_v52 = vrot.slane %v9484_v36, 3  ;;  %v9487_v44 = vrot.slane %v9486_v37, 4  ;;  %v7537_v58 = vpop.permute.xlu0 %2514 }
 0x3e5   :  { %2516 = vrot.lane.b32.xlu1 %v7145_v4, %s4902_s11  ;;  %v1582_v5 = vadd.f32 %v1485_v51, %v1265_v19  ;;  %v1968_v3 = vsel %vm1901_vm4, %v1875_v48, 0.0  ;;  %v1971_v39 = vsel %vm1901_vm4, %v1876_v40, 0.0  ;;  %v630_v10 = vmul.f32 %v5006_v55, %v7179_v42 }
 0x3e6   :  { %2526 = vrot.lane.b32.xlu0 %v1876_v40, %s4902_s11  ;;  %v4577_v30 = vsel %vm2905_vm7, %v4576_v34, %v7393_v50  ;;  %v1431_v4 = vsel %vm1383_vm2, %v9485_v52, %v9483_v26  ;;  %v7505_v50 = vadd.f32 %v1804_v46, %v1583_v56  ;;  %v1748_v33 = vsel %vm1700_vm3, %v9487_v44, %v1747_v45 }
 0x3e7   :  { %v4582_v20 = vsel %vm4407_vm8, %v4581_v14, %v4577_v30  ;;  %v7507_v11 = vadd.f32 %v1802_v24, %v1582_v5  ;;  %v1557_v25 = vadd.f32 %v1431_v4, %v1240_v29  ;;  %v7521_v1 = vpop.permute.xlu1 %2224  ;;  %v9488_v34 = vrot.slane %v7386_v0, 1 }
 0x3e8   :  { %v2043_v45 = vsel %vm1901_vm4, %v7505_v50, 0.0  ;;  %v9489_v53 = vrot.slane %v7184_v59, 1  ;;  %v9490_v30 = vrot.slane %v7410_v43, 2  ;;  %v9491_v0 = vrot.slane %v7196_v57, 2  ;;  %v7561_v36 = vpop.permute.xlu0 %2518 }
 0x3e9   :  { %2188 = vrot.lane.b32.xlu1 %v1876_v40, %s4901_s10  ;;  %v1874_v47 = vadd.f32 %v1748_v33, %v1557_v25  ;;  %v9492_v26 = vrot.slane %v7414_v49, 3  ;;  %v9493_v43 = vrot.slane %v7213_v41, 3  ;;  %v9494_v4 = vrot.slane %v7236_v16, 4  ;;  %v9495_v25 = vld [vmem:[#allocation12_spill] sm:$0xff] }
 0x3ea   :  { %2186 = vrot.lane.b32.xlu0 %v1875_v48, %s4901_s10  ;;  %v849_v40 = vsel %vm749_vm0, %v9489_v53, %v9488_v34  ;;  %v1166_v59 = vsel %vm1066_vm1, %v9491_v0, %v9490_v30  ;;  %v2040_v33 = vsel %vm1901_vm4, %v7507_v11, 0.0  ;;  %vm9063_vm0 = vcmask 1044484  }
 0x3eb   :  { %v947_v14 = vadd.f32 %v849_v40, %v630_v10  ;;  %v1483_v57 = vsel %vm1383_vm2, %v9493_v43, %v9492_v26  ;;  %vm9062_vm1 = vcmask 1045509   ;;  %vm9061_vm2 = vcmask 1046534  }
 0x3ec   :  { %v7572_v49 = vpop.permute.xlu0 %2178 }
 0x3ed   :  { %2236 = vrot.lane.b32.xlu1 %v7505_v50, %s4901_s10  ;;  %v1264_v46 = vadd.f32 %v1166_v59, %v947_v14 }
 0x3ee   :  { %2234 = vrot.lane.b32.xlu0 %v7507_v11, %s4901_s10 }
 0x3ef   :  { %v1581_v52 = vadd.f32 %v1483_v57, %v1264_v46 }
 0x3f0   :  { %v7575_v37 = vpop.permute.xlu0 %2226 }
 0x3f2   :  { %2522 = vrot.lane.b32.xlu0 %v1874_v47, %s4902_s11 }
 0x411   :  { %1969 = vadd.xlane.f32.xlu0 %v1968_v3  ;;  %1972 = vadd.xlane.f32.xlu1 %v1971_v39 }
 0x415   :  { %2044 = vadd.xlane.f32.xlu1 %v2043_v45 }
 0x418   :  { %v7527_v23 = vpop.xlane.xlu1 %1954 }
 0x419   :  { %v9049_v19 = vmax.f32 %v7527_v23, 0.0 }
 0x41b   :  { %v3758_v9 = vmul.f32 0.0, %v9049_v19  ;;  %v2396_v19 = vsel %vm2286_vm12, %v9534_v21, 0.0 }
 0x41c   :  { %v7539_v51 = vpop.xlane.xlu1 %2026 }
 0x41d   :  { %v4470_v55 = vrot.slane %v3758_v9, %v6579_v31  ;;  %v9043_v42 = vmax.f32 %v7539_v51, 0.0 }
 0x41f   :  { %v4471_v29 = vsel %vm3799_vm9, %v4470_v55, %v4466_v27  ;;  %v3782_v56 = vmul.f32 0.0, %v9043_v42 }
 0x420   :  { %v7553_v5 = vsel %vm3112_vm11, %v4471_v29, %v7113_v38  ;;  %v1800_v38 = vsel %vm1700_vm3, %v9494_v4, %v1799_v54  ;;  %v7588_v3 = vpop.permute.xlu1 %2180  ;;  %vm9054_vm3 = vcmask 1047559  }
 0x421   :  { %v4586_v24 = vrot.slane %v3782_v56, %v6579_v31  ;;  %v1898_v41 = vadd.f32 %v1800_v38, %v1581_v52 }
 0x423   :  { %v7564_v27 = vsel %vm3799_vm9, %v4586_v24, %v4582_v20  ;;  %v7578_v20 = vpop.permute.xlu0 %2564  ;;  %v2037_v40 = vsel %vm1901_vm4, %v1898_v41, 0.0 }
 0x424   :  { %v7592_v45 = vpop.permute.xlu1 %2228 }
 0x426   :  { %2184 = vrot.lane.b32.xlu1 %v1874_v47, %s4901_s10 }
 0x427   :  { %2550 = vrot.lane.b32.xlu0 %v9495_v25, %s4902_s11  ;;  %v7580_v44 = vpop.xlane.xlu0 %1957 }
 0x428   :  { %v7599_v53 = vpop.permute.xlu1 %2566  ;;  %v9051_v9 = vmax.f32 %v7580_v44, 0.0 }
 0x42a   :  { %2232 = vrot.lane.b32.xlu1 %v1898_v41, %s4901_s10  ;;  %v3759_v0 = vmul.f32 0.0, %v9051_v9 }
 0x42b   :  { %v7582_v16 = vpop.xlane.xlu0 %2029 }
 0x42c   :  { %v4475_v26 = vrot.slane %v3759_v0, %v9414_v32 }
 0x42e   :  { %2524 = vrot.lane.b32.xlu1 %v1875_v48, %s4902_s11  ;;  %v1965_v48 = vsel %vm1901_vm4, %v1874_v47, 0.0  ;;  %v9044_v47 = vmax.f32 %v7582_v16, 0.0  ;;  %vm2640_vm4 = vcmask 37888  }
 0x42f   :  { %v7584_v54 = vpop.permute.xlu0 %2182 }
 0x430   :  { %v3783_v43 = vmul.f32 0.0, %v9044_v47 }
 0x433   :  { %v7590_v39 = vpop.permute.xlu0 %2230 }
 0x437   :  { %v7594_v10 = vpop.permute.xlu0 %2520 }
 0x446   :  { %2041 = vadd.xlane.f32.xlu0 %v2040_v33 }
 0x452   :  { %1966 = vadd.xlane.f32.xlu1 %v1965_v48  ;;  %v4591_v48 = vrot.slane %v3783_v43, %v9414_v32 }
 0x455   :  { %v7597_v34 = vpop.xlane.xlu0 %1963 }
 0x456   :  { %2038 = vadd.xlane.f32.xlu1 %v2037_v40  ;;  %v9046_v14 = vmax.f32 %v7597_v34, 0.0 }
 0x458   :  { %v3761_v29 = vmul.f32 0.0, %v9046_v14 }
 0x459   :  { %v7604_v55 = vpop.xlane.xlu0 %2035  ;;  %v7606_v30 = vpop.xlane.xlu1 %1960 }
 0x45a   :  { %v9057_v59 = vmax.f32 %v7606_v30, 0.0  ;;  %v9041_v56 = vmax.f32 %v7604_v55, 0.0  ;;  %v4484_v4 = vrot.slane %v3761_v29, %v9417_v28 }
 0x45c   :  { %2570 = vrot.lane.b32.xlu0 %v1898_v41, %s4902_s11  ;;  %v3760_v46 = vmul.f32 0.0, %v9057_v59  ;;  %v3785_v38 = vmul.f32 0.0, %v9041_v56  ;;  %v9531_v56 = vld [vmem:[#allocation59_spill] sm:$0xff] }
 0x45d   :  { %v7618_v24 = vpop.xlane.xlu1 %2032 }
 0x45e   :  { %v4479_v57 = vrot.slane %v3760_v46, %v9416_v6  ;;  %v9042_v52 = vmax.f32 %v7618_v24, 0.0  ;;  %v4600_v0 = vrot.slane %v3785_v38, %v9417_v28  ;;  %v9499_v38 = vld [vmem:[#allocation73_spill] sm:$0xff] }
 0x460   :  { %2572 = vrot.lane.b32.xlu0 %v7507_v11, %s4902_s11  ;;  %v4480_v25 = vsel %vm2891_vm5, %v4479_v57, %v4475_v26  ;;  %v3784_v41 = vmul.f32 0.0, %v9042_v52  ;;  %v9496_v11 = vld [vmem:[#allocation28_spill] sm:$0xff]  ;;  %v9497_v26 = vld [vmem:[#allocation38_spill] sm:$0xff]  ;;  %v9498_v57 = vld [vmem:[#allocation41_spill] sm:$0xff] }
 0x461   :  { %v7634_v33 = vsel %vm2898_vm6, %v4484_v4, %v4480_v25  ;;  %v2293_v43 = vsel %vm2286_vm12, %v9497_v26, 0.0  ;;  %v2287_v4 = vsel %vm2286_vm12, %v9498_v57, 0.0  ;;  %v9500_v25 = vld [vmem:[#allocation74_spill] sm:$0xff] }
 0x462   :  { %v4595_v40 = vrot.slane %v3784_v41, %v9416_v6  ;;  %v2299_v41 = vsel %vm2286_vm12, %v9500_v25, 0.0  ;;  %v9505_v57 = vld [vmem:[#allocation34_spill] sm:$0xff]  ;;  %v9506_v25 = vld [vmem:[#allocation23_spill] sm:$0xff] }
 0x464   :  { %v4596_v29 = vsel %vm2891_vm5, %v4595_v40, %v4591_v48  ;;  %v9502_v48 = vld [vmem:[#allocation45_spill] sm:$0xff] }
 0x465   :  { %v7641_v46 = vsel %vm2898_vm6, %v4600_v0, %v4596_v29  ;;  %v2312_v40 = vsel %vm2286_vm12, %v9502_v48, 0.0  ;;  %v9503_v0 = vld [vmem:[#allocation93_spill] sm:$0xff]  ;;  %v9508_v48 = vld [vmem:[#allocation86_spill] sm:$0xff] }
 0x466   :  { %v2318_v29 = vsel %vm2286_vm12, %v9503_v0, 0.0  ;;  %v2342_v0 = vsel %vm2286_vm12, %v7572_v49, 0.0 }
 0x467   :  { %2568 = vrot.lane.b32.xlu1 %v7268_v61, %s4902_s11  ;;  %v2296_v61 = vsel %vm2286_vm12, %v9499_v38, 0.0  ;;  %v7671_v38 = vpop.permute.xlu1 %2516 }
 0x46b   :  { %2560 = vrot.lane.b32.xlu1 %v9496_v11, %s4902_s11  ;;  %v9504_v11 = vld [vmem:[#allocation47_spill] sm:$0xff] }
 0x46c   :  { %v2290_v26 = vsel %vm2286_vm12, %v9504_v11, 0.0 }
 0x46f   :  { %2562 = vrot.lane.b32.xlu1 %v6582_v17, %s4902_s11  ;;  %v9501_v17 = vld [vmem:[#allocation57_spill] sm:$0xff] }
 0x473   :  { %2574 = vrot.lane.b32.xlu1 %v7505_v50, %s4902_s11  ;;  %v2306_v50 = vsel %vm2286_vm12, %v9501_v17, 0.0  ;;  %v7677_v17 = vpop.permute.xlu1 %2188 }
 0x477   :  { %v7687_v11 = vpop.permute.xlu1 %2236 }
 0x478   :  { %9510 = vst [vmem:[#allocation88_spill] sm:$0xff] %v7687_v11  ;;  %v9595_v11 = vld [vmem:[#allocation90_spill] sm:$0xff] }
 0x47f   :  { %2294 = vadd.xlane.f32.xlu0 %v2293_v43  ;;  %v2324_v43 = vsel %vm2286_vm12, %v7158_v7, 0.0 }
 0x483   :  { %2288 = vadd.xlane.f32.xlu0 %v2287_v4  ;;  %v2303_v4 = vsel %vm2302_vm13, %v9505_v57, 0.0 }
 0x487   :  { %2297 = vadd.xlane.f32.xlu0 %v2296_v61  ;;  %v2336_v61 = vsel %vm2286_vm12, %v7249_v13, 0.0 }
 0x48b   :  { %2300 = vadd.xlane.f32.xlu0 %v2299_v41  ;;  %v2315_v41 = vsel %vm2286_vm12, %v9506_v25, 0.0  ;;  %v9513_v25 = vld [vmem:[#allocation104_spill] sm:$0xff] }
 0x48f   :  { %2307 = vadd.xlane.f32.xlu0 %v2306_v50  ;;  %v9507_v50 = vld [vmem:[#allocation100_spill] sm:$0xff] }
 0x490   :  { %v2330_v7 = vsel %vm2286_vm12, %v9507_v50, 0.0 }
 0x493   :  { %2313 = vadd.xlane.f32.xlu0 %v2312_v40  ;;  %v2309_v40 = vsel %vm2286_vm12, %v9508_v48, 0.0  ;;  %v2339_v48 = vsel %vm2302_vm13, %v7517_v63, 0.0  ;;  %v9517_v63 = vld [vmem:[#allocation37_spill] sm:$0xff] }
 0x497   :  { %2319 = vadd.xlane.f32.xlu0 %v2318_v29  ;;  %2291 = vadd.xlane.f32.xlu1 %v2290_v26  ;;  %v9509_v29 = vld [vmem:[#allocation52_spill] sm:$0xff]  ;;  %v2348_v26 = vsel %vm2286_vm12, %v7584_v54, 0.0 }
 0x498   :  { %v2321_v13 = vsel %vm2302_vm13, %v9509_v29, 0.0  ;;  %v2345_v29 = vsel %vm2286_vm12, %v7588_v3, 0.0 }
 0x49b   :  { %2325 = vadd.xlane.f32.xlu0 %v2324_v43  ;;  %2304 = vadd.xlane.f32.xlu1 %v2303_v4  ;;  %v9511_v43 = vld [vmem:[#allocation69_spill] sm:$0xff]  ;;  %v7693_v4 = vpop.xlane.xlu1 %1972 }
 0x49c   :  { %v2327_v57 = vsel %vm2286_vm12, %v9511_v43, 0.0 }
 0x49f   :  { %2337 = vadd.xlane.f32.xlu0 %v2336_v61  ;;  %2316 = vadd.xlane.f32.xlu1 %v2315_v41  ;;  %v9512_v61 = vld [vmem:[#allocation48_spill] sm:$0xff]  ;;  %v2333_v41 = vsel %vm2286_vm12, %v9513_v25, 0.0  ;;  %v7699_v50 = vpop.xlane.xlu1 %2044  ;;  %v9518_v25 = vld [vmem:[#allocation55_spill] sm:$0xff] }
 0x4a0   :  { %v2625_v49 = vsel %vm2624_vm14, %v9512_v61, 0.0  ;;  %v9053_v42 = vmax.f32 %v7699_v50, 0.0 }
 0x4a3   :  { %2331 = vadd.xlane.f32.xlu0 %v2330_v7  ;;  %2310 = vadd.xlane.f32.xlu1 %v2309_v40  ;;  %v9514_v7 = vld [vmem:[#allocation18_spill] sm:$0xff]  ;;  %v9515_v40 = vld [vmem:[#allocation92_spill] sm:$0xff] }
 0x4a4   :  { %v2644_v54 = vsel %vm2624_vm14, %v9514_v7, 0.0  ;;  %v9519_v7 = vld [vmem:[#allocation49_spill] sm:$0xff] }
 0x4a7   :  { %2343 = vadd.xlane.f32.xlu0 %v2342_v0  ;;  %2322 = vadd.xlane.f32.xlu1 %v2321_v13  ;;  %v2647_v0 = vsel %vm2624_vm14, %v9515_v40, 0.0  ;;  %v2185_v13 = vpop.permute.xlu1 %2184 }
 0x4a8   :  { %v2351_v61 = vsel %vm2286_vm12, %v2185_v13, 0.0 }
 0x4ab   :  { %2349 = vadd.xlane.f32.xlu0 %v2348_v26  ;;  %2328 = vadd.xlane.f32.xlu1 %v2327_v57  ;;  %v9516_v26 = vld [vmem:[#allocation44_spill] sm:$0xff]  ;;  %v7711_v57 = vpop.permute.xlu0 %2526 }
 0x4ac   :  { %v2360_v43 = vsel %vm2286_vm12, %v9516_v26, 0.0  ;;  %v9522_v26 = vld [vmem:[#allocation94_spill] sm:$0xff] }
 0x4af   :  { %2626 = vadd.xlane.f32.xlu0 %v2625_v49  ;;  %2334 = vadd.xlane.f32.xlu1 %v2333_v41  ;;  %v2631_v49 = vsel %vm2624_vm14, %v9517_v63, 0.0  ;;  %v2628_v41 = vsel %vm2624_vm14, %v9518_v25, 0.0  ;;  %v2187_v3 = vpop.permute.xlu0 %2186 }
 0x4b3   :  { %2645 = vadd.xlane.f32.xlu0 %v2644_v54  ;;  %2340 = vadd.xlane.f32.xlu1 %v2339_v48  ;;  %v2662_v54 = vsel %vm2624_vm14, %v9519_v7, 0.0  ;;  %v9520_v48 = vld [vmem:[#allocation51_spill] sm:$0xff]  ;;  %v7724_v13 = vpop.permute.xlu0 %2234  ;;  %v9525_v7 = vld [vmem:[#allocation26_spill] sm:$0xff] }
 0x4b4   :  { %v2363_v40 = vsel %vm2286_vm12, %v9520_v48, 0.0  ;;  %v9526_v48 = vld [vmem:[#allocation15_spill] sm:$0xff] }
 0x4b7   :  { %2648 = vadd.xlane.f32.xlu0 %v2647_v0  ;;  %2346 = vadd.xlane.f32.xlu1 %v2345_v29  ;;  %v9521_v0 = vld [vmem:[#allocation36_spill] sm:$0xff] }
 0x4b8   :  { %v2366_v29 = vsel %vm2286_vm12, %v9521_v0, 0.0 }
 0x4bb   :  { %2361 = vadd.xlane.f32.xlu0 %v2360_v43  ;;  %2352 = vadd.xlane.f32.xlu1 %v2351_v61  ;;  %v2650_v43 = vsel %vm2624_vm14, %v9522_v26, 0.0  ;;  %v9523_v61 = vld [vmem:[#allocation89_spill] sm:$0xff]  ;;  %v2680_v26 = vsel %vm2624_vm14, %v7671_v38, 0.0 }
 0x4bc   :  { %v2381_v63 = vsel %vm2286_vm12, %v9523_v61, 0.0 }
 0x4bf   :  { %2632 = vadd.xlane.f32.xlu0 %v2631_v49  ;;  %2629 = vadd.xlane.f32.xlu1 %v2628_v41  ;;  %v9524_v49 = vld [vmem:[#allocation78_spill] sm:$0xff]  ;;  %v7732_v41 = vpop.permute.xlu0 %2522 }
 0x4c0   :  { %v2665_v25 = vsel %vm2624_vm14, %v9524_v49, 0.0 }
 0x4c3   :  { %2663 = vadd.xlane.f32.xlu0 %v2662_v54  ;;  %2364 = vadd.xlane.f32.xlu1 %v2363_v40  ;;  %v2653_v54 = vsel %vm2624_vm14, %v9525_v7, 0.0  ;;  %v2378_v40 = vsel %vm2286_vm12, %v9526_v48, 0.0  ;;  %v7738_v0 = vpop.xlane.xlu0 %1969 }
 0x4c4   :  { %v9045_v48 = vmax.f32 %v7738_v0, 0.0 }
 0x4c7   :  { %2367 = vadd.xlane.f32.xlu0 %v2366_v29  ;;  %2651 = vadd.xlane.f32.xlu1 %v2650_v43  ;;  %v7740_v29 = vpop.permute.xlu1 %2232  ;;  %v9527_v43 = vld [vmem:[#allocation71_spill] sm:$0xff]  ;;  %v7747_v49 = vpop.permute.xlu0 %2550 }
 0x4c8   :  { %v2634_v61 = vsel %vm2624_vm14, %v9527_v43, 0.0  ;;  %v9047_v43 = vmax.f32 %v7693_v4, 0.0 }
 0x4ca   :  { %v3764_v52 = vmul.f32 0.0, %v9047_v43 }
 0x4cb   :  { %2382 = vadd.xlane.f32.xlu0 %v2381_v63  ;;  %2666 = vadd.xlane.f32.xlu1 %v2665_v25  ;;  %v2354_v63 = vsel %vm2286_vm12, %v2187_v3, 0.0  ;;  %v9528_v25 = vld [vmem:[#allocation103_spill] sm:$0xff]  ;;  %v2683_v3 = vsel %vm2624_vm14, %v7561_v36, 0.0 }
 0x4cc   :  { %v2668_v7 = vsel %vm2624_vm14, %v9528_v25, 0.0  ;;  %v3763_v25 = vmul.f32 0.0, %v9045_v48 }
 0x4cf   :  { %2654 = vadd.xlane.f32.xlu0 %v2653_v54  ;;  %2379 = vadd.xlane.f32.xlu1 %v2378_v40  ;;  %v7751_v54 = vpop.permute.xlu1 %2524  ;;  %v9529_v40 = vld [vmem:[#allocation22_spill] sm:$0xff] }
 0x4d0   :  { %v2384_v38 = vsel %vm2286_vm12, %v9529_v40, 0.0  ;;  %v2399_v40 = vsel %vm2286_vm12, %v9531_v56, 0.0  ;;  %v4494_v56 = vrot.slane %v3763_v25, %v9421_v35 }
 0x4d3   :  { %2681 = vadd.xlane.f32.xlu0 %v2680_v26  ;;  %2635 = vadd.xlane.f32.xlu1 %v2634_v61  ;;  %v7757_v26 = vpop.xlane.xlu0 %2041 }
 0x4d4   :  { %9530 = vst [vmem:[#allocation32_spill] sm:$0xff] %v7757_v26 }
 0x4d7   :  { %2355 = vadd.xlane.f32.xlu0 %v2354_v63  ;;  %2669 = vadd.xlane.f32.xlu1 %v2668_v7  ;;  %v9052_v7 = vmax.f32 %v7757_v26, 0.0 }
 0x4d9   :  { %v3787_v43 = vmul.f32 0.0, %v9052_v7 }
 0x4db   :  { %2385 = vadd.xlane.f32.xlu0 %v2384_v38  ;;  %v7761_v61 = vpop.xlane.xlu1 %1966  ;;  %2684 = vadd.xlane.f32.xlu1 %v2683_v3  ;;  %v9532_v38 = vld [vmem:[#allocation75_spill] sm:$0xff] }
 0x4dc   :  { %v9050_v63 = vmax.f32 %v7761_v61, 0.0  ;;  %v2369_v3 = vsel %vm2286_vm12, %v9532_v38, 0.0  ;;  %v3788_v38 = vmul.f32 0.0, %v9053_v42  ;;  %v4610_v42 = vrot.slane %v3787_v43, %v9421_v35 }
 0x4de   :  { %v3762_v36 = vmul.f32 0.0, %v9050_v63  ;;  %v9535_v63 = vld [vmem:[#allocation17_spill] sm:$0xff] }
 0x4df   :  { %2400 = vadd.xlane.f32.xlu0 %v2399_v40  ;;  %v7776_v47 = vpop.xlane.xlu1 %2038  ;;  %2370 = vadd.xlane.f32.xlu1 %v2369_v3  ;;  %v2656_v9 = vsel %vm2624_vm14, %v9535_v63, 0.0  ;;  %v4499_v40 = vrot.slane %v3764_v52, %v6579_v31  ;;  %v9536_v63 = vld [vmem:[#allocation10_spill] sm:$0xff] }
 0x4e0   :  { %9533 = vst [vmem:[#allocation91_spill] sm:$0xff] %v7776_v47  ;;  %v4489_v48 = vrot.slane %v3762_v36, %v9419_v8  ;;  %v9055_v14 = vmax.f32 %v7776_v47, 0.0  ;;  %v2637_v52 = vsel %vm2624_vm14, %v9536_v63, 0.0 }
 0x4e2   :  { %v4490_v36 = vsel %vm2905_vm7, %v4489_v48, %v7634_v33  ;;  %v3786_v25 = vmul.f32 0.0, %v9055_v14  ;;  %v2686_v33 = vsel %vm2624_vm14, %v7594_v10, 0.0  ;;  %v4615_v48 = vrot.slane %v3788_v38, %v6579_v31 }
 0x4e3   :  { %2657 = vadd.xlane.f32.xlu0 %v2656_v9  ;;  %v4495_v3 = vsel %vm4407_vm8, %v4494_v56, %v4490_v36  ;;  %2397 = vadd.xlane.f32.xlu1 %v2396_v19  ;;  %v9537_v56 = vld [vmem:[#allocation19_spill] sm:$0xff]  ;;  %v9538_v36 = vld [vmem:[#allocation13_spill] sm:$0xff] }
 0x4e4   :  { %v4500_v21 = vsel %vm3799_vm9, %v4499_v40, %v4495_v3  ;;  %v4605_v7 = vrot.slane %v3786_v25, %v9419_v8  ;;  %v9539_v25 = vld [vmem:[#allocation54_spill] sm:$0xff]  ;;  %v9541_v3 = vld [vmem:[#allocation109_spill] sm:$0xff] }
 0x4e5   :  { %v4619_v9 = vsel %vm9065_vm15, %v4500_v21, %v7553_v5  ;;  %v2671_v21 = vsel %vm2624_vm14, %v9541_v3, 0.0  ;;  %v9550_v3 = vld [vmem:[#allocation8_spill] sm:$0xff] }
 0x4e6   :  { %v4606_v19 = vsel %vm2905_vm7, %v4605_v7, %v7641_v46  ;;  %v4620_v40 = vsel %vm9063_vm0, %v9537_v56, %v4619_v9  ;;  %v2701_v46 = vsel %vm2624_vm14, %v9539_v25, 0.0  ;;  %v9545_v56 = vld [vmem:[#allocation25_spill] sm:$0xff]  ;;  %v9549_v25 = vld [vmem:[#allocation11_spill] sm:$0xff]  ;;  %vm3820_vm0 = vcmask 720512  }
 0x4e7   :  { %2687 = vadd.xlane.f32.xlu0 %v2686_v33  ;;  %2638 = vadd.xlane.f32.xlu1 %v2637_v52  ;;  %v4611_v43 = vsel %vm4407_vm8, %v4610_v42, %v4606_v19  ;;  %v4621_v10 = vsel %vm9062_vm1, %v9538_v36, %v4620_v40  ;;  %v9542_v42 = vld [vmem:[#allocation77_spill] sm:$0xff]  ;;  %v9543_v52 = vld [vmem:[#allocation62_spill] sm:$0xff]  ;;  %v2417_v19 = vsel %vm2286_vm12, %v7592_v45, 0.0  ;;  %v2387_v40 = vsel %vm2286_vm12, %v9545_v56, 0.0 }
 0x4e8   :  { %v4616_v5 = vsel %vm3799_vm9, %v4615_v48, %v4611_v43  ;;  %v4622_v38 = vsel %vm9061_vm2, %v7564_v27, %v4621_v10  ;;  %v2372_v63 = vsel %vm2286_vm12, %v9542_v42, 0.0  ;;  %v2698_v33 = vsel %vm2624_vm14, %v9543_v52, 0.0  ;;  %v9544_v27 = vld [vmem:[#allocation101_spill] sm:$0xff]  ;;  %v9546_v43 = vld [vmem:[#allocation98_spill] sm:$0xff]  ;;  %v9551_v42 = vld [vmem:[#allocation16_spill] sm:$0xff] }
 0x4e9   :  { %v7818_v7 = vsel %vm9054_vm3, %v4616_v5, %v4622_v38  ;;  %v2402_v9 = vsel %vm2286_vm12, %v9544_v27, 0.0  ;;  %v2357_v48 = vsel %vm2302_vm13, %v7677_v17, 0.0  ;;  %v2659_v36 = vsel %vm2640_vm4, %v9546_v43, 0.0  ;;  %v9547_v17 = vld [vmem:[#allocation46_spill] sm:$0xff]  ;;  %v7839_v38 = vpop.permute.xlu0 %2570  ;;  %v9554_v27 = vld [vmem:[#allocation60_spill] sm:$0xff]  ;;  %v9558_v43 = vld [vmem:[#allocation29_spill] sm:$0xff] }
 0x4ea   :  { %9540 = vst [vmem:[#allocation12_spill] sm:$0xff] %v7818_v7  ;;  %v2414_v10 = vsel %vm2286_vm12, %v7575_v37, 0.0  ;;  %v2872_v5 = vadd.s32 4294967288, %v9547_v17  ;;  %9548 = vst [vmem:[#allocation28_spill] sm:$0xff] %v7839_v38  ;;  %v2689_v45 = vsel %vm2624_vm14, %v7732_v41, 0.0  ;;  %v2716_v37 = vsel %vm2624_vm14, %v9551_v42, 0.0  ;;  %v7904_v38 = vpop.permute.xlu1 %2568 }
 0x4eb   :  { %2702 = vadd.xlane.f32.xlu0 %v2701_v46  ;;  %2672 = vadd.xlane.f32.xlu1 %v2671_v21  ;;  %v2641_v46 = vsel %vm2640_vm4, %v9549_v25, 0.0  ;;  %v9552_v52 = vld [vmem:[#allocation102_spill] sm:$0xff]  ;;  %vm2877_vm8 = vcmask 130112   ;;  %v9561_v25 = vld [vmem:[#allocation40_spill] sm:$0xff]  ;;  %vm2884_vm3 = vcmask 195712   ;;  %9581 = vst [vmem:[#allocation41_spill] sm:$0xff] %v7904_v38 }
 0x4ec   :  { %v7846_v21 = vsub.s32 %v2872_v5, %v9550_v3  ;;  %v9562_v42 = vld [vmem:[#allocation64_spill] sm:$0xff]  ;;  %vm9068_vm2 = vcmask 589312   ;;  %vm3813_vm1 = vcmask 654912  }
 0x4ed   :  { %v7856_v41 = vpop.permute.xlu0 %2572 }
 0x4ee   :  { %9553 = vst [vmem:[#allocation38_spill] sm:$0xff] %v7856_v41 }
 0x4ef   :  { %2373 = vadd.xlane.f32.xlu0 %v2372_v63  ;;  %2699 = vadd.xlane.f32.xlu1 %v2698_v33  ;;  %v7852_v63 = vsub.s32 %v9547_v17, %v9550_v3  ;;  %v2674_v33 = vsel %vm2624_vm14, %v9552_v52, 0.0 }
 0x4f3   :  { %2403 = vadd.xlane.f32.xlu0 %v2402_v9  ;;  %2358 = vadd.xlane.f32.xlu1 %v2357_v48  ;;  %v9555_v9 = vmax.f32 %v9554_v27, 0.0 }
 0x4f5   :  { %v2876_v48 = vrot.slane %v9555_v9, %v7846_v21 }
 0x4f7   :  { %2418 = vadd.xlane.f32.xlu0 %v2417_v19  ;;  %2388 = vadd.xlane.f32.xlu1 %v2387_v40  ;;  %v9556_v19 = vld [vmem:[#allocation30_spill] sm:$0xff] }
 0x4f8   :  { %v9557_v56 = vmax.f32 %v9556_v19, 0.0 }
 0x4fa   :  { %v2914_v40 = vrot.slane %v9557_v56, %v7846_v21  ;;  %v9566_v56 = vld [vmem:[#allocation39_spill] sm:$0xff] }
 0x4fb   :  { %2660 = vadd.xlane.f32.xlu0 %v2659_v36  ;;  %2415 = vadd.xlane.f32.xlu1 %v2414_v10  ;;  %v2375_v36 = vsel %vm2302_vm13, %v9558_v43, 0.0  ;;  %v9559_v10 = vld [vmem:[#allocation56_spill] sm:$0xff]  ;;  %v9567_v43 = vmax.f32 %v9566_v56, 0.0  ;;  %v2405_v56 = vsel %vm2286_vm12, %v9574_v12, 0.0 }
 0x4fc   :  { %v9560_v5 = vmax.f32 %v9559_v10, 0.0 }
 0x4fd   :  { %v3006_v10 = vrot.slane %v9567_v43, %v9414_v32 }
 0x4ff   :  { %2690 = vadd.xlane.f32.xlu0 %v2689_v45  ;;  %2642 = vadd.xlane.f32.xlu1 %v2641_v46  ;;  %v2871_v45 = vrot.slane %v9560_v5, %v7852_v63  ;;  %v2704_v46 = vsel %vm2624_vm14, %v9561_v25, 0.0 }
 0x501   :  { %v2878_v5 = vsel %vm2877_vm8, %v2876_v48, %v2871_v45  ;;  %v9575_v48 = vld [vmem:[#allocation76_spill] sm:$0xff] }
 0x502   :  { %v9576_v45 = vmax.f32 %v9575_v48, 0.0 }
 0x503   :  { %2717 = vadd.xlane.f32.xlu0 %v2716_v37  ;;  %2675 = vadd.xlane.f32.xlu1 %v2674_v33  ;;  %v9563_v37 = vmax.f32 %v9562_v42, 0.0  ;;  %v9564_v33 = vld [vmem:[#allocation20_spill] sm:$0xff]  ;;  %v9570_v42 = vld [vmem:[#allocation43_spill] sm:$0xff] }
 0x504   :  { %v9565_v27 = vmax.f32 %v9564_v33, 0.0  ;;  %v9572_v33 = vld [vmem:[#allocation66_spill] sm:$0xff]  ;;  %v2890_v43 = vrot.slane %v9576_v45, %v9416_v6 }
 0x505   :  { %v2997_v52 = vrot.slane %v9563_v37, %v7852_v63  ;;  %v9571_v37 = vmax.f32 %v9570_v42, 0.0  ;;  %v9579_v42 = vld [vmem:[#allocation87_spill] sm:$0xff] }
 0x506   :  { %v2910_v9 = vrot.slane %v9565_v27, %v7852_v63 }
 0x507   :  { %2376 = vadd.xlane.f32.xlu0 %v2375_v36  ;;  %2705 = vadd.xlane.f32.xlu1 %v2704_v46  ;;  %v9568_v36 = vld [vmem:[#allocation21_spill] sm:$0xff]  ;;  %v2883_v2 = vrot.slane %v9571_v37, %v9414_v32  ;;  %v9573_v46 = vmax.f32 %v9572_v33, 0.0  ;;  %v9580_v37 = vmax.f32 %v9579_v42, 0.0  ;;  %v9582_v33 = vld [vmem:[#allocation96_spill] sm:$0xff] }
 0x508   :  { %v7877_v19 = vpop.xlane.xlu0 %2294  ;;  %v9569_v25 = vmax.f32 %v9568_v36, 0.0  ;;  %v2915_v59 = vsel %vm2877_vm8, %v2914_v40, %v2910_v9  ;;  %v9577_v36 = vld [vmem:[#allocation24_spill] sm:$0xff]  ;;  %v2719_v40 = vsel %vm2624_vm14, %v9582_v33, 0.0 }
 0x509   :  { %v3001_v27 = vrot.slane %v9573_v46, %v7846_v21  ;;  %v2919_v41 = vrot.slane %v9580_v37, %v9414_v32  ;;  %v2885_v9 = vsel %vm2884_vm3, %v2883_v2, %v2878_v5  ;;  %v9583_v46 = vld [vmem:[#allocation79_spill] sm:$0xff] }
 0x50a   :  { %v3030_v14 = vrot.slane %v9569_v25, %v7846_v21  ;;  %v9578_v25 = vmax.f32 %v9577_v36, 0.0  ;;  %v9584_v48 = vmax.f32 %v9583_v46, 0.0  ;;  %v9585_v36 = vld [vmem:[#allocation81_spill] sm:$0xff]  ;;  %v9587_v37 = vld [vmem:[#allocation83_spill] sm:$0xff]  ;;  %v9591_v46 = vld [vmem:[#allocation42_spill] sm:$0xff] }
 0x50b   :  { %2406 = vadd.xlane.f32.xlu0 %v2405_v56  ;;  %v3002_v12 = vsel %vm2877_vm8, %v3001_v27, %v2997_v52  ;;  %2720 = vadd.xlane.f32.xlu1 %v2719_v40  ;;  %v9588_v38 = vmax.f32 %v9587_v37, 0.0  ;;  %v9589_v56 = vld [vmem:[#allocation14_spill] sm:$0xff]  ;;  %v2920_v2 = vsel %vm2884_vm3, %v2919_v41, %v2915_v59  ;;  %v9593_v40 = vld [vmem:[#allocation33_spill] sm:$0xff]  ;;  %v9596_v37 = vmax.f32 %v9595_v11, 0.0  ;;  %v9598_v41 = vld [vmem:[#allocation72_spill] sm:$0xff] }
 0x50c   :  { %v3026_v7 = vrot.slane %v9578_v25, %v7852_v63  ;;  %v3011_v45 = vrot.slane %v9584_v48, %v9416_v6  ;;  %v9586_v25 = vmax.f32 %v9585_v36, 0.0  ;;  %v7916_v42 = vpop.xlane.xlu0 %2288  ;;  %v9590_v52 = vmax.f32 %v9589_v56, 0.0 }
 0x50d   :  { %v3016_v33 = vrot.slane %v9588_v38, %v9417_v28  ;;  %v9592_v48 = vmax.f32 %v9591_v46, 0.0  ;;  %v3035_v38 = vrot.slane %v9596_v37, %v9414_v32  ;;  %v2677_v56 = vsel %vm2640_vm4, %v7537_v58, 0.0 }
 0x50e   :  { %v2897_v26 = vrot.slane %v9586_v25, %v9417_v28  ;;  %v2904_v27 = vrot.slane %v9590_v52, %v9419_v8  ;;  %v3031_v5 = vsel %vm2877_vm8, %v3030_v14, %v3026_v7  ;;  %v9594_v25 = vmax.f32 %v9593_v40, 0.0  ;;  %v9597_v14 = vld [vmem:[#allocation95_spill] sm:$0xff] }
 0x50f   :  { %v3021_v36 = vrot.slane %v9592_v48, %v9419_v8  ;;  %v2892_v52 = vsel %vm2891_vm5, %v2890_v43, %v2885_v9  ;;  %v3007_v59 = vsel %vm2884_vm3, %v3006_v10, %v3002_v12  ;;  %v2390_v7 = vsel %vm2286_vm12, %v9597_v14, 0.0  ;;  %2678 = vadd.xlane.f32.xlu0 %v2677_v56  ;;  %v9601_v9 = vld [vmem:[#allocation68_spill] sm:$0xff] }
 0x510   :  { %v2924_v47 = vrot.slane %v9594_v25, %v9416_v6  ;;  %v2707_v46 = vsel %vm2624_vm14, %v9598_v41, 0.0  ;;  %v3012_v48 = vsel %vm2891_vm5, %v3011_v45, %v3007_v59  ;;  %v3036_v40 = vsel %vm2884_vm3, %v3035_v38, %v3031_v5  ;;  %v9599_v25 = vld [vmem:[#allocation9_spill] sm:$0xff]  ;;  %2391 = vadd.xlane.f32.xlu1 %v2390_v7  ;;  %v7949_v43 = vpop.xlane.xlu0 %2297  ;;  %v9603_v45 = vld [vmem:[#allocation35_spill] sm:$0xff] }
 0x511   :  { %v9600_v58 = vmax.f32 %v9599_v25, 0.0  ;;  %v2899_v10 = vsel %vm2898_vm6, %v2897_v26, %v2892_v52  ;;  %v3017_v12 = vsel %vm2898_vm6, %v3016_v33, %v3012_v48  ;;  %v9602_v56 = vmax.f32 %v9601_v9, 0.0  ;;  %v9607_v7 = vld [vmem:[#allocation85_spill] sm:$0xff]  ;;  %v9608_v33 = vld [vmem:[#allocation80_spill] sm:$0xff] }
 0x512   :  { %v2925_v11 = vsel %vm2891_vm5, %v2924_v47, %v2920_v2  ;;  %v9604_v5 = vmax.f32 %v9603_v45, 0.0  ;;  %v7959_v47 = vpop.permute.xlu1 %2560  ;;  %v2906_v2 = vsel %vm2905_vm7, %v2904_v27, %v2899_v10  ;;  %v7963_v59 = vsel %vm2905_vm7, %v3021_v36, %v3017_v12  ;;  %v9610_v27 = vld [vmem:[#allocation27_spill] sm:$0xff] }
 0x513   :  { %v2934_v37 = vrot.slane %v9600_v58, %v9419_v8  ;;  %v3040_v14 = vrot.slane %v9602_v56, %v9416_v6  ;;  %9605 = vst [vmem:[#allocation73_spill] sm:$0xff] %v7959_v47  ;;  %9606 = vst [vmem:[#allocation74_spill] sm:$0xff] %v7963_v59  ;;  %v7967_v26 = vsel %vm2624_vm14, %v9607_v7, 0.0  ;;  %v7971_v52 = vsel %vm2640_vm4, %v9608_v33, 0.0  ;;  %2708 = vadd.xlane.f32.xlu0 %v2707_v46  ;;  %v9611_v58 = vld [vmem:[#allocation58_spill] sm:$0xff]  ;;  %v9613_v56 = vld [vmem:[#allocation31_spill] sm:$0xff] }
 0x514   :  { %v2929_v38 = vrot.slane %v9604_v5, %v9417_v28  ;;  %9609 = vst [vmem:[#allocation57_spill] sm:$0xff] %v7971_v52  ;;  %v2420_v25 = vsel %vm2286_vm12, %v7590_v39, 0.0  ;;  %v7979_v36 = vsel %vm2624_vm14, %v9610_v27, 0.0  ;;  %v9612_v10 = vmax.f32 %v9611_v58, 0.0  ;;  %v9616_v46 = vld [vmem:[#allocation63_spill] sm:$0xff]  ;;  %v9618_v7 = vld [vmem:[#allocation106_spill] sm:$0xff] }
 0x515   :  { %v3041_v48 = vsel %vm2891_vm5, %v3040_v14, %v3036_v40  ;;  %v9614_v45 = vmax.f32 %v9613_v56, 0.0  ;;  %2421 = vadd.xlane.f32.xlu1 %v2420_v25  ;;  %v7988_v40 = vpop.xlane.xlu0 %2300  ;;  %v9615_v14 = vld [vmem:[#allocation53_spill] sm:$0xff]  ;;  %v9617_v5 = vmax.f32 %v9616_v46, 0.0  ;;  %v9619_v33 = vmax.f32 %v9618_v7, 0.0  ;;  %v9620_v58 = vld [vmem:[#allocation50_spill] sm:$0xff] }
 0x516   :  { %v2930_v41 = vsel %vm2898_vm6, %v2929_v38, %v2925_v11  ;;  %v3045_v12 = vrot.slane %v9612_v10, %v9417_v28  ;;  %v2722_v39 = vsel %vm2624_vm14, %v9615_v14, 0.0  ;;  %v9623_v25 = vld [vmem:[#allocation82_spill] sm:$0xff]  ;;  %v9625_v46 = vmax.f32 %v7425_v62, 0.0  ;;  %v9626_v47 = vld [vmem:[#allocation65_spill] sm:$0xff] }
 0x517   :  { %v2935_v9 = vsel %vm2905_vm7, %v2934_v37, %v2930_v41  ;;  %v2943_v11 = vrot.slane %v9614_v45, %v7846_v21  ;;  %v3050_v38 = vrot.slane %v9617_v5, %v9419_v8  ;;  %v2948_v27 = vrot.slane %v9619_v33, %v9414_v32  ;;  %v9621_v41 = vld [vmem:[#allocation61_spill] sm:$0xff]  ;;  %v9627_v33 = vld [vmem:[#allocation84_spill] sm:$0xff] }
 0x518   :  { %v2734_v37 = vsel %vm2624_vm14, %v9620_v58, 0.0  ;;  %v8002_v10 = vsel %vm2624_vm14, %v9621_v41, 0.0  ;;  %v9624_v56 = vmax.f32 %v9623_v25, 0.0  ;;  %v3046_v14 = vsel %vm2898_vm6, %v3045_v12, %v3041_v48  ;;  %v9629_v59 = vld [vmem:[#allocation97_spill] sm:$0xff] }
 0x519   :  { %9622 = vst [vmem:[#allocation45_spill] sm:$0xff] %v8002_v10  ;;  %v2953_v5 = vrot.slane %v9625_v46, %v9416_v6  ;;  %v2393_v7 = vsel %vm2302_vm13, %v9626_v47, 0.0  ;;  %v9628_v58 = vmax.f32 %v9627_v33, 0.0  ;;  %v8017_v41 = vsel %vm9064_vm10, %v2935_v9, %v2906_v2  ;;  %v8022_v10 = vpop.permute.xlu1 %2562  ;;  %2735 = vadd.xlane.f32.xlu0 %v2734_v37  ;;  %v9631_v47 = vld [vmem:[#allocation108_spill] sm:$0xff]  ;;  %v8033_v33 = vpop.xlane.xlu0 %2307 }
 0x51a   :  { %v2939_v45 = vrot.slane %v9624_v56, %v7852_v63  ;;  %v9630_v25 = vmax.f32 %v9629_v59, 0.0  ;;  %v2692_v62 = vsel %vm2624_vm14, %v7751_v54, 0.0  ;;  %v9632_v12 = vmax.f32 %v9631_v47, 0.0  ;;  %v9634_v59 = vld [vmem:[#allocation99_spill] sm:$0xff] }
 0x51b   :  { %v3055_v52 = vrot.slane %v9628_v58, %v7852_v63  ;;  %v9633_v2 = vmax.f32 %v7606_v30, 0.0  ;;  %2693 = vadd.xlane.f32.xlu1 %v2692_v62  ;;  %v2408_v58 = vsel %vm2286_vm12, %v9634_v59, 0.0  ;;  %v9637_v30 = vmax.f32 %v7270_v60, 0.0 }
 0x51c   :  { %v3059_v56 = vrot.slane %v9630_v25, %v7846_v21  ;;  %v2944_v48 = vsel %vm2877_vm8, %v2943_v11, %v2939_v45  ;;  %v3064_v46 = vrot.slane %v9632_v12, %v9414_v32  ;;  %v8038_v25 = vsel %vm2905_vm7, %v3050_v38, %v3046_v14  ;;  %v9636_v45 = vld [vmem:[#allocation70_spill] sm:$0xff] }
 0x51d   :  { %v2972_v9 = vrot.slane %v9633_v2, %v7846_v21  ;;  %v2949_v54 = vsel %vm2884_vm3, %v2948_v27, %v2944_v48  ;;  %v9635_v11 = vmax.f32 %v7451_v22, 0.0  ;;  %v2737_v47 = vsel %vm2624_vm14, %v9636_v45, 0.0  ;;  %2394 = vadd.xlane.f32.xlu0 %v2393_v7  ;;  %v8072_v45 = vpop.xlane.xlu0 %2313 }
 0x51e   :  { %v2958_v62 = vrot.slane %v9637_v30, %v9417_v28  ;;  %v2954_v12 = vsel %vm2891_vm5, %v2953_v5, %v2949_v54  ;;  %v9638_v2 = vmax.f32 %v7580_v44, 0.0  ;;  %v9639_v27 = vmax.f32 %v7527_v23, 0.0  ;;  %v9641_v5 = vld [vmem:[#allocation105_spill] sm:$0xff]  ;;  %v8081_v30 = vpop.permute.xlu1 %2574 }
 0x51f   :  { %v3069_v37 = vrot.slane %v9635_v11, %v9416_v6  ;;  %v9640_v22 = vmax.f32 %v7280_v18, 0.0  ;;  %v3060_v59 = vsel %vm2877_vm8, %v3059_v56, %v3055_v52  ;;  %v2740_v60 = vsel %vm2624_vm14, %v7402_v15, 0.0  ;;  %2723 = vadd.xlane.f32.xlu1 %v2722_v39 }
 0x520   :  { %v2968_v38 = vrot.slane %v9638_v2, %v7852_v63  ;;  %v2963_v14 = vrot.slane %v9639_v27, %v9419_v8  ;;  %v8066_v54 = vsel %vm2624_vm14, %v9641_v5, 0.0  ;;  %v3065_v44 = vsel %vm2884_vm3, %v3064_v46, %v3060_v59 }
 0x521   :  { %v8059_v48 = vrot.slane %v9640_v22, %v9417_v28  ;;  %v3801_v11 = vadd.s32 4294967232, %v9547_v17  ;;  %v3808_v18 = vadd.s32 4294967224, %v9547_v17  ;;  %v8075_v52 = vsel %vm2891_vm5, %v3069_v37, %v3065_v44  ;;  %v8113_v5 = vpop.xlane.xlu0 %2319 }
 0x522   :  { %v2973_v23 = vsel %vm2877_vm8, %v2972_v9, %v2968_v38  ;;  %v2959_v15 = vsel %vm2898_vm6, %v2958_v62, %v2954_v12  ;;  %v9642_v7 = vmax.f32 %v7597_v34, 0.0  ;;  %v3815_v46 = vadd.s32 4294967216, %v9547_v17 }
 0x523   :  { %v8085_v9 = vsel %vm2905_vm7, %v2963_v14, %v2959_v15  ;;  %v9643_v39 = vmax.f32 %v7582_v16, 0.0  ;;  %v9644_v37 = vmax.f32 %v7539_v51, 0.0  ;;  %v2423_v34 = vsel %vm2286_vm12, %v7740_v29, 0.0  ;;  %2738 = vadd.xlane.f32.xlu1 %v2737_v47 }
 0x524   :  { %v2977_v56 = vrot.slane %v9642_v7, %v9414_v32  ;;  %2424 = vadd.xlane.f32.xlu0 %v2423_v34  ;;  %v3822_v12 = vadd.s32 4294967208, %v9547_v17  ;;  %v2695_v27 = vsel %vm2640_vm4, %v7711_v57, 0.0  ;;  %v2755_v16 = vsel %vm2624_vm14, %v7599_v53, 0.0 }
 0x525   :  { %v3084_v2 = vrot.slane %v9643_v39, %v7852_v63  ;;  %v8093_v38 = vrot.slane %v9644_v37, %v9419_v8  ;;  %v9645_v14 = vmax.f32 %v7618_v24, 0.0  ;;  %v8107_v22 = vsub.s32 %v3801_v11, %v9550_v3  ;;  %v2292_v11 = vpop.xlane.xlu1 %2291 }
 0x526   :  { %v2978_v62 = vsel %vm2884_vm3, %v2977_v56, %v2973_v23  ;;  %v2432_v29 = vmax.f32 %v7916_v42, 0.0  ;;  %v8111_v59 = vsub.s32 %v3808_v18, %v9550_v3  ;;  %v9646_v57 = vmax.f32 %v7761_v61, 0.0  ;;  %v8135_v56 = vpop.xlane.xlu0 %2325 }
 0x527   :  { %v3088_v51 = vrot.slane %v9645_v14, %v7846_v21  ;;  %v2434_v53 = vmax.f32 %v7877_v19, 0.0  ;;  %v2435_v24 = vmax.f32 %v7949_v43, 0.0  ;;  %v8121_v23 = vsub.s32 %v3815_v46, %v9550_v3  ;;  %2409 = vadd.xlane.f32.xlu1 %v2408_v58 }
 0x528   :  { %v2982_v44 = vrot.slane %v9646_v57, %v9416_v6  ;;  %v9647_v42 = vmax.f32 %v7738_v0, 0.0  ;;  %v2433_v47 = vmax.f32 %v2292_v11, 0.0  ;;  %v2436_v15 = vmax.f32 %v7988_v40, 0.0  ;;  %2711 = vadd.xlane.f32.xlu0 %v7967_v26 }
 0x529   :  { %v8128_v61 = vsub.s32 %v3822_v12, %v9550_v3  ;;  %vm3827_vm10 = vcmask 786112   ;;  %v3182_v19 = vrot.slane %v2432_v29, %v7852_v63  ;;  %v3793_v43 = vrot.slane %v2432_v29, %v9421_v35  ;;  %v2305_v26 = vpop.xlane.xlu1 %2304 }
 0x52a   :  { %v2987_v18 = vrot.slane %v9647_v42, %v9417_v28  ;;  %v3186_v7 = vrot.slane %v2433_v47, %v7846_v21  ;;  %v3798_v0 = vrot.slane %v2433_v47, %v6579_v31  ;;  %v2983_v40 = vsel %vm2891_vm5, %v2982_v44, %v2978_v62  ;;  %v8152_v47 = vpop.xlane.xlu0 %2337 }
 0x52b   :  { %v3191_v46 = vrot.slane %v2434_v53, %v9414_v32  ;;  %v3805_v39 = vrot.slane %v2434_v53, %v8107_v22  ;;  %v3196_v37 = vrot.slane %v2435_v24, %v9416_v6  ;;  %v3812_v34 = vrot.slane %v2435_v24, %v8111_v59  ;;  %2696 = vadd.xlane.f32.xlu1 %v2695_v27 }
 0x52c   :  { %v3187_v12 = vsel %vm2877_vm8, %v3186_v7, %v3182_v19  ;;  %v3800_v14 = vsel %vm3799_vm9, %v3798_v0, %v3793_v43  ;;  %v2437_v29 = vmax.f32 %v2305_v26, 0.0  ;;  %v3201_v58 = vrot.slane %v2436_v15, %v9417_v28  ;;  %2741 = vadd.xlane.f32.xlu0 %v2740_v60 }
 0x52d   :  { %v3819_v57 = vrot.slane %v2436_v15, %v8121_v23  ;;  %v3192_v62 = vsel %vm2884_vm3, %v3191_v46, %v3187_v12  ;;  %v3807_v44 = vsel %vm9068_vm2, %v3805_v39, %v3800_v14  ;;  %v3089_v19 = vsel %vm2877_vm8, %v3088_v51, %v3084_v2  ;;  %v2317_v60 = vpop.xlane.xlu1 %2316 }
 0x52e   :  { %v3197_v53 = vsel %vm2891_vm5, %v3196_v37, %v3192_v62  ;;  %v3206_v11 = vrot.slane %v2437_v29, %v9419_v8  ;;  %v3814_v24 = vsel %vm3813_vm1, %v3812_v34, %v3807_v44  ;;  %v3826_v42 = vrot.slane %v2437_v29, %v8128_v61 }
 0x52f   :  { %v2988_v15 = vsel %vm2898_vm6, %v2987_v18, %v2983_v40  ;;  %v3202_v43 = vsel %vm2898_vm6, %v3201_v58, %v3197_v53  ;;  %v3821_v7 = vsel %vm3820_vm0, %v3819_v57, %v3814_v24  ;;  %v9648_v0 = vmax.f32 %v7604_v55, 0.0  ;;  %2726 = vadd.xlane.f32.xlu1 %v7979_v36 }
 0x530   :  { %v9649_v39 = vmax.f32 %v7693_v4, 0.0  ;;  %v8165_v27 = vsel %vm2905_vm7, %v3206_v11, %v3202_v43  ;;  %v8168_v2 = vsel %vm3827_vm10, %v3826_v42, %v3821_v7  ;;  %v3113_v51 = vsel %vm3112_vm11, %v8085_v9, %v8017_v41  ;;  %2756 = vadd.xlane.f32.xlu0 %v2755_v16  ;;  %v8184_v41 = vpop.xlane.xlu0 %2331 }
 0x531   :  { %v3093_v46 = vrot.slane %v9648_v0, %v9414_v32  ;;  %v2752_v18 = vsel %vm2624_vm14, %v7578_v20, 0.0  ;;  %v2411_v55 = vsel %vm2302_vm13, %v7521_v1, 0.0  ;;  %v3075_v4 = vsel %vm2898_vm6, %v8059_v48, %v8075_v52  ;;  %v2311_v48 = vpop.xlane.xlu1 %2310 }
 0x532   :  { %v2992_v37 = vrot.slane %v9649_v39, %v9419_v8  ;;  %v2438_v34 = vmax.f32 %v8033_v33, 0.0  ;;  %v8188_v20 = vsel %vm2905_vm7, %v8093_v38, %v3075_v4  ;;  %v2440_v1 = vmax.f32 %v8072_v45, 0.0  ;;  %v9651_v38 = vld [vmem:[#allocation88_spill] sm:$0xff]  ;;  %v9654_v4 = vld [vmem:[#allocation45_spill] sm:$0xff] }
 0x533   :  { %v3094_v26 = vsel %vm2884_vm3, %v3093_v46, %v3089_v19  ;;  %v2442_v9 = vmax.f32 %v8113_v5, 0.0  ;;  %v2441_v16 = vmax.f32 %v2317_v60, 0.0  ;;  %v2426_v52 = vsel %vm2286_vm12, %v7724_v13, 0.0  ;;  %v9652_v5 = vld [vmem:[#allocation91_spill] sm:$0xff]  ;;  %2753 = vadd.xlane.f32.xlu1 %v2752_v18 }
 0x534   :  { %v2993_v40 = vsel %vm2905_vm7, %v2992_v37, %v2988_v15  ;;  %v9650_v33 = vmax.f32 %v7699_v50, 0.0  ;;  %v2439_v36 = vmax.f32 %v2311_v48, 0.0  ;;  %v8201_v14 = vsel %vm2640_vm4, %v7747_v49, 0.0  ;;  %2427 = vadd.xlane.f32.xlu0 %v2426_v52  ;;  %v8219_v11 = vpop.xlane.xlu0 %2343 }
 0x535   :  { %v8205_v45 = vsel %vm2302_vm13, %v9651_v38, 0.0  ;;  %v9653_v29 = vmax.f32 %v9652_v5, 0.0  ;;  %v4040_v13 = vadd.s32 4294967201, %v9547_v17  ;;  %v8212_v50 = vadd.s32 4294967193, %v9547_v17  ;;  %v2323_v43 = vpop.xlane.xlu1 %2322 }
 0x536   :  { %v8197_v12 = vrot.slane %v9650_v33, %v9419_v8  ;;  %v3115_v57 = vsel %vm9065_vm15, %v2993_v40, %v3113_v51  ;;  %v3211_v62 = vrot.slane %v2438_v34, %v7852_v63  ;;  %v3832_v49 = vrot.slane %v2438_v34, %v9421_v35 }
 0x537   :  { %v3098_v58 = vrot.slane %v9653_v29, %v9416_v6  ;;  %v3215_v44 = vrot.slane %v2439_v36, %v7846_v21  ;;  %v3836_v53 = vrot.slane %v2439_v36, %v6579_v31  ;;  %v3220_v24 = vrot.slane %v2440_v1, %v9414_v32  ;;  %2412 = vadd.xlane.f32.xlu1 %v2411_v55 }
 0x538   :  { %v3841_v42 = vrot.slane %v2440_v1, %v8107_v22  ;;  %v3230_v19 = vrot.slane %v2442_v9, %v9417_v28  ;;  %v3225_v15 = vrot.slane %v2441_v16, %v9416_v6  ;;  %v3846_v7 = vrot.slane %v2441_v16, %v8111_v59  ;;  %2729 = vadd.xlane.f32.xlu0 %v9654_v4  ;;  %v8237_v48 = vpop.xlane.xlu0 %2349 }
 0x539   :  { %v3216_v60 = vsel %vm2877_vm8, %v3215_v44, %v3211_v62  ;;  %v3837_v0 = vsel %vm3799_vm9, %v3836_v53, %v3832_v49  ;;  %v2443_v46 = vmax.f32 %v2323_v43, 0.0  ;;  %v3851_v39 = vrot.slane %v2442_v9, %v8121_v23  ;;  %v9655_v9 = vld [vmem:[#allocation32_spill] sm:$0xff]  ;;  %v2329_v5 = vpop.xlane.xlu1 %2328  ;;  %v9657_v44 = vld [vmem:[#allocation41_spill] sm:$0xff] }
 0x53a   :  { %v2444_v37 = vmax.f32 %v8135_v56, 0.0  ;;  %v3221_v51 = vsel %vm2884_vm3, %v3220_v24, %v3216_v60  ;;  %v3842_v18 = vsel %vm9068_vm2, %v3841_v42, %v3837_v0  ;;  %v9656_v56 = vmax.f32 %v9655_v9, 0.0  ;;  %v9660_v42 = vld [vmem:[#allocation74_spill] sm:$0xff]  ;;  %v9662_v0 = vld [vmem:[#allocation57_spill] sm:$0xff]  ;;  %v9664_v9 = vld [vmem:[#allocation28_spill] sm:$0xff] }
 0x53b   :  { %v3226_v40 = vsel %vm2891_vm5, %v3225_v15, %v3221_v51  ;;  %v3235_v34 = vrot.slane %v2443_v46, %v9419_v8  ;;  %v3847_v1 = vsel %vm3813_vm1, %v3846_v7, %v3842_v18  ;;  %v3856_v16 = vrot.slane %v2443_v46, %v8128_v61  ;;  %2714 = vadd.xlane.f32.xlu1 %v9662_v0 }
 0x53c   :  { %v3103_v52 = vrot.slane %v9656_v56, %v9417_v28  ;;  %v2446_v33 = vmax.f32 %v8184_v41, 0.0  ;;  %v3231_v36 = vsel %vm2898_vm6, %v3230_v19, %v3226_v40  ;;  %v3852_v38 = vsel %vm3820_vm0, %v3851_v39, %v3847_v1 }
 0x53d   :  { %v3236_v29 = vsel %vm2905_vm7, %v3235_v34, %v3231_v36  ;;  %v3857_v62 = vsel %vm3827_vm10, %v3856_v16, %v3852_v38  ;;  %v2445_v49 = vmax.f32 %v2329_v5, 0.0  ;;  %v2758_v55 = vsel %vm2624_vm14, %v9657_v44, 0.0  ;;  %v2335_v46 = vpop.xlane.xlu1 %2334  ;;  %v9666_v44 = vld [vmem:[#allocation38_spill] sm:$0xff] }
 0x53e   :  { %v3099_v53 = vsel %vm2891_vm5, %v3098_v58, %v3094_v26  ;;  %vm9658_vm12 = vcmask 1041409   ;;  %2759 = vadd.xlane.f32.xlu0 %v2758_v55  ;;  %vm9661_vm15 = vcmask 1044484   ;;  %v3240_v15 = vrot.slane %v2444_v37, %v7852_v63  ;;  %v8261_v26 = vpop.xlane.xlu0 %2626 }
 0x53f   :  { %v3411_v24 = vsel %vm9658_vm12, %v3236_v29, %v8165_v27  ;;  %vm9659_vm13 = vmmov %vm9658_vm12  ;;  %v3117_v19 = vsel %vm9661_vm15, %v9660_v42, %v3115_v57  ;;  %v3861_v43 = vrot.slane %v2444_v37, %v9421_v35  ;;  %v3244_v7 = vrot.slane %v2445_v49, %v7846_v21  ;;  %2744 = vadd.xlane.f32.xlu1 %v8066_v54 }
 0x540   :  { %v4032_v41 = vsel %vm9659_vm13, %v3857_v62, %v8168_v2  ;;  %v3865_v60 = vrot.slane %v2445_v49, %v6579_v31  ;;  %v2448_v27 = vmax.f32 %v8152_v47, 0.0  ;;  %v3249_v2 = vrot.slane %v2446_v33, %v9414_v32 }
 0x541   :  { %v3870_v58 = vrot.slane %v2446_v33, %v8107_v22  ;;  %v8267_v57 = vsub.s32 %v4040_v13, %v9550_v3  ;;  %v3245_v39 = vsel %vm2877_vm8, %v3244_v7, %v3240_v15  ;;  %v2447_v51 = vmax.f32 %v2335_v46, 0.0  ;;  %v2341_v33 = vpop.xlane.xlu1 %2340 }
 0x542   :  { %v3866_v37 = vsel %vm3799_vm9, %v3865_v60, %v3861_v43  ;;  %vm9067_vm15 = vcmask 909112   ;;  %v3104_v18 = vsel %vm2898_vm6, %v3103_v52, %v3099_v53  ;;  %v3250_v4 = vsel %vm2884_vm3, %v3249_v2, %v3245_v39  ;;  %2732 = vadd.xlane.f32.xlu0 %v8201_v14  ;;  %v2646_v16 = vpop.xlane.xlu0 %2645 }
 0x543   :  { %v3871_v47 = vsel %vm9068_vm2, %v3870_v58, %v3866_v37  ;;  %vm9663_vm12 = vcmask 1045509   ;;  %vm9066_vm13 = vcmask 392192   ;;  %v4052_v13 = vadd.s32 4294967185, %v9547_v17  ;;  %2430 = vadd.xlane.f32.xlu1 %v8205_v45 }
 0x544   :  { %v3119_v40 = vsel %vm9663_vm12, %v8038_v25, %v3117_v19  ;;  %v3254_v34 = vrot.slane %v2447_v51, %v9416_v6  ;;  %v3875_v1 = vrot.slane %v2447_v51, %v8111_v59  ;;  %v2761_v56 = vsel %vm2624_vm14, %v9664_v9, 0.0 }
 0x545   :  { %v8285_v52 = vsub.s32 %v8212_v50, %v9550_v3  ;;  %v3259_v14 = vrot.slane %v2448_v27, %v9417_v28  ;;  %v3880_v25 = vrot.slane %v2448_v27, %v8121_v23  ;;  %v2776_v36 = vmax.f32 %v2646_v16, 0.0  ;;  %v2347_v0 = vpop.xlane.xlu1 %2346 }
 0x546   :  { %v3109_v38 = vsel %vm2905_vm7, %v8197_v12, %v3104_v18  ;;  %v3255_v5 = vsel %vm2891_vm5, %v3254_v34, %v3250_v4  ;;  %v3876_v54 = vsel %vm3813_vm1, %v3875_v1, %v3871_v47  ;;  %v2449_v29 = vmax.f32 %v2341_v33, 0.0  ;;  %2762 = vadd.xlane.f32.xlu0 %v2761_v56  ;;  %v2649_v43 = vpop.xlane.xlu0 %2648 }
 0x547   :  { %vm9665_vm12 = vcmask 1046534   ;;  %v3260_v50 = vsel %vm2898_vm6, %v3259_v14, %v3255_v5  ;;  %v3881_v49 = vsel %vm3820_vm0, %v3880_v25, %v3876_v54  ;;  %v2764_v55 = vsel %vm2624_vm14, %v9666_v44, 0.0 }
 0x548   :  { %v3121_v62 = vsel %vm9665_vm12, %v8188_v20, %v3119_v40  ;;  %v8300_v53 = vsub.s32 %v4052_v13, %v9550_v3  ;;  %v2450_v12 = vmax.f32 %v8219_v11, 0.0  ;;  %v3264_v42 = vrot.slane %v2449_v29, %v9419_v8  ;;  %v9667_v20 = vld [vmem:[#allocation73_spill] sm:$0xff] }
 0x549   :  { %v3885_v19 = vrot.slane %v2449_v29, %v8128_v61  ;;  %v2746_v15 = vsel %vm2624_vm14, %v9667_v20, 0.0  ;;  %v2452_v7 = vmax.f32 %v8237_v48, 0.0  ;;  %v3505_v60 = vrot.slane %v2776_v36, %v7852_v63  ;;  %v2353_v16 = vpop.xlane.xlu1 %2352 }
 0x54a   :  { %v2777_v27 = vmax.f32 %v2649_v43, 0.0  ;;  %vm9668_vm12 = vcmask 1047559   ;;  %v3265_v11 = vsel %vm2905_vm7, %v3264_v42, %v3260_v50  ;;  %v4088_v46 = vrot.slane %v2776_v36, %v8267_v57  ;;  %2765 = vadd.xlane.f32.xlu0 %v2764_v55  ;;  %2747 = vadd.xlane.f32.xlu1 %v2746_v15  ;;  %v2362_v13 = vpop.xlane.xlu0 %2361 }
 0x54b   :  { %v8311_v2 = vsel %vm9668_vm12, %v3109_v38, %v3121_v62  ;;  %v3886_v58 = vsel %vm3827_vm10, %v3885_v19, %v3881_v49  ;;  %v2451_v45 = vmax.f32 %v2347_v0, 0.0  ;;  %v8317_v39 = vsel %vm3112_vm11, %v3265_v11, %v3411_v24 }
 0x54c   :  { %v8320_v37 = vsel %vm3112_vm11, %v3886_v58, %v4032_v41  ;;  %v3509_v48 = vrot.slane %v2777_v27, %v7846_v21  ;;  %v4092_v51 = vrot.slane %v2777_v27, %v8285_v52  ;;  %v3269_v18 = vrot.slane %v2450_v12, %v7852_v63 }
 0x54d   :  { %v3890_v4 = vrot.slane %v2450_v12, %v9421_v35  ;;  %v3273_v47 = vrot.slane %v2451_v45, %v7846_v21  ;;  %v3894_v40 = vrot.slane %v2451_v45, %v6579_v31  ;;  %v3278_v24 = vrot.slane %v2452_v7, %v9414_v32  ;;  %v2630_v50 = vpop.xlane.xlu1 %2629 }
 0x54e   :  { %v3899_v41 = vrot.slane %v2452_v7, %v8107_v22  ;;  %v3510_v34 = vsel %vm2877_vm8, %v3509_v48, %v3505_v60  ;;  %v4093_v1 = vsel %vm9067_vm15, %v4092_v51, %v4088_v46  ;;  %v2453_v14 = vmax.f32 %v2353_v16, 0.0  ;;  %v2633_v62 = vpop.xlane.xlu0 %2632 }
 0x54f   :  { %v3274_v9 = vsel %vm2877_vm8, %v3273_v47, %v3269_v18  ;;  %v3895_v56 = vsel %vm3799_vm9, %v3894_v40, %v3890_v4  ;;  %v3126_v25 = vsel %vm9066_vm13, %v8311_v2, 0.0  ;;  %v2770_v33 = vmax.f32 %v8261_v26, 0.0 }
 0x550   :  { %v3279_v36 = vsel %vm2884_vm3, %v3278_v24, %v3274_v9  ;;  %v3900_v38 = vsel %vm9068_vm2, %v3899_v41, %v3895_v56  ;;  %v2749_v5 = vsel %vm2640_vm4, %v8022_v10, 0.0  ;;  %3127 = vadd.xlane.f32.xlu0 %v3126_v25  ;;  %v3283_v54 = vrot.slane %v2453_v14, %v9416_v6 }
 0x551   :  { %v3904_v29 = vrot.slane %v2453_v14, %v8111_v59  ;;  %2750 = vadd.xlane.f32.xlu1 %v2749_v5  ;;  %v2772_v49 = vmax.f32 %v2633_v62, 0.0  ;;  %v2771_v55 = vmax.f32 %v2630_v50, 0.0  ;;  %vm4057_vm14 = vcmask 974712   ;;  %v2365_v0 = vpop.xlane.xlu1 %2364 }
 0x552   :  { %v8344_v44 = vsel %vm2891_vm5, %v3283_v54, %v3279_v36  ;;  %v2767_v10 = vsel %vm2640_vm4, %v8081_v30, 0.0  ;;  %v3476_v12 = vrot.slane %v2770_v33, %v7852_v63  ;;  %v4044_v20 = vrot.slane %v2770_v33, %v8267_v57  ;;  %v2664_v60 = vpop.xlane.xlu0 %2663 }
 0x553   :  { %v8347_v26 = vsel %vm3813_vm1, %v3904_v29, %v3900_v38  ;;  %v3485_v42 = vrot.slane %v2772_v49, %v9414_v32  ;;  %v4056_v19 = vrot.slane %v2772_v49, %v8300_v53  ;;  %v2456_v15 = vmax.f32 %v2362_v13, 0.0 }
 0x554   :  { %v3480_v43 = vrot.slane %v2771_v55, %v7846_v21  ;;  %v4049_v7 = vrot.slane %v2771_v55, %v8285_v52  ;;  %v2457_v11 = vmax.f32 %v2365_v0, 0.0  ;;  %v4059_v56 = vadd.s32 4294967177, %v9547_v17 }
 0x555   :  { %2768 = vadd.xlane.f32.xlu1 %v2767_v10  ;;  %v3298_v45 = vrot.slane %v2456_v15, %v7852_v63  ;;  %v3919_v48 = vrot.slane %v2456_v15, %v9421_v35  ;;  %v2652_v47 = vpop.xlane.xlu1 %2651  ;;  %v2782_v14 = vmax.f32 %v2664_v60, 0.0  ;;  %vm4064_vm4 = vcmask 1040312  }
 0x556   :  { %v3481_v27 = vsel %vm2877_vm8, %v3480_v43, %v3476_v12  ;;  %v4051_v30 = vsel %vm9067_vm15, %v4049_v7, %v4044_v20  ;;  %v3302_v51 = vrot.slane %v2457_v11, %v7846_v21  ;;  %v3923_v18 = vrot.slane %v2457_v11, %v6579_v31  ;;  %v2368_v4 = vpop.xlane.xlu0 %2367 }
 0x557   :  { %v3486_v58 = vsel %vm2884_vm3, %v3485_v42, %v3481_v27  ;;  %v4058_v46 = vsel %vm4057_vm14, %v4056_v19, %v4051_v30  ;;  %v2458_v40 = vmax.f32 %v2368_v4, 0.0  ;;  %v2778_v41 = vmax.f32 %v2652_v47, 0.0 }
 0x558   :  { %v3303_v13 = vsel %vm2877_vm8, %v3302_v51, %v3298_v45  ;;  %v3924_v24 = vsel %vm3799_vm9, %v3923_v18, %v3919_v48  ;;  %v8381_v55 = vsub.s32 %v4059_v56, %v9550_v3  ;;  %v3534_v10 = vrot.slane %v2782_v14, %v7852_v63 }
 0x559   :  { %v3307_v16 = vrot.slane %v2458_v40, %v9414_v32  ;;  %v3928_v9 = vrot.slane %v2458_v40, %v8107_v22  ;;  %v3514_v25 = vrot.slane %v2778_v41, %v9414_v32  ;;  %v4097_v33 = vrot.slane %v2778_v41, %v8300_v53  ;;  %v2667_v54 = vpop.xlane.xlu1 %2666 }
 0x55a   :  { %v2383_v36 = vpop.xlane.xlu0 %2382  ;;  %v2783_v49 = vmax.f32 %v2667_v54, 0.0  ;;  %v4121_v12 = vrot.slane %v2782_v14, %v8267_v57  ;;  %vm4071_vm12 = vcmask 1048568   ;;  %vm9669_vm13 = vcmask 1041409  }
 0x55b   :  { %v8373_v38 = vsel %vm2884_vm3, %v3307_v16, %v3303_v13  ;;  %v8376_v5 = vsel %vm9068_vm2, %v3928_v9, %v3924_v24  ;;  %v2463_v29 = vmax.f32 %v2383_v36, 0.0  ;;  %v3515_v62 = vsel %vm2884_vm3, %v3514_v25, %v3510_v34 }
 0x55c   :  { %v4098_v50 = vsel %vm4057_vm14, %v4097_v33, %v4093_v1  ;;  %v3538_v42 = vrot.slane %v2783_v49, %v7846_v21  ;;  %v4125_v19 = vrot.slane %v2783_v49, %v8285_v52 }
 0x55d   :  { %v3331_v15 = vrot.slane %v2463_v29, %v7846_v21  ;;  %v2380_v43 = vpop.xlane.xlu1 %2379  ;;  %v3952_v60 = vrot.slane %v2463_v29, %v6579_v31 }
 0x55e   :  { %v2655_v20 = vpop.xlane.xlu0 %2654  ;;  %v3539_v1 = vsel %vm2877_vm8, %v3538_v42, %v3534_v10  ;;  %v4126_v7 = vsel %vm9067_vm15, %v4125_v19, %v4121_v12  ;;  %v2462_v0 = vmax.f32 %v2380_v43, 0.0 }
 0x55f   :  { %v2779_v34 = vmax.f32 %v2655_v20, 0.0 }
 0x560   :  { %v3327_v11 = vrot.slane %v2462_v0, %v7852_v63  ;;  %v3948_v45 = vrot.slane %v2462_v0, %v9421_v35 }
 0x561   :  { %v3519_v27 = vrot.slane %v2779_v34, %v9416_v6  ;;  %v4102_v30 = vrot.slane %v2779_v34, %v8381_v55  ;;  %v2636_v4 = vpop.xlane.xlu1 %2635  ;;  %v4066_v34 = vadd.s32 4294967169, %v9547_v17 }
 0x562   :  { %v2682_v48 = vpop.xlane.xlu0 %2681  ;;  %v3332_v47 = vsel %vm2877_vm8, %v3331_v15, %v3327_v11  ;;  %v3953_v40 = vsel %vm3799_vm9, %v3952_v60, %v3948_v45  ;;  %v2773_v13 = vmax.f32 %v2636_v4, 0.0 }
 0x563   :  { %v8396_v51 = vsel %vm2891_vm5, %v3519_v27, %v3515_v62  ;;  %v4103_v18 = vsel %vm4064_vm4, %v4102_v30, %v4098_v50  ;;  %v2788_v29 = vmax.f32 %v2682_v48, 0.0 }
 0x564   :  { %v3490_v24 = vrot.slane %v2773_v13, %v9416_v6  ;;  %v4063_v41 = vrot.slane %v2773_v13, %v8381_v55  ;;  %v8439_v13 = vsub.s32 %v4066_v34, %v9550_v3 }
 0x565   :  { %v2670_v9 = vpop.xlane.xlu1 %2669  ;;  %v4154_v60 = vrot.slane %v2788_v29, %v8267_v57 }
 0x566   :  { %v2356_v16 = vpop.xlane.xlu0 %2355  ;;  %v8404_v14 = vsel %vm2891_vm5, %v3490_v24, %v3486_v58  ;;  %v8407_v25 = vsel %vm4064_vm4, %v4063_v41, %v4058_v46  ;;  %v2784_v33 = vmax.f32 %v2670_v9, 0.0 }
 0x567   :  { %v2454_v56 = vmax.f32 %v2356_v16, 0.0 }
 0x568   :  { %v3543_v62 = vrot.slane %v2784_v33, %v9414_v32  ;;  %v4130_v50 = vrot.slane %v2784_v33, %v8300_v53 }
 0x569   :  { %v3288_v36 = vrot.slane %v2454_v56, %v9417_v28  ;;  %v3909_v54 = vrot.slane %v2454_v56, %v8121_v23  ;;  %v2685_v46 = vpop.xlane.xlu1 %2684 }
 0x56a   :  { %v2386_v49 = vpop.xlane.xlu0 %2385  ;;  %v3544_v42 = vsel %vm2884_vm3, %v3543_v62, %v3539_v1  ;;  %v4131_v19 = vsel %vm4057_vm14, %v4130_v50, %v4126_v7  ;;  %v2789_v20 = vmax.f32 %v2685_v46, 0.0 }
 0x56b   :  { %v8415_v10 = vsel %vm2898_vm6, %v3288_v36, %v8344_v44  ;;  %v8419_v58 = vsel %vm3820_vm0, %v3909_v54, %v8347_v26  ;;  %v2464_v12 = vmax.f32 %v2386_v49, 0.0  ;;  %v3563_v44 = vrot.slane %v2788_v29, %v7852_v63 }
 0x56c   :  { %v3567_v26 = vrot.slane %v2789_v20, %v7846_v21  ;;  %v4158_v0 = vrot.slane %v2789_v20, %v8285_v52 }
 0x56d   :  { %v3336_v15 = vrot.slane %v2464_v12, %v9414_v32  ;;  %v3957_v43 = vrot.slane %v2464_v12, %v8107_v22  ;;  %v2371_v30 = vpop.xlane.xlu1 %2370 }
 0x56e   :  { %v2401_v27 = vpop.xlane.xlu0 %2400  ;;  %v3568_v45 = vsel %vm2877_vm8, %v3567_v26, %v3563_v44  ;;  %v4159_v48 = vsel %vm9067_vm15, %v4158_v0, %v4154_v60  ;;  %v2459_v4 = vmax.f32 %v2371_v30, 0.0 }
 0x56f   :  { %v8431_v1 = vsel %vm2884_vm3, %v3336_v15, %v3332_v47  ;;  %v8434_v7 = vsel %vm9068_vm2, %v3957_v43, %v3953_v40  ;;  %v2469_v11 = vmax.f32 %v2401_v27, 0.0 }
 0x570   :  { %v3312_v24 = vrot.slane %v2459_v4, %v9416_v6  ;;  %v3933_v41 = vrot.slane %v2459_v4, %v8111_v59 }
 0x571   :  { %v3360_v47 = vrot.slane %v2469_v11, %v7846_v21  ;;  %v2398_v9 = vpop.xlane.xlu1 %2397  ;;  %v3981_v36 = vrot.slane %v2469_v11, %v6579_v31 }
 0x572   :  { %v2658_v16 = vpop.xlane.xlu0 %2657  ;;  %v3313_v56 = vsel %vm2891_vm5, %v3312_v24, %v8373_v38  ;;  %v3934_v33 = vsel %vm3813_vm1, %v3933_v41, %v8376_v5  ;;  %v2468_v54 = vmax.f32 %v2398_v9, 0.0 }
 0x573   :  { %v8444_v40 = vmax.f32 %v2658_v16, 0.0 }
 0x574   :  { %v3356_v50 = vrot.slane %v2468_v54, %v7852_v63  ;;  %v3977_v49 = vrot.slane %v2468_v54, %v9421_v35 }
 0x575   :  { %v3524_v29 = vrot.slane %v8444_v40, %v9417_v28  ;;  %v4107_v62 = vrot.slane %v8444_v40, %v8439_v13  ;;  %v2639_v38 = vpop.xlane.xlu1 %2638 }
 0x576   :  { %v2688_v46 = vpop.xlane.xlu0 %2687  ;;  %v3361_v15 = vsel %vm2877_vm8, %v3360_v47, %v3356_v50  ;;  %v3982_v43 = vsel %vm3799_vm9, %v3981_v36, %v3977_v49  ;;  %v8464_v34 = vmax.f32 %v2639_v38, 0.0 }
 0x577   :  { %v4108_v12 = vsel %vm4071_vm12, %v4107_v62, %v4103_v18  ;;  %v2790_v20 = vmax.f32 %v2688_v46, 0.0  ;;  %v8460_v5 = vsel %vm2898_vm6, %v3524_v29, %v8396_v51 }
 0x578   :  { %v3495_v26 = vrot.slane %v8464_v34, %v9417_v28  ;;  %v4070_v18 = vrot.slane %v8464_v34, %v8439_v13 }
 0x579   :  { %v3572_v44 = vrot.slane %v2790_v20, %v9414_v32  ;;  %v4163_v60 = vrot.slane %v2790_v20, %v8300_v53  ;;  %v2673_v30 = vpop.xlane.xlu1 %2672 }
 0x57a   :  { %v2703_v0 = vpop.xlane.xlu0 %2702  ;;  %v4072_v4 = vsel %vm4071_vm12, %v4070_v18, %v8407_v25  ;;  %v2785_v24 = vmax.f32 %v2673_v30, 0.0  ;;  %v8482_v41 = vsel %vm2898_vm6, %v3495_v26, %v8404_v14 }
 0x57b   :  { %v8473_v51 = vsel %vm2884_vm3, %v3572_v44, %v3568_v45  ;;  %v8476_v27 = vsel %vm4057_vm14, %v4163_v60, %v4159_v48  ;;  %v2795_v11 = vmax.f32 %v2703_v0, 0.0  ;;  %v8485_v16 = vsel %vm9669_vm13, %v4108_v12, %v4072_v4 }
 0x57c   :  { %v3548_v47 = vrot.slane %v2785_v24, %v9416_v6  ;;  %v4135_v45 = vrot.slane %v2785_v24, %v8381_v55  ;;  %v4073_v0 = vadd.s32 1, %v9547_v17  ;;  %vm9670_vm13 = vcmask 1043459  }
 0x57d   :  { %v3596_v48 = vrot.slane %v2795_v11, %v7846_v21  ;;  %v2700_v36 = vpop.xlane.xlu1 %2699  ;;  %v4191_v14 = vrot.slane %v2795_v11, %v8285_v52 }
 0x57e   :  { %v2374_v9 = vpop.xlane.xlu0 %2373  ;;  %v8491_v29 = vsel %vm2891_vm5, %v3548_v47, %v3544_v42  ;;  %v8494_v25 = vsel %vm4064_vm4, %v4135_v45, %v4131_v19  ;;  %v2794_v62 = vmax.f32 %v2700_v36, 0.0 }
 0x57f   :  { %v2460_v54 = vmax.f32 %v2374_v9, 0.0 }
 0x580   :  { %v3592_v46 = vrot.slane %v2794_v62, %v7852_v63  ;;  %v4187_v12 = vrot.slane %v2794_v62, %v8267_v57 }
 0x581   :  { %v3317_v50 = vrot.slane %v2460_v54, %v9417_v28  ;;  %v3938_v49 = vrot.slane %v2460_v54, %v8121_v23  ;;  %v2359_v19 = vpop.xlane.xlu1 %2358 }
 0x582   :  { %v2404_v38 = vpop.xlane.xlu0 %2403  ;;  %v8508_v60 = vsel %vm2877_vm8, %v3596_v48, %v3592_v46  ;;  %v8511_v26 = vsel %vm9067_vm15, %v4191_v14, %v4187_v12  ;;  %v2455_v18 = vmax.f32 %v2359_v19, 0.0  ;;  %v8530_v14 = vsub.s32 %v4073_v0, %v9550_v3  ;;  %vm9671_vm15 = vmmov %vm9670_vm13 }
 0x583   :  { %v8502_v20 = vsel %vm2898_vm6, %v3317_v50, %v3313_v56  ;;  %v8505_v42 = vsel %vm3820_vm0, %v3938_v49, %v3934_v33  ;;  %v2470_v44 = vmax.f32 %v2404_v38, 0.0  ;;  %v4078_v56 = vadd.s32 4294967289, %v9547_v17 }
 0x584   :  { %v3293_v33 = vrot.slane %v2455_v18, %v9419_v8  ;;  %v3914_v4 = vrot.slane %v2455_v18, %v8128_v61 }
 0x585   :  { %v3365_v30 = vrot.slane %v2470_v44, %v9414_v32  ;;  %v3986_v11 = vrot.slane %v2470_v44, %v8107_v22  ;;  %v2389_v9 = vpop.xlane.xlu1 %2388  ;;  %v4112_v44 = vrot.slane %v8444_v40, %v8530_v14 }
 0x586   :  { %v2419_v24 = vpop.xlane.xlu0 %2418  ;;  %v3294_v36 = vsel %vm2905_vm7, %v3293_v33, %v8415_v10  ;;  %v3915_v54 = vsel %vm3827_vm10, %v3914_v4, %v8419_v58  ;;  %v2465_v17 = vmax.f32 %v2389_v9, 0.0 }
 0x587   :  { %v8520_v47 = vsel %vm2884_vm3, %v3365_v30, %v3361_v15  ;;  %v8523_v45 = vsel %vm9068_vm2, %v3986_v11, %v3982_v43  ;;  %v2475_v48 = vmax.f32 %v2419_v24, 0.0  ;;  %v3413_v62 = vsel %vm9670_vm13, %v3294_v36, %v8317_v39 }
 0x588   :  { %v4034_v15 = vsel %vm9671_vm15, %v3915_v54, %v8320_v37  ;;  %v8537_v43 = vsub.s32 %v4078_v56, %v9550_v3  ;;  %v3341_v50 = vrot.slane %v2465_v17, %v9416_v6  ;;  %v3962_v10 = vrot.slane %v2465_v17, %v8111_v59 }
 0x589   :  { %v3389_v58 = vrot.slane %v2475_v48, %v7846_v21  ;;  %v2416_v46 = vpop.xlane.xlu1 %2415  ;;  %vm4083_vm2 = vcmask 121912   ;;  %v4010_v37 = vrot.slane %v2475_v48, %v6579_v31  ;;  %v4077_v24 = vrot.slane %v8464_v34, %v8530_v14 }
 0x58a   :  { %v2661_v49 = vpop.xlane.xlu0 %2660  ;;  %v8544_v38 = vsel %vm2891_vm5, %v3341_v50, %v8431_v1  ;;  %v8548_v39 = vsel %vm3813_vm1, %v3962_v10, %v8434_v7  ;;  %v2474_v19 = vmax.f32 %v2416_v46, 0.0  ;;  %vm9672_vm15 = vcmask 1041409  }
 0x58b   :  { %v2781_v12 = vmax.f32 %v2661_v49, 0.0  ;;  %vm9674_vm13 = vcmask 1044484  }
 0x58c   :  { %v3385_v30 = vrot.slane %v2474_v19, %v7852_v63  ;;  %v4006_v11 = vrot.slane %v2474_v19, %v9421_v35 }
 0x58d   :  { %v3529_v18 = vrot.slane %v2781_v12, %v9419_v8  ;;  %v4116_v0 = vrot.slane %v2781_v12, %v8537_v43  ;;  %v2643_v31 = vpop.xlane.xlu1 %2642 }
 0x58e   :  { %v8557_v1 = vpop.xlane.xlu0 %2690  ;;  %v8563_v33 = vsel %vm2877_vm8, %v3389_v58, %v3385_v30  ;;  %v8566_v40 = vsel %vm3799_vm9, %v4010_v37, %v4006_v11  ;;  %v2775_v4 = vmax.f32 %v2643_v31, 0.0  ;;  %vm9673_vm9 = vmmov %vm9672_vm15 }
 0x58f   :  { %v3530_v7 = vsel %vm2905_vm7, %v3529_v18, %v8460_v5  ;;  %v4117_v56 = vsel %vm4083_vm2, %v4116_v0, %v4112_v44 }
 0x590   :  { %v3500_v35 = vrot.slane %v2775_v4, %v9419_v8  ;;  %v4082_v9 = vrot.slane %v2775_v4, %v8537_v43 }
 0x591   :  { %v2676_v5 = vpop.xlane.xlu1 %2675 }
 0x592   :  { %v8572_v48 = vpop.xlane.xlu0 %2717  ;;  %v3501_v36 = vsel %vm2905_vm7, %v3500_v35, %v8482_v41  ;;  %v4084_v54 = vsel %vm4083_vm2, %v4082_v9, %v4077_v24  ;;  %v2786_v17 = vmax.f32 %v2676_v5, 0.0 }
 0x593   :  { %v3705_v50 = vsel %vm9672_vm15, %v3530_v7, %v3501_v36  ;;  %v4323_v10 = vsel %vm9673_vm9, %v4117_v56, %v4084_v54  ;;  %vm9675_vm15 = vmmov %vm9674_vm13  ;;  %vm9677_vm9 = vcmask 1045509  }
 0x594   :  { %v4140_v49 = vrot.slane %v2786_v17, %v8439_v13  ;;  %v4145_v4 = vrot.slane %v2786_v17, %v8530_v14 }
 0x595   :  { %v8580_v58 = vpop.xlane.xlu1 %2705 }
 0x596   :  { %v2377_v34 = vpop.xlane.xlu0 %2376  ;;  %v4141_v12 = vsel %vm4071_vm12, %v4140_v49, %v8494_v25 }
 0x597   :  { %v2461_v46 = vmax.f32 %v2377_v34, 0.0  ;;  %v4317_v37 = vsel %vm3112_vm11, %v4141_v12, %v8485_v16  ;;  %v3553_v16 = vrot.slane %v2786_v17, %v9417_v28 }
 0x599   :  { %v3322_v41 = vrot.slane %v2461_v46, %v9419_v8  ;;  %v3943_v19 = vrot.slane %v2461_v46, %v8128_v61  ;;  %v8594_v30 = vpop.xlane.xlu1 %2720 }
 0x59a   :  { %v8588_v44 = vpop.xlane.xlu0 %2406 }
 0x59b   :  { %v3323_v18 = vsel %vm2905_vm7, %v3322_v41, %v8502_v20  ;;  %v3944_v0 = vsel %vm3827_vm10, %v3943_v19, %v8505_v42  ;;  %v2791_v42 = vmax.f32 %v8557_v1, 0.0 }
 0x59c   :  { %v3414_v11 = vsel %vm9674_vm13, %v3323_v18, %v3413_v62  ;;  %v4035_v25 = vsel %vm9675_vm15, %v3944_v0, %v4034_v15  ;;  %v3554_v62 = vsel %vm2898_vm6, %v3553_v16, %v8491_v29  ;;  %vm9678_vm13 = vmmov %vm9677_vm9 }
 0x59d   :  { %v2392_v56 = vpop.xlane.xlu1 %2391  ;;  %v4168_v1 = vrot.slane %v2791_v42, %v8381_v55 }
 0x59e   :  { %v2679_v7 = vpop.xlane.xlu0 %2678  ;;  %v2466_v17 = vmax.f32 %v2392_v56, 0.0 }
 0x59f   :  { %v2787_v31 = vmax.f32 %v2679_v7, 0.0  ;;  %v2796_v7 = vmax.f32 %v8580_v58, 0.0 }
 0x5a0   :  { %v3346_v29 = vrot.slane %v2466_v17, %v9417_v28  ;;  %v3967_v12 = vrot.slane %v2466_v17, %v8121_v23 }
 0x5a1   :  { %v3558_v24 = vrot.slane %v2787_v31, %v9419_v8  ;;  %v4149_v20 = vrot.slane %v2787_v31, %v8537_v43  ;;  %v8607_v9 = vpop.xlane.xlu1 %2421 }
 0x5a2   :  { %v8602_v35 = vpop.xlane.xlu0 %2708 }
 0x5a3   :  { %v3559_v15 = vsel %vm2905_vm7, %v3558_v24, %v3554_v62  ;;  %v4150_v5 = vsel %vm4083_vm2, %v4149_v20, %v4145_v4  ;;  %v3347_v4 = vsel %vm2898_vm6, %v3346_v29, %v8544_v38  ;;  %v3968_v24 = vsel %vm3820_vm0, %v3967_v12, %v8548_v39 }
 0x5a4   :  { %v8612_v36 = vsel %vm3112_vm11, %v3559_v15, %v3705_v50  ;;  %v8615_v54 = vsel %vm3112_vm11, %v4150_v5, %v4323_v10  ;;  %v4169_v50 = vsel %vm4064_vm4, %v4168_v1, %v8476_v27  ;;  %vm9676_vm11 = vcmask 1043459  }
 0x5a5   :  { %v2694_v34 = vpop.xlane.xlu1 %2693  ;;  %v2797_v27 = vmax.f32 %v8602_v35, 0.0  ;;  %v4196_v5 = vrot.slane %v2796_v7, %v8300_v53  ;;  %v2800_v29 = vmax.f32 %v8572_v48, 0.0 }
 0x5a6   :  { %v8617_v49 = vpop.xlane.xlu0 %2735  ;;  %v2792_v46 = vmax.f32 %v2694_v34, 0.0  ;;  %v3577_v34 = vrot.slane %v2791_v42, %v9416_v6 }
 0x5a7   :  { %v4201_v38 = vrot.slane %v2797_v27, %v8381_v55 }
 0x5a8   :  { %v4173_v41 = vrot.slane %v2792_v46, %v8439_v13 }
 0x5a9   :  { %v8625_v18 = vpop.xlane.xlu1 %2723 }
 0x5aa   :  { %v2395_v19 = vpop.xlane.xlu0 %2394  ;;  %v4174_v0 = vsel %vm4071_vm12, %v4173_v41, %v4169_v50  ;;  %v2471_v50 = vmax.f32 %v8588_v44, 0.0  ;;  %v2476_v44 = vmax.f32 %v8607_v9, 0.0  ;;  %v2802_v9 = vmax.f32 %v8625_v18, 0.0 }
 0x5ab   :  { %v2467_v10 = vmax.f32 %v2395_v19, 0.0  ;;  %v4318_v16 = vsel %vm9676_vm11, %v4174_v0, %v4317_v37  ;;  %v2801_v19 = vmax.f32 %v8594_v30, 0.0  ;;  %v3601_v30 = vrot.slane %v2796_v7, %v9414_v32 }
 0x5ac   :  { %v4015_v18 = vrot.slane %v2476_v44, %v8107_v22 }
 0x5ad   :  { %v3351_v56 = vrot.slane %v2467_v10, %v9419_v8  ;;  %v3972_v31 = vrot.slane %v2467_v10, %v8128_v61  ;;  %v2739_v15 = vpop.xlane.xlu1 %2738  ;;  %v3582_v10 = vrot.slane %v2792_v46, %v9417_v28 }
 0x5ae   :  { %v8637_v20 = vpop.xlane.xlu0 %2424 }
 0x5af   :  { %v3352_v62 = vsel %vm2905_vm7, %v3351_v56, %v3347_v4  ;;  %v3973_v58 = vsel %vm3827_vm10, %v3972_v31, %v3968_v24  ;;  %v3578_v56 = vsel %vm2891_vm5, %v3577_v34, %v8473_v51  ;;  %v3621_v31 = vrot.slane %v2800_v29, %v7852_v63 }
 0x5b0   :  { %v8642_v37 = vsel %vm9677_vm9, %v3973_v58, %v4035_v25  ;;  %v8646_v17 = vsel %vm9678_vm13, %v3352_v62, %v3414_v11  ;;  %v4197_v25 = vsel %vm4057_vm14, %v4196_v5, %v8511_v26  ;;  %v4220_v4 = vrot.slane %v2800_v29, %v8267_v57  ;;  %vm9679_vm9 = vmmov %vm9676_vm11 }
 0x5b1   :  { %v8649_v1 = vpop.xlane.xlu1 %2409  ;;  %v4202_v11 = vsel %vm4064_vm4, %v4201_v38, %v4197_v25  ;;  %v4178_v24 = vrot.slane %v2792_v46, %v8530_v14  ;;  %v3625_v5 = vrot.slane %v2801_v19, %v7846_v21  ;;  %v3370_v51 = vrot.slane %v2471_v50, %v9416_v6 }
 0x5b2   :  { %v2712_v39 = vpop.xlane.xlu0 %2711  ;;  %v3991_v38 = vrot.slane %v2471_v50, %v8111_v59  ;;  %v2477_v46 = vmax.f32 %v8637_v20, 0.0  ;;  %v4224_v25 = vrot.slane %v2801_v19, %v8285_v52  ;;  %v3606_v20 = vrot.slane %v2797_v27, %v9416_v6 }
 0x5b3   :  { %v8651_v35 = vmax.f32 %v2712_v39, 0.0  ;;  %v3583_v39 = vsel %vm2898_vm6, %v3582_v10, %v3578_v56  ;;  %v3394_v10 = vrot.slane %v2476_v44, %v9414_v32  ;;  %v2806_v19 = vmax.f32 %v8617_v49, 0.0 }
 0x5b4   :  { %v3626_v22 = vsel %vm2877_vm8, %v3625_v5, %v3621_v31  ;;  %v3630_v27 = vrot.slane %v2802_v9, %v9414_v32  ;;  %v3399_v56 = vrot.slane %v2477_v46, %v9416_v6  ;;  %vm9680_vm13 = vcmask 909112  }
 0x5b5   :  { %v4206_v12 = vrot.slane %v8651_v35, %v8439_v13  ;;  %v2697_v0 = vpop.xlane.xlu1 %2696  ;;  %v3395_v49 = vsel %vm2884_vm3, %v3394_v10, %v8563_v33 }
 0x5b6   :  { %v8660_v41 = vpop.xlane.xlu0 %2741  ;;  %v2793_v26 = vmax.f32 %v2697_v0, 0.0 }
 0x5b7   :  { %v4207_v42 = vsel %vm4071_vm12, %v4206_v12, %v4202_v11  ;;  %v2807_v12 = vmax.f32 %v2739_v15, 0.0  ;;  %v3602_v15 = vsel %vm2884_vm3, %v3601_v30, %v8508_v60  ;;  %v4225_v60 = vsel %vm9680_vm13, %v4224_v25, %v4220_v4 }
 0x5b8   :  { %v8667_v48 = vsel %vm9675_vm15, %v4207_v42, %v4318_v16  ;;  %v3587_v62 = vrot.slane %v2793_v26, %v9419_v8  ;;  %v4182_v58 = vrot.slane %v2793_v26, %v8537_v43  ;;  %v2472_v42 = vmax.f32 %v8649_v1, 0.0 }
 0x5b9   :  { %v8684_v34 = vpop.xlane.xlu1 %2726  ;;  %v4229_v1 = vrot.slane %v2802_v9, %v8300_v53  ;;  %v3654_v30 = vrot.slane %v2807_v12, %v7846_v21  ;;  %vm9681_vm15 = vcmask 589312   ;;  %v3607_v44 = vsel %vm2891_vm5, %v3606_v20, %v3602_v15 }
 0x5ba   :  { %v8678_v16 = vpop.xlane.xlu0 %2756  ;;  %v3588_v7 = vsel %vm2905_vm7, %v3587_v62, %v3583_v39  ;;  %v4183_v29 = vsel %vm4083_vm2, %v4182_v58, %v4178_v24  ;;  %v4016_v31 = vsel %vm9681_vm15, %v4015_v18, %v8566_v40  ;;  %v3375_v24 = vrot.slane %v2472_v42, %v9417_v28 }
 0x5bb   :  { %v8693_v11 = vsel %vm9676_vm11, %v3588_v7, %v8612_v36  ;;  %v8697_v50 = vsel %vm9679_vm9, %v4183_v29, %v8615_v54  ;;  %v3371_v36 = vsel %vm2891_vm5, %v3370_v51, %v8520_v47  ;;  %v3992_v54 = vsel %vm3813_vm1, %v3991_v38, %v8523_v45  ;;  %vm9682_vm11 = vmmov %vm9680_vm13 }
 0x5bc   :  { %v4257_v47 = vrot.slane %v2807_v12, %v8285_v52  ;;  %v4020_v45 = vrot.slane %v2477_v46, %v8111_v59  ;;  %v3650_v58 = vrot.slane %v2806_v19, %v7852_v63  ;;  %v4253_v4 = vrot.slane %v2806_v19, %v8267_v57 }
 0x5bd   :  { %v8712_v26 = vpop.xlane.xlu1 %2753  ;;  %v3996_v5 = vrot.slane %v2472_v42, %v8121_v23  ;;  %v2808_v51 = vmax.f32 %v8660_v41, 0.0  ;;  %v3631_v38 = vsel %vm2884_vm3, %v3630_v27, %v3626_v22  ;;  %v4230_v33 = vsel %vm4057_vm14, %v4229_v1, %v4225_v60 }
 0x5be   :  { %v8703_v0 = vpop.xlane.xlu0 %2427  ;;  %v3400_v40 = vsel %vm2891_vm5, %v3399_v56, %v3395_v49  ;;  %v3655_v9 = vsel %vm2877_vm8, %v3654_v30, %v3650_v58  ;;  %v4258_v46 = vsel %vm9682_vm11, %v4257_v47, %v4253_v4  ;;  %v4021_v7 = vsel %vm3813_vm1, %v4020_v45, %v4016_v31 }
 0x5bf   :  { %v3611_v29 = vrot.slane %v8651_v35, %v9417_v28  ;;  %v3376_v25 = vsel %vm2898_vm6, %v3375_v24, %v3371_v36  ;;  %v4211_v41 = vrot.slane %v8651_v35, %v8530_v14  ;;  %v3997_v20 = vsel %vm3820_vm0, %v3996_v5, %v3992_v54 }
 0x5c0   :  { %v3659_v42 = vrot.slane %v2808_v51, %v9414_v32  ;;  %v2803_v15 = vmax.f32 %v8684_v34, 0.0  ;;  %v2478_v19 = vmax.f32 %v8703_v0, 0.0  ;;  %v4262_v56 = vrot.slane %v2808_v51, %v8300_v53 }
 0x5c1   :  { %v2413_v59 = vpop.xlane.xlu1 %2412  ;;  %vm9683_vm1 = vcmask 1046534   ;;  %v3612_v54 = vsel %vm2898_vm6, %v3611_v29, %v3607_v44  ;;  %v2813_v0 = vmax.f32 %v8678_v16, 0.0  ;;  %v2812_v30 = vmax.f32 %v8712_v26, 0.0 }
 0x5c2   :  { %v2730_v62 = vpop.xlane.xlu0 %2729  ;;  %v2473_v39 = vmax.f32 %v2413_v59, 0.0  ;;  %vm9684_vm9 = vmmov %vm9683_vm1  ;;  %v8770_v31 = vsel %vm2884_vm3, %v3659_v42, %v3655_v9  ;;  %v4234_v44 = vrot.slane %v2803_v15, %v8381_v55  ;;  %vm3419_vm13 = vcmask 384000  }
 0x5c3   :  { %v8753_v35 = vmax.f32 %v2730_v62, 0.0  ;;  %v3404_v16 = vrot.slane %v2478_v19, %v9417_v28  ;;  %vm9685_vm15 = vcmask 1044484   ;;  %v3683_v9 = vrot.slane %v2813_v0, %v7846_v21 }
 0x5c4   :  { %v3380_v12 = vrot.slane %v2473_v39, %v9419_v8  ;;  %v4001_v10 = vrot.slane %v2473_v39, %v8128_v61  ;;  %vm9686_vm11 = vmmov %vm9685_vm15  ;;  %v4263_v39 = vsel %vm4057_vm14, %v4262_v56, %v4258_v46  ;;  %v3679_v29 = vrot.slane %v2812_v30, %v7852_v63 }
 0x5c5   :  { %v2715_v22 = vpop.xlane.xlu1 %2714  ;;  %v4244_v26 = vrot.slane %v8753_v35, %v8530_v14  ;;  %v4290_v42 = vrot.slane %v2813_v0, %v8285_v52  ;;  %v4286_v46 = vrot.slane %v2812_v30, %v8267_v57  ;;  %v4235_v63 = vsel %vm4064_vm4, %v4234_v44, %v4230_v33 }
 0x5c6   :  { %v3381_v36 = vsel %vm2905_vm7, %v3380_v12, %v3376_v25  ;;  %v4002_v27 = vsel %vm3827_vm10, %v4001_v10, %v3997_v20  ;;  %v2799_v1 = vmax.f32 %v2715_v22, 0.0  ;;  %v4025_v25 = vrot.slane %v2478_v19, %v8121_v23 }
 0x5c7   :  { %v8745_v18 = vpop.xlane.xlu0 %2759  ;;  %v8758_v60 = vsel %vm9683_vm1, %v4002_v27, %v8642_v37  ;;  %v3416_v34 = vsel %vm9684_vm9, %v3381_v36, %v8646_v17  ;;  %v3635_v37 = vrot.slane %v2803_v15, %v9416_v6  ;;  %vm4626_vm1 = vcmask 777216  }
 0x5c8   :  { %v3616_v47 = vrot.slane %v2799_v1, %v9419_v8  ;;  %v4215_v45 = vrot.slane %v2799_v1, %v8537_v43  ;;  %v2814_v51 = vmax.f32 %v8745_v18, 0.0  ;;  %v3405_v23 = vsel %vm2898_vm6, %v3404_v16, %v3400_v40 }
 0x5c9   :  { %v2745_v24 = vpop.xlane.xlu1 %2744  ;;  %v3636_v18 = vsel %vm2891_vm5, %v3635_v37, %v3631_v38  ;;  %vm9687_vm9 = vcmask 1045509   ;;  %v4026_v22 = vsel %vm3820_vm0, %v4025_v25, %v4021_v7  ;;  %v3684_v57 = vsel %vm2877_vm8, %v3683_v9, %v3679_v29 }
 0x5ca   :  { %v3617_v62 = vsel %vm2905_vm7, %v3616_v47, %v3612_v54  ;;  %v4216_v58 = vsel %vm4083_vm2, %v4215_v45, %v4211_v41  ;;  %v2809_v12 = vmax.f32 %v2745_v24, 0.0  ;;  %v4295_v15 = vrot.slane %v2814_v51, %v8300_v53 }
 0x5cb   :  { %v8767_v49 = vpop.xlane.xlu0 %2732  ;;  %v8782_v4 = vsel %vm9685_vm15, %v3617_v62, %v8693_v11  ;;  %v4326_v5 = vsel %vm9686_vm11, %v4216_v58, %v8697_v50  ;;  %v4239_v11 = vrot.slane %v8753_v35, %v8439_v13  ;;  %vm9688_vm15 = vcmask 909112   ;;  %vm9696_vm11 = vmmov %vm9687_vm9 }
 0x5cc   :  { %v2805_v17 = vmax.f32 %v8767_v49, 0.0  ;;  %v4267_v33 = vrot.slane %v2809_v12, %v8381_v55  ;;  %v4291_v53 = vsel %vm9688_vm15, %v4290_v42, %v4286_v46  ;;  %vm9689_vm0 = vcmask 1047559  }
 0x5cd   :  { %v2431_v50 = vpop.xlane.xlu1 %2430  ;;  %v4240_v1 = vsel %vm4071_vm12, %v4239_v11, %v4235_v63  ;;  %v4296_v30 = vsel %vm4057_vm14, %v4295_v15, %v4291_v53  ;;  %v3664_v24 = vrot.slane %v2809_v12, %v9416_v6  ;;  %vm9691_vm8 = vmmov %vm9689_vm0  ;;  %vm9692_vm14 = vcmask 1046534  }
 0x5ce   :  { %v4248_v59 = vrot.slane %v2805_v17, %v8537_v43  ;;  %v2479_v21 = vmax.f32 %v2431_v50, 0.0  ;;  %v4268_v16 = vsel %vm4064_vm4, %v4267_v33, %v4263_v39  ;;  %v3645_v62 = vrot.slane %v2805_v17, %v9419_v8 }
 0x5cf   :  { %v2763_v41 = vpop.xlane.xlu0 %2762  ;;  %v3732_v33 = vsub.s32 4, %v9550_v3 }
 0x5d0   :  { %v4249_v10 = vsel %vm4083_vm2, %v4248_v59, %v4244_v26  ;;  %v2815_v20 = vmax.f32 %v2763_v41, 0.0  ;;  %v3409_v36 = vrot.slane %v2479_v21, %v9419_v8  ;;  %v4030_v38 = vrot.slane %v2479_v21, %v8128_v61 }
 0x5d1   :  { %v4327_v19 = vsel %vm9687_vm9, %v4249_v10, %v4326_v5  ;;  %v3640_v61 = vrot.slane %v8753_v35, %v9417_v28  ;;  %v3665_v41 = vsel %vm2891_vm5, %v3664_v24, %v8770_v31 }
 0x5d2   :  { %v4300_v52 = vrot.slane %v2815_v20, %v8381_v55  ;;  %v4031_v54 = vsel %vm3827_vm10, %v4030_v38, %v4026_v22  ;;  %v3410_v0 = vsel %vm2905_vm7, %v3409_v36, %v3405_v23  ;;  %vm9690_vm10 = vmmov %vm9687_vm9  ;;  %v3693_v59 = vrot.slane %v2815_v20, %v9416_v6 }
 0x5d3   :  { %v2766_v27 = vpop.xlane.xlu0 %2765  ;;  %v2748_v40 = vpop.xlane.xlu1 %2747  ;;  %v3417_v45 = vsel %vm9689_vm0, %v3410_v0, %v3416_v34  ;;  %v4320_v44 = vsel %vm9690_vm10, %v4240_v1, %v8667_v48  ;;  %v4038_v26 = vsel %vm9691_vm8, %v4031_v54, %v8758_v60  ;;  %v3688_v48 = vrot.slane %v2814_v51, %v9414_v32  ;;  %vm9698_vm9 = vmmov %vm9689_vm0 }
 0x5d4   :  { %v2816_v56 = vmax.f32 %v2766_v27, 0.0  ;;  %v2810_v7 = vmax.f32 %v2748_v40, 0.0  ;;  %v4301_v55 = vsel %vm4064_vm4, %v4300_v52, %v4296_v30  ;;  %v3420_v37 = vsel %vm3419_vm13, %v3417_v45, 0.0  ;;  %vm9693_vm4 = vmmov %vm9689_vm0 }
 0x5d5   :  { %3421 = vadd.xlane.f32.xlu1 %v3420_v37  ;;  %vm9694_vm13 = vcmask 392192   ;;  %v3641_v32 = vsel %vm2898_vm6, %v3640_v61, %v3636_v18  ;;  %v3721_v52 = vsub.s32 2, %v9550_v3 }
 0x5d6   :  { %v4305_v47 = vrot.slane %v2816_v56, %v8439_v13  ;;  %v4272_v49 = vrot.slane %v2810_v7, %v8439_v13  ;;  %v3669_v13 = vrot.slane %v2810_v7, %v9417_v28  ;;  %v4277_v39 = vrot.slane %v2810_v7, %v8530_v14 }
 0x5d7   :  { %v4625_v17 = vsel %vm9694_vm13, %v8311_v2, %v4038_v26  ;;  %v3698_v6 = vrot.slane %v2816_v56, %v9417_v28  ;;  %v3646_v12 = vsel %vm2905_vm7, %v3645_v62, %v3641_v32  ;;  %v3689_v2 = vsel %vm2884_vm3, %v3688_v48, %v3684_v57 }
 0x5d8   :  { %v4306_v34 = vsel %vm4071_vm12, %v4305_v47, %v4301_v55  ;;  %v4273_v58 = vsel %vm4071_vm12, %v4272_v49, %v4268_v16  ;;  %v3670_v10 = vsel %vm2898_vm6, %v3669_v13, %v3665_v41  ;;  %vm9695_vm12 = vmmov %vm9692_vm14  ;;  %v3694_v18 = vsel %vm2891_vm5, %v3693_v59, %v3689_v2  ;;  %v9701_v16 = vld [vmem:[#allocation12_spill] sm:$0xff] }
 0x5d9   :  { %v4321_v9 = vsel %vm9692_vm14, %v4273_v58, %v4320_v44  ;;  %v4310_v28 = vrot.slane %v2816_v56, %v8530_v14  ;;  %v3699_v63 = vsel %vm2898_vm6, %v3698_v6, %v3694_v18  ;;  %v3709_v23 = vsel %vm9696_vm11, %v3646_v12, %v8782_v4  ;;  %vm9697_vm3 = vmmov %vm9695_vm12  ;;  %v3128_v27 = vpop.xlane.xlu0 %3127  ;;  %v4853_v4 = vld [vmem:[%s8876_s2] sm:$0xff]  ;;  %s4904_s2 = smov [#allocation5]  }
 0x5da   :  { %v2751_v35 = vpop.xlane.xlu1 %2750  ;;  %v4322_v25 = vsel %vm9693_vm4, %v4306_v34, %v4321_v9  ;;  %vm9699_vm5 = vmmov %vm9689_vm0  ;;  %v3722_v40 = vrot.slane %v4853_v4, %v3721_v52  ;;  %v3130_v56 = vmul.f32 0.020833334, %v3128_v27  ;;  %v3733_v54 = vrot.slane %v4853_v4, %v3732_v33  ;;  %s4641_s15 = sshll.u32 %s4904_s2, 4  ;;  %s4642_s15 = int_to_ptr.vmem [resolvable:$true] %s4641_s15 }
 0x5db   :  { %v2811_v5 = vmax.f32 %v2751_v35, 0.0  ;;  %v4627_v11 = vsel %vm4626_vm1, %v4625_v17, %v4322_v25  ;;  %vm3713_vm1 = vcmask 375808   ;;  %v9700_v47 = vsub.s32 1, %v9550_v3  ;;  %s4874_s16 = scalar_lea.vmem %s4642_s15, 256  ;;  %p4879_p6 = scmp.lt.s32.totalorder %s4642_s15, %s4642_s15 }
 0x5dc   :  { %4632 = vst [vmem:[#allocation5] sm:$0xff] %v4627_v11  ;;  %v3723_v0 = vmul.f32 %v3722_v40, %v3130_v56  ;;  %vm4628_vm6 = vcmask 105472   ;;  %p4875_p5 = scmp.ne.s32.totalorder %s4642_s15, %s4874_s16  ;;  %p4880_p7 = scmp.lt.s32.totalorder %s4874_s16, %s4874_s16 }
 0x5dd   :  { %v3674_v29 = vrot.slane %v2811_v5, %v9419_v8  ;;  %v4281_v60 = vrot.slane %v2811_v5, %v8537_v43  ;;  %v3739_v45 = vrot.slane %v4853_v4, %v9700_v47 }
 0x5de   :  { %v2769_v51 = vpop.xlane.xlu1 %2768  ;;  %p4881_p8 = por %p4880_p7, %p4879_p6 }
 0x5df   :  { %v4282_v50 = vsel %vm4083_vm2, %v4281_v60, %v4277_v39  ;;  %v2817_v20 = vmax.f32 %v2769_v51, 0.0  ;;  %v3675_v42 = vsel %vm2905_vm7, %v3674_v29, %v3670_v10 }
 0x5e0   :  { %v4328_v31 = vsel %vm9695_vm12, %v4282_v50, %v4327_v19  ;;  %v3710_v22 = vsel %vm9697_vm3, %v3675_v42, %v3709_v23  ;;  %p4882_p9 = pnand %p4881_p8, %p4875_p5 }
 0x5e1   :  { %v3703_v46 = vrot.slane %v2817_v20, %v9419_v8  ;;  %v4314_v21 = vrot.slane %v2817_v20, %v8537_v43  ;;  %v3726_v8 = vsub.s32 3, %v9550_v3 }
 0x5e3   :  { %v3704_v15 = vsel %vm2905_vm7, %v3703_v46, %v3699_v63  ;;  %v4315_v19 = vsel %vm4083_vm2, %v4314_v21, %v4310_v28  ;;  %v3727_v57 = vrot.slane %v4853_v4, %v3726_v8  ;;  %vm4630_vm7 = vcmask 130048  }
 0x5e4   :  { %v3711_v36 = vsel %vm9698_vm9, %v3704_v15, %v3710_v22  ;;  %v4329_v14 = vsel %vm9699_vm5, %v4315_v19, %v4328_v31  ;;  %vm4633_vm2 = vcmask 523264  }
 0x5e5   :  { %v3714_v38 = vsel %vm3713_vm1, %v3711_v36, 0.0 }
 0x5e6   :  { %3715 = vadd.xlane.f32.xlu0 %v3714_v38 }
 0x65e   :  { %v3422_v43 = vpop.xlane.xlu1 %3421 }
 0x65f   :  { %v3424_v1 = vmul.f32 0.021276595, %v3422_v43 }
 0x661   :  { %v3728_v53 = vmul.f32 %v3727_v57, %v3424_v1 }
 0x663   :  { %v3729_v30 = vadd.f32 %v3728_v53, %v3723_v0 }
 0x66f   :  { %v3716_v7 = vpop.xlane.xlu0 %3715 }
 0x670   :  { %v3718_v61 = vmul.f32 0.02173913, %v3716_v7 }
 0x672   :  { %v3734_v55 = vmul.f32 %v3733_v54, %v3718_v61 }
 0x674   :  { %v3735_v49 = vadd.f32 %v3734_v55, %v3729_v30 }
 0x676   :  { %v3740_v37 = vadd.f32 %v3739_v45, %v3735_v49 }
 0x678   :  { %4333 = vrot.lane.b32.xlu1 %v3740_v37, %s4903_s14 }
 0x6ea   :  { %v4334_v44 = vpop.permute.xlu1 %4333 }
 0x6eb   :  { %v4629_v24 = vsel %vm4628_vm6, %v4329_v14, %v4334_v44 }
 0x6ec   :  { %v4631_v35 = vsel %vm4630_vm7, %v4629_v24, %v9701_v16 }
 0x6ed   :  { %4634 = vst.msk [vmem:[#allocation5 + $0x8] sm:$0xff] %vm4633_vm2, %v4631_v35 }
 0x6ee   :  { %4885 = shalt.err (!%p4882_p9)
}
 0x6ef   :  { %4644 = dma.vmem_to_hbm [thread:$0]  %s4642_s15, 256, %s8877_s3, [#allocation4]  }
 0x6f0   :  { %4896 = dma.done.wait [#allocation4], 256  }
 0x6f1   :  { %4897 = vsyncadd [#allocation4], 4294967040 }
 0x6f2   :  { %4648 = vsyncpa [#allocation3], 1 }
 0x6f3   :  { %4649 = vsyncpa [#allocation4], 1 }

</bundles_post_ra>
